<compile_context>
chip_gen: v7x
topology: tpu7x:2x2x1
jax: 0.10.0
libtpu: 0.0.40
codegen_flags: <defaults>
</compile_context>

<pallas_src>
import jax
import jax.numpy as jnp
from jax.experimental import pallas as pl
from jax.experimental.pallas import tpu as pltpu

# ---------------- small synthetic config (lane-dense last dims) ----------------
B = 2
L = 16
C_S = 128            # sequence_state_dim (1024 in real ESMFold)
C_Z = 128            # pairwise_state_dim (128 in real ESMFold)
SM_C_S = 128         # structure_module.c_s (384 in real ESMFold)
SM_C_Z = 128         # structure_module.c_z (128 in real ESMFold)
POS_BINS = 32        # position_bins -> relpos vocab = 2*POS_BINS + 2
RELPOS_V = 2 * POS_BINS + 2
RECYCLE_BINS = 15
MAX_RECYCLES = 2
LN_EPS = 1e-5
POS_PAD = 128        # placeholder coords padded to a lane-dense width (first 9 columns used)
CB_PAD = 128         # pseudo-beta coords padded to a lane-dense width (first 3 columns used)

Z_TILE_I = 8         # pairwise rows per grid step for the z kernels
S_TILE_M = 16        # flattened sequence rows per grid step for the s kernel

# compile-time squared distogram boundaries (torch.linspace(3.375, 21.375, 14) ** 2)
_MIN_BIN, _MAX_BIN = 3.375, 21.375
_NB = RECYCLE_BINS - 1
DIST_BOUNDS_SQ = tuple(
    (_MIN_BIN + k * (_MAX_BIN - _MIN_BIN) / (_NB - 1)) ** 2 for k in range(_NB)
)


# ---------------- Pallas kernels ----------------
def _relpos_base_kernel(z0_ref, idx_ref, emb_ref, out_ref):
    # Loop-invariant: out = s_z_0 + relpos_embedding[idx]   (one-hot gather on the MXU)
    idx = idx_ref[0]                                              # (TLI, L) int32
    iota = jax.lax.broadcasted_iota(jnp.int32, (Z_TILE_I, L, RELPOS_V), 2)
    onehot = (idx[:, :, None] == iota).astype(jnp.float32)
    pos = jnp.einsum('ijv,vc->ijc', onehot, emb_ref[...],
                     preferred_element_type=jnp.float32)
    out_ref[0] = z0_ref[0] + pos


def _fused_z_kernel(rz_ref, zbase_ref, cbc_ref, cbr_ref, g_ref, b_ref, disto_ref,
                    wz_ref, bz_ref, sz_ref, smz_ref):
    # Fused per-recycle z pipeline (single read/write of the big pair tensor):
    #   bins = distogram(CB from previous recycle)       (computed in-kernel, never hits HBM)
    #   s_z  = z_base + LayerNorm(recycle_z) + recycle_disto[bins]
    #   sm_z = s_z @ W_z^T + b_z                         (bf16 MXU operands, f32 accumulation)
    rz = rz_ref[0]                                                # (TLI, L, C_Z) f32
    mean = jnp.mean(rz, axis=-1, keepdims=True)
    var = jnp.mean((rz - mean) ** 2, axis=-1, keepdims=True)
    ln = (rz - mean) * jax.lax.rsqrt(var + LN_EPS) * g_ref[...] + b_ref[...]

    # fused distogram: squared pairwise distances between pseudo-beta atoms
    cbc = cbc_ref[0]                                              # (TLI, CB_PAD) cols 0..2 = xyz
    cbr = cbr_ref[0]                                              # (8, L)        rows 0..2 = xyz
    dx = cbc[:, 0:1] - cbr[0:1, :]
    dy = cbc[:, 1:2] - cbr[1:2, :]
    dz = cbc[:, 2:3] - cbr[2:3, :]
    dists = dx * dx + dy * dy + dz * dz                           # (TLI, L)
    bins = jnp.zeros((Z_TILE_I, L), jnp.int32)
    for bd in DIST_BOUNDS_SQ:                                     # static, unrolled (14 compares)
        bins = bins + (dists > bd).astype(jnp.int32)

    iota = jax.lax.broadcasted_iota(jnp.int32, (Z_TILE_I, L, RECYCLE_BINS), 2)
    onehot = (bins[:, :, None] == iota).astype(jnp.float32)
    disto = jnp.einsum('ijv,vc->ijc', onehot, disto_ref[...],
                       preferred_element_type=jnp.float32)

    z = zbase_ref[0] + ln + disto                                 # (TLI, L, C_Z)
    sz_ref[0] = z
    smz_ref[0] = jnp.einsum('ijc,cd->ijd', z.astype(jnp.bfloat16), wz_ref[...],
                            preferred_element_type=jnp.float32) + bz_ref[...]


def _fused_s_kernel(rs_ref, s0_ref, g_ref, b_ref, ws_ref, bs_ref, wp_ref, bp_ref,
                    ss_ref, sms_ref, pos_ref, cb_ref):
    # Fused per-recycle s pipeline:
    #   s_s  = s_s_0 + LayerNorm(recycle_s)
    #   sm_s = s_s @ W_s^T + b_s
    #   pos  = sm_s @ W_pos + b_pos     (placeholder StructureModule backbone, lane-padded)
    #   CB   = pseudo-beta from N/CA/C  (consumed by the next recycle's fused z kernel)
    rs = rs_ref[...]                                              # (TM, C_S) f32
    mean = jnp.mean(rs, axis=-1, keepdims=True)
    var = jnp.mean((rs - mean) ** 2, axis=-1, keepdims=True)
    ln = (rs - mean) * jax.lax.rsqrt(var + LN_EPS) * g_ref[...] + b_ref[...]
    s = s0_ref[...] + ln
    ss_ref[...] = s
    sm = jnp.dot(s.astype(jnp.bfloat16), ws_ref[...],
                 preferred_element_type=jnp.float32) + bs_ref[...]
    sms_ref[...] = sm
    pos = jnp.dot(sm.astype(jnp.bfloat16), wp_ref[...],
                  preferred_element_type=jnp.float32) + bp_ref[...]
    pos_ref[...] = pos

    # pseudo-beta: CB = -0.58273431*a + 0.56802827*b - 0.54067466*c + CA, a = b x c
    bX = pos[:, 3:4] - pos[:, 0:1]; bY = pos[:, 4:5] - pos[:, 1:2]; bZ = pos[:, 5:6] - pos[:, 2:3]
    cX = pos[:, 6:7] - pos[:, 3:4]; cY = pos[:, 7:8] - pos[:, 4:5]; cZ = pos[:, 8:9] - pos[:, 5:6]
    aX = bY * cZ - bZ * cY; aY = bZ * cX - bX * cZ; aZ = bX * cY - bY * cX
    cbx = -0.58273431 * aX + 0.56802827 * bX - 0.54067466 * cX + pos[:, 3:4]
    cby = -0.58273431 * aY + 0.56802827 * bY - 0.54067466 * cY + pos[:, 4:5]
    cbz = -0.58273431 * aZ + 0.56802827 * bZ - 0.54067466 * cZ + pos[:, 5:6]
    lane = jax.lax.broadcasted_iota(jnp.int32, (S_TILE_M, CB_PAD), 1)
    cb_ref[...] = (jnp.where(lane == 0, cbx, 0.0)
                   + jnp.where(lane == 1, cby, 0.0)
                   + jnp.where(lane == 2, cbz, 0.0))


def _distogram_kernel(cbc_ref, cbr_ref, o_ref):
    # FoldingTrunk.distogram for one row tile: direct (CB_i - CB_j)^2 formulation on
    # pre-computed CB coords (column layout + pre-transposed row layout; no in-kernel
    # transposes, no CB recomputation).  Run once after the loop for the final bins.
    cbc = cbc_ref[0]                                              # (TLI, CB_PAD)
    cbr = cbr_ref[0]                                              # (8, L)
    dx = cbc[:, 0:1] - cbr[0:1, :]
    dy = cbc[:, 1:2] - cbr[1:2, :]
    dz = cbc[:, 2:3] - cbr[2:3, :]
    dists = dx * dx + dy * dy + dz * dz                           # (TLI, L) squared distances
    bins = jnp.zeros((Z_TILE_I, L), jnp.int32)
    for bd in DIST_BOUNDS_SQ:
        bins = bins + (dists > bd).astype(jnp.int32)
    o_ref[0] = bins


# ---------------- wrappers ----------------
_PAR2 = pltpu.CompilerParams(dimension_semantics=("parallel", "parallel"))
_PAR1 = pltpu.CompilerParams(dimension_semantics=("parallel",))


def relpos_base(s_z_0, residx, mask, emb):
    # Relative-position index map is tiny integer work -> precomputed once in XLA;
    # the embedding gather + add runs in Pallas.
    ri = residx.astype(jnp.int32)
    diff = ri[:, None, :] - ri[:, :, None]
    diff = jnp.clip(diff, -POS_BINS, POS_BINS) + (POS_BINS + 1)
    pair_mask = mask[:, :, None] * mask[:, None, :]
    idx = jnp.where(pair_mask > 0, diff, 0).astype(jnp.int32)

    zspec = pl.BlockSpec((1, Z_TILE_I, L, C_Z), lambda b, i: (b, i, 0, 0))
    return pl.pallas_call(
        _relpos_base_kernel,
        out_shape=jax.ShapeDtypeStruct((B, L, L, C_Z), jnp.float32),
        grid=(B, L // Z_TILE_I),
        in_specs=[
            zspec,
            pl.BlockSpec((1, Z_TILE_I, L), lambda b, i: (b, i, 0)),
            pl.BlockSpec((RELPOS_V, C_Z), lambda b, i: (0, 0)),
        ],
        out_specs=zspec,
        compiler_params=_PAR2,
    )(s_z_0, idx, emb)


def fused_z_step(recycle_z, z_base, cb_cols, cb_rows, gamma, beta, disto, wz_bf16, bz):
    zspec = pl.BlockSpec((1, Z_TILE_I, L, C_Z), lambda b, i: (b, i, 0, 0))
    return pl.pallas_call(
        _fused_z_kernel,
        out_shape=(jax.ShapeDtypeStruct((B, L, L, C_Z), jnp.float32),
                   jax.ShapeDtypeStruct((B, L, L, SM_C_Z), jnp.float32)),
        grid=(B, L // Z_TILE_I),
        in_specs=[
            zspec,                                                         # recycle_z (aliased)
            zspec,                                                         # z_base
            pl.BlockSpec((1, Z_TILE_I, CB_PAD), lambda b, i: (b, i, 0)),   # CB, column layout
            pl.BlockSpec((1, 8, L), lambda b, i: (b, 0, 0)),               # CB, row layout
            pl.BlockSpec((1, 1, C_Z), lambda b, i: (0, 0, 0)),             # LN gamma
            pl.BlockSpec((1, 1, C_Z), lambda b, i: (0, 0, 0)),             # LN beta
            pl.BlockSpec((RECYCLE_BINS, C_Z), lambda b, i: (0, 0)),        # recycle_disto emb
            pl.BlockSpec((C_Z, SM_C_Z), lambda b, i: (0, 0)),              # W_z (bf16)
            pl.BlockSpec((1, 1, SM_C_Z), lambda b, i: (0, 0, 0)),          # b_z
        ],
        out_specs=(zspec,
                   pl.BlockSpec((1, Z_TILE_I, L, SM_C_Z), lambda b, i: (b, i, 0, 0))),
        input_output_aliases={0: 0},    # recycle_z buffer is reused for s_z
        compiler_params=_PAR2,
    )(recycle_z, z_base, cb_cols, cb_rows, gamma, beta, disto, wz_bf16, bz)


def fused_s_step(recycle_s_flat, s0_flat, gamma, beta, ws_bf16, bs, wp_bf16, bp):
    rows = B * L

    def rowspec(width):
        return pl.BlockSpec((S_TILE_M, width), lambda i: (i, 0))

    return pl.pallas_call(
        _fused_s_kernel,
        out_shape=(jax.ShapeDtypeStruct((rows, C_S), jnp.float32),
                   jax.ShapeDtypeStruct((rows, SM_C_S), jnp.float32),
                   jax.ShapeDtypeStruct((rows, POS_PAD), jnp.float32),
                   jax.ShapeDtypeStruct((rows, CB_PAD), jnp.float32)),
        grid=(rows // S_TILE_M,),
        in_specs=[
            rowspec(C_S),                                          # recycle_s (aliased)
            rowspec(C_S),                                          # s_s_0
            pl.BlockSpec((1, C_S), lambda i: (0, 0)),              # LN gamma
            pl.BlockSpec((1, C_S), lambda i: (0, 0)),              # LN beta
            pl.BlockSpec((C_S, SM_C_S), lambda i: (0, 0)),         # W_s (bf16)
            pl.BlockSpec((1, SM_C_S), lambda i: (0, 0)),           # b_s
            pl.BlockSpec((SM_C_S, POS_PAD), lambda i: (0, 0)),     # W_pos (bf16, lane-padded)
            pl.BlockSpec((1, POS_PAD), lambda i: (0, 0)),          # b_pos
        ],
        out_specs=(rowspec(C_S), rowspec(SM_C_S), rowspec(POS_PAD), rowspec(CB_PAD)),
        input_output_aliases={0: 0},    # recycle_s buffer is reused for s_s
        compiler_params=_PAR1,
    )(recycle_s_flat, s0_flat, gamma, beta, ws_bf16, bs, wp_bf16, bp)


def distogram_bins(cb_cols, cb_rows):
    return pl.pallas_call(
        _distogram_kernel,
        out_shape=jax.ShapeDtypeStruct((B, L, L), jnp.int32),
        grid=(B, L // Z_TILE_I),
        in_specs=[
            pl.BlockSpec((1, Z_TILE_I, CB_PAD), lambda b, i: (b, i, 0)),
            pl.BlockSpec((1, 8, L), lambda b, i: (b, 0, 0)),
        ],
        out_specs=pl.BlockSpec((1, Z_TILE_I, L), lambda b, i: (b, i, 0)),
        compiler_params=_PAR2,
    )(cb_cols, cb_rows)


def _cb_rows_from_cols(cb_cols):
    # (B, L, CB_PAD) -> (B, 8, L); sublanes 0..2 hold CB x/y/z.  Tiny XLA transpose + pad,
    # avoids any in-kernel transpose in the z/distogram kernels.
    cb3 = jnp.transpose(cb_cols[:, :, :3], (0, 2, 1))              # (B, 3, L)
    return jnp.pad(cb3, ((0, 0), (0, 8 - 3), (0, 0)))


# ---------------- parameters (deterministic synthetic init) ----------------
def init_params(key):
    ks = jax.random.split(key, 10)
    disto = jax.random.normal(ks[1], (RECYCLE_BINS, C_Z), jnp.float32) * 0.02
    disto = disto.at[0].set(0.0)                  # recycle_disto.weight[0].zero_()
    wpos9 = jax.random.normal(ks[6], (SM_C_S, 9), jnp.float32) * 0.3
    wpos = jnp.zeros((SM_C_S, POS_PAD), jnp.float32).at[:, :9].set(wpos9)
    return {
        "relpos_emb": jax.random.normal(ks[0], (RELPOS_V, C_Z), jnp.float32) * 0.02,
        "recycle_disto": disto,
        "recycle_s_gamma": jnp.ones((C_S,), jnp.float32),
        "recycle_s_beta": jnp.zeros((C_S,), jnp.float32),
        "recycle_z_gamma": jnp.ones((C_Z,), jnp.float32),
        "recycle_z_beta": jnp.zeros((C_Z,), jnp.float32),
        # linear weights stored pre-transposed as (Din, Dout)
        "trunk2sm_s_w": jax.random.normal(ks[2], (C_S, SM_C_S), jnp.float32) * 0.05,
        "trunk2sm_s_b": jax.random.normal(ks[3], (SM_C_S,), jnp.float32) * 0.01,
        "trunk2sm_z_w": jax.random.normal(ks[4], (C_Z, SM_C_Z), jnp.float32) * 0.05,
        "trunk2sm_z_b": jax.random.normal(ks[5], (SM_C_Z,), jnp.float32) * 0.01,
        # TODO(synk): placeholder projection standing in for StructureModule backbone output.
        "pos_placeholder_w": wpos,
        "pos_placeholder_b": jnp.zeros((POS_PAD,), jnp.float32),
    }


# ---------------- forward ----------------
def folding_trunk_forward(params, seq_feats, pair_feats, true_aa, residx, mask,
                          no_recycles=None):
    del true_aa  # consumed only by the (unavailable) StructureModule
    s_s_0 = seq_feats.astype(jnp.float32).reshape(B * L, C_S)
    s_z_0 = pair_feats.astype(jnp.float32)
    if no_recycles is None:
        no_recycles = MAX_RECYCLES
    else:
        assert no_recycles >= 0
        no_recycles += 1
    assert no_recycles > 0

    # hoisted loop-invariant: z_base = s_z_0 + relpos(residx, mask)
    z_base = relpos_base(s_z_0, residx, mask.astype(jnp.float32), params["relpos_emb"])

    gz = params["recycle_z_gamma"].reshape(1, 1, C_Z)
    bz_ln = params["recycle_z_beta"].reshape(1, 1, C_Z)
    gs = params["recycle_s_gamma"].reshape(1, C_S)
    bs_ln = params["recycle_s_beta"].reshape(1, C_S)
    wz = params["trunk2sm_z_w"].astype(jnp.bfloat16)
    bz = params["trunk2sm_z_b"].reshape(1, 1, SM_C_Z)
    ws = params["trunk2sm_s_w"].astype(jnp.bfloat16)
    bs = params["trunk2sm_s_b"].reshape(1, SM_C_S)
    wp = params["pos_placeholder_w"].astype(jnp.bfloat16)
    bp = params["pos_placeholder_b"].reshape(1, POS_PAD)

    recycle_s = jnp.zeros_like(s_s_0)
    recycle_z = jnp.zeros_like(s_z_0)
    # CB = 0 for the first recycle -> all pairwise dists = 0 -> bins = 0
    # (exactly matches the torch.zeros recycle_bins initialization).
    cb_cols = jnp.zeros((B, L, CB_PAD), jnp.float32)

    s_s = s_z = sm_s = sm_z = pos_flat = None
    for _ in range(no_recycles):
        cb_rows = _cb_rows_from_cols(cb_cols)
        # ---- fused z path: LN + fused distogram/disto gather + z_base add + trunk2sm_z ----
        # TODO(synk): 48x TriangularSelfAttentionBlock not provided -> identity trunk.
        s_z, sm_z = fused_z_step(recycle_z, z_base, cb_cols, cb_rows, gz, bz_ln,
                                 params["recycle_disto"], wz, bz)
        # ---- fused s path: LN + s_s_0 add + trunk2sm_s + placeholder coords + CB ----
        # TODO(synk): StructureModule not provided; placeholder coords feed the distogram.
        s_s, sm_s, pos_flat, cb_flat = fused_s_step(recycle_s, s_s_0, gs, bs_ln,
                                                    ws, bs, wp, bp)
        cb_cols = cb_flat.reshape(B, L, CB_PAD)
        recycle_s = s_s
        recycle_z = s_z

    # final-iteration recycle_bins (the torch module computes it in the last recycle too)
    recycle_bins = distogram_bins(cb_cols, _cb_rows_from_cols(cb_cols))

    positions = pos_flat.reshape(B, L, POS_PAD)[:, :, :9].reshape(B, L, 3, 3)
    structure = {
        "single": sm_s.reshape(B, L, SM_C_S),
        "pair": sm_z,
        "positions": positions,
        "recycle_bins": recycle_bins,
        "s_s": s_s.reshape(B, L, C_S),
        "s_z": s_z,
    }
    return structure


if __name__ == "__main__":
    key = jax.random.PRNGKey(0)
    k1, k2, kp = jax.random.split(key, 3)
    seq_feats = jax.random.normal(k1, (B, L, C_S), jnp.float32)
    pair_feats = jax.random.normal(k2, (B, L, L, C_Z), jnp.float32)
    true_aa = jnp.zeros((B, L), jnp.int32)
    residx = jnp.broadcast_to(jnp.arange(L, dtype=jnp.int32), (B, L))
    mask = jnp.ones((B, L), jnp.float32).at[1, -2:].set(0.0)

    params = init_params(kp)
    fwd = jax.jit(folding_trunk_forward)
    out = fwd(params, seq_feats, pair_feats, true_aa, residx, mask)
    jax.tree_util.tree_map(jax.block_until_ready, out)
    print("KERNEL_OK")
</pallas_src>

<mosaic_0001>
module attributes {stable_mosaic.version = 11 : i64} {
  func.func @_relpos_base_kernel(%arg0: i32, %arg1: i32, %arg2: memref<1x8x16x128xf32, #tpu.memory_space<vmem>>, %arg3: memref<1x8x16xi32, #tpu.memory_space<vmem>>, %arg4: memref<66x128xf32, #tpu.memory_space<vmem>>, %arg5: memref<1x8x16x128xf32, #tpu.memory_space<vmem>>) attributes {dimension_semantics = [#tpu.dimension_semantics<parallel>, #tpu.dimension_semantics<parallel>], iteration_bounds = array<i64: 2, 2>, scalar_prefetch = 0 : i64, scratch_operands = 0 : i64, tpu.core_type = #tpu.core_type<tc>, window_params = [{transform_indices = @transform_0, window_bounds = array<i64: 1, 8, 16, 128>}, {transform_indices = @transform_1, window_bounds = array<i64: 1, 8, 16>}, {pipeline_mode = #tpu.pipeline_mode<synchronous>, transform_indices = @transform_2, window_bounds = array<i64: 66, 128>}, {transform_indices = @transform_3, window_bounds = array<i64: 1, 8, 16, 128>}]} {
    %c0 = arith.constant 0 : index
    %c0_0 = arith.constant 0 : index
    %c0_1 = arith.constant 0 : index
    %0 = vector.load %arg3[%c0, %c0_0, %c0_1] : memref<1x8x16xi32, #tpu.memory_space<vmem>>, vector<1x8x16xi32>
    %1 = vector.shape_cast %0 : vector<1x8x16xi32> to vector<8x16xi32>
    %2 = tpu.iota {dimensions = array<i32: 2>} : vector<8x16x66xi32>
    %3 = vector.shape_cast %1 : vector<8x16xi32> to vector<8x16x1xi32>
    %4 = vector.broadcast %3 : vector<8x16x1xi32> to vector<8x16x66xi32>
    %5 = arith.cmpi eq, %4, %2 : vector<8x16x66xi32>
    %6 = arith.extui %5 : vector<8x16x66xi1> to vector<8x16x66xi32>
    %7 = arith.sitofp %6 : vector<8x16x66xi32> to vector<8x16x66xf32>
    %c0_2 = arith.constant 0 : index
    %c0_3 = arith.constant 0 : index
    %8 = vector.load %arg4[%c0_2, %c0_3] : memref<66x128xf32, #tpu.memory_space<vmem>>, vector<66x128xf32>
    "tpu.trace_start"() <{level = 10 : i32, message = "ijv,vc->ijc"}> : () -> ()
    %cst = arith.constant dense<0.000000e+00> : vector<8x16x128xf32>
    %9 = tpu.matmul %7, %8, %cst {dimension_numbers = #tpu.dot_dimension_numbers<[2], [0], [0, 1], [1], [0, 0, 0, 1, 1, 1], [], []>} : vector<8x16x66xf32>, vector<66x128xf32>, vector<8x16x128xf32> -> vector<8x16x128xf32>
    "tpu.trace_stop"() : () -> ()
    %c0_4 = arith.constant 0 : index
    %c0_5 = arith.constant 0 : index
    %c0_6 = arith.constant 0 : index
    %c0_7 = arith.constant 0 : index
    %10 = vector.load %arg2[%c0_4, %c0_5, %c0_6, %c0_7] : memref<1x8x16x128xf32, #tpu.memory_space<vmem>>, vector<1x8x16x128xf32>
    %11 = vector.shape_cast %10 : vector<1x8x16x128xf32> to vector<8x16x128xf32>
    %12 = arith.addf %11, %9 : vector<8x16x128xf32>
    %c0_8 = arith.constant 0 : index
    %c0_9 = arith.constant 0 : index
    %c0_10 = arith.constant 0 : index
    %c0_11 = arith.constant 0 : index
    %13 = vector.load %arg5[%c0_8, %c0_9, %c0_10, %c0_11] : memref<1x8x16x128xf32, #tpu.memory_space<vmem>>, vector<1x8x16x128xf32>
    %14 = vector.shape_cast %13 : vector<1x8x16x128xf32> to vector<8x16x128xf32>
    %15 = vector.shape_cast %12 : vector<8x16x128xf32> to vector<1x8x16x128xf32>
    tpu.vector_store %arg5[%c0_8, %c0_9, %c0_10, %c0_11], %15 {strides = array<i32>} : memref<1x8x16x128xf32, #tpu.memory_space<vmem>>, vector<1x8x16x128xf32>,
    return
  }
  func.func @transform_0(%arg0: i32, %arg1: i32) -> (i32, i32, i32, i32) {
    %c0_i32 = arith.constant 0 : i32
    %c0_i32_0 = arith.constant 0 : i32
    %c0_i32_1 = arith.constant 0 : i32
    return %arg0, %arg1, %c0_i32, %c0_i32_0 : i32, i32, i32, i32
  }
  func.func @transform_1(%arg0: i32, %arg1: i32) -> (i32, i32, i32) {
    %c0_i32 = arith.constant 0 : i32
    %c0_i32_0 = arith.constant 0 : i32
    return %arg0, %arg1, %c0_i32 : i32, i32, i32
  }
  func.func @transform_2(%arg0: i32, %arg1: i32) -> (i32, i32) {
    %c0_i32 = arith.constant 0 : i32
    %c0_i32_0 = arith.constant 0 : i32
    %c0_i32_1 = arith.constant 0 : i32
    return %c0_i32, %c0_i32_0 : i32, i32
  }
  func.func @transform_3(%arg0: i32, %arg1: i32) -> (i32, i32, i32, i32) {
    %c0_i32 = arith.constant 0 : i32
    %c0_i32_0 = arith.constant 0 : i32
    %c0_i32_1 = arith.constant 0 : i32
    return %arg0, %arg1, %c0_i32, %c0_i32_0 : i32, i32, i32, i32
  }
}

module attributes {stable_mosaic.version = 11 : i64} {
  func.func @_fused_z_kernel(%arg0: i32, %arg1: i32, %arg2: memref<1x8x16x128xf32, #tpu.memory_space<vmem>>, %arg3: memref<1x8x16x128xf32, #tpu.memory_space<vmem>>, %arg4: memref<1x8x128xf32, #tpu.memory_space<vmem>>, %arg5: memref<1x8x16xf32, #tpu.memory_space<vmem>>, %arg6: memref<1x1x128xf32, #tpu.memory_space<vmem>>, %arg7: memref<1x1x128xf32, #tpu.memory_space<vmem>>, %arg8: memref<15x128xf32, #tpu.memory_space<vmem>>, %arg9: memref<128x128xbf16, #tpu.memory_space<vmem>>, %arg10: memref<1x1x128xf32, #tpu.memory_space<vmem>>, %arg11: memref<1x8x16x128xf32, #tpu.memory_space<vmem>>, %arg12: memref<1x8x16x128xf32, #tpu.memory_space<vmem>>) attributes {dimension_semantics = [#tpu.dimension_semantics<parallel>, #tpu.dimension_semantics<parallel>], iteration_bounds = array<i64: 2, 2>, scalar_prefetch = 0 : i64, scratch_operands = 0 : i64, tpu.core_type = #tpu.core_type<tc>, window_params = [{transform_indices = @transform_0, window_bounds = array<i64: 1, 8, 16, 128>}, {transform_indices = @transform_1, window_bounds = array<i64: 1, 8, 16, 128>}, {transform_indices = @transform_2, window_bounds = array<i64: 1, 8, 128>}, {transform_indices = @transform_3, window_bounds = array<i64: 1, 8, 16>}, {pipeline_mode = #tpu.pipeline_mode<synchronous>, transform_indices = @transform_4, window_bounds = array<i64: 1, 1, 128>}, {pipeline_mode = #tpu.pipeline_mode<synchronous>, transform_indices = @transform_5, window_bounds = array<i64: 1, 1, 128>}, {pipeline_mode = #tpu.pipeline_mode<synchronous>, transform_indices = @transform_6, window_bounds = array<i64: 15, 128>}, {pipeline_mode = #tpu.pipeline_mode<synchronous>, transform_indices = @transform_7, window_bounds = array<i64: 128, 128>}, {pipeline_mode = #tpu.pipeline_mode<synchronous>, transform_indices = @transform_8, window_bounds = array<i64: 1, 1, 128>}, {transform_indices = @transform_9, window_bounds = array<i64: 1, 8, 16, 128>}, {transform_indices = @transform_10, window_bounds = array<i64: 1, 8, 16, 128>}]} {
    %c0 = arith.constant 0 : index
    %c0_0 = arith.constant 0 : index
    %c0_1 = arith.constant 0 : index
    %c0_2 = arith.constant 0 : index
    %0 = vector.load %arg2[%c0, %c0_0, %c0_1, %c0_2] : memref<1x8x16x128xf32, #tpu.memory_space<vmem>>, vector<1x8x16x128xf32>
    %1 = vector.shape_cast %0 : vector<1x8x16x128xf32> to vector<8x16x128xf32>
    %cst = arith.constant dense<0.000000e+00> : vector<8x16xf32>
    %2 = vector.multi_reduction <add>, %1, %cst [2] : vector<8x16x128xf32> to vector<8x16xf32>
    %3 = vector.shape_cast %2 : vector<8x16xf32> to vector<8x16x1xf32>
    %cst_3 = arith.constant 1.280000e+02 : f32
    %4 = vector.broadcast %cst_3 : f32 to vector<8x16x1xf32>
    %5 = arith.divf %3, %4 : vector<8x16x1xf32>
    %6 = vector.broadcast %5 : vector<8x16x1xf32> to vector<8x16x128xf32>
    %7 = arith.subf %1, %6 : vector<8x16x128xf32>
    %8 = arith.mulf %7, %7 : vector<8x16x128xf32>
    %cst_4 = arith.constant dense<0.000000e+00> : vector<8x16xf32>
    %9 = vector.multi_reduction <add>, %8, %cst_4 [2] : vector<8x16x128xf32> to vector<8x16xf32>
    %10 = vector.shape_cast %9 : vector<8x16xf32> to vector<8x16x1xf32>
    %cst_5 = arith.constant 1.280000e+02 : f32
    %11 = vector.broadcast %cst_5 : f32 to vector<8x16x1xf32>
    %12 = arith.divf %10, %11 : vector<8x16x1xf32>
    %13 = vector.broadcast %5 : vector<8x16x1xf32> to vector<8x16x128xf32>
    %14 = arith.subf %1, %13 : vector<8x16x128xf32>
    %cst_6 = arith.constant 9.99999974E-6 : f32
    %15 = vector.broadcast %cst_6 : f32 to vector<8x16x1xf32>
    %16 = arith.addf %12, %15 : vector<8x16x1xf32>
    %17 = math.rsqrt %16 : vector<8x16x1xf32>
    %18 = vector.broadcast %17 : vector<8x16x1xf32> to vector<8x16x128xf32>
    %19 = arith.mulf %14, %18 : vector<8x16x128xf32>
    %c0_7 = arith.constant 0 : index
    %c0_8 = arith.constant 0 : index
    %c0_9 = arith.constant 0 : index
    %20 = vector.load %arg6[%c0_7, %c0_8, %c0_9] : memref<1x1x128xf32, #tpu.memory_space<vmem>>, vector<1x1x128xf32>
    %21 = vector.broadcast %20 : vector<1x1x128xf32> to vector<8x16x128xf32>
    %22 = arith.mulf %19, %21 : vector<8x16x128xf32>
    %c0_10 = arith.constant 0 : index
    %c0_11 = arith.constant 0 : index
    %c0_12 = arith.constant 0 : index
    %23 = vector.load %arg7[%c0_10, %c0_11, %c0_12] : memref<1x1x128xf32, #tpu.memory_space<vmem>>, vector<1x1x128xf32>
    %24 = vector.broadcast %23 : vector<1x1x128xf32> to vector<8x16x128xf32>
    %25 = arith.addf %22, %24 : vector<8x16x128xf32>
    %c0_13 = arith.constant 0 : index
    %c0_14 = arith.constant 0 : index
    %c0_15 = arith.constant 0 : index
    %26 = vector.load %arg4[%c0_13, %c0_14, %c0_15] : memref<1x8x128xf32, #tpu.memory_space<vmem>>, vector<1x8x128xf32>
    %27 = vector.shape_cast %26 : vector<1x8x128xf32> to vector<8x128xf32>
    %c0_16 = arith.constant 0 : index
    %c0_17 = arith.constant 0 : index
    %c0_18 = arith.constant 0 : index
    %28 = vector.load %arg5[%c0_16, %c0_17, %c0_18] : memref<1x8x16xf32, #tpu.memory_space<vmem>>, vector<1x8x16xf32>
    %29 = vector.shape_cast %28 : vector<1x8x16xf32> to vector<8x16xf32>
    %30 = vector.extract_strided_slice %27 {offsets = [0, 0], sizes = [8, 1], strides = [1, 1]} : vector<8x128xf32> to vector<8x1xf32>
    %31 = vector.extract_strided_slice %29 {offsets = [0, 0], sizes = [1, 16], strides = [1, 1]} : vector<8x16xf32> to vector<1x16xf32>
    %32 = vector.broadcast %30 : vector<8x1xf32> to vector<8x16xf32>
    %33 = vector.broadcast %31 : vector<1x16xf32> to vector<8x16xf32>
    %34 = arith.subf %32, %33 : vector<8x16xf32>
    %35 = vector.extract_strided_slice %27 {offsets = [0, 1], sizes = [8, 1], strides = [1, 1]} : vector<8x128xf32> to vector<8x1xf32>
    %36 = vector.extract_strided_slice %29 {offsets = [1, 0], sizes = [1, 16], strides = [1, 1]} : vector<8x16xf32> to vector<1x16xf32>
    %37 = vector.broadcast %35 : vector<8x1xf32> to vector<8x16xf32>
    %38 = vector.broadcast %36 : vector<1x16xf32> to vector<8x16xf32>
    %39 = arith.subf %37, %38 : vector<8x16xf32>
    %40 = vector.extract_strided_slice %27 {offsets = [0, 2], sizes = [8, 1], strides = [1, 1]} : vector<8x128xf32> to vector<8x1xf32>
    %41 = vector.extract_strided_slice %29 {offsets = [2, 0], sizes = [1, 16], strides = [1, 1]} : vector<8x16xf32> to vector<1x16xf32>
    %42 = vector.broadcast %40 : vector<8x1xf32> to vector<8x16xf32>
    %43 = vector.broadcast %41 : vector<1x16xf32> to vector<8x16xf32>
    %44 = arith.subf %42, %43 : vector<8x16xf32>
    %45 = arith.mulf %34, %34 : vector<8x16xf32>
    %46 = arith.mulf %39, %39 : vector<8x16xf32>
    %47 = arith.addf %45, %46 : vector<8x16xf32>
    %48 = arith.mulf %44, %44 : vector<8x16xf32>
    %49 = arith.addf %47, %48 : vector<8x16xf32>
    %c0_i32 = arith.constant 0 : i32
    %50 = vector.broadcast %c0_i32 : i32 to vector<8x16xi32>
    %cst_19 = arith.constant 11.390625 : f32
    %51 = vector.broadcast %cst_19 : f32 to vector<8x16xf32>
    %52 = arith.cmpf ogt, %49, %51 : vector<8x16xf32>
    %53 = arith.extui %52 : vector<8x16xi1> to vector<8x16xi32>
    %54 = arith.addi %50, %53 : vector<8x16xi32>
    %cst_20 = arith.constant 22.6539383 : f32
    %55 = vector.broadcast %cst_20 : f32 to vector<8x16xf32>
    %56 = arith.cmpf ogt, %49, %55 : vector<8x16xf32>
    %57 = arith.extui %56 : vector<8x16xi1> to vector<8x16xi32>
    %58 = arith.addi %54, %57 : vector<8x16xi32>
    %cst_21 = arith.constant 37.7515717 : f32
    %59 = vector.broadcast %cst_21 : f32 to vector<8x16xf32>
    %60 = arith.cmpf ogt, %49, %59 : vector<8x16xf32>
    %61 = arith.extui %60 : vector<8x16xi1> to vector<8x16xi32>
    %62 = arith.addi %58, %61 : vector<8x16xi32>
    %cst_22 = arith.constant 56.6835251 : f32
    %63 = vector.broadcast %cst_22 : f32 to vector<8x16xf32>
    %64 = arith.cmpf ogt, %49, %63 : vector<8x16xf32>
    %65 = arith.extui %64 : vector<8x16xi1> to vector<8x16xi32>
    %66 = arith.addi %62, %65 : vector<8x16xi32>
    %cst_23 = arith.constant 79.4497985 : f32
    %67 = vector.broadcast %cst_23 : f32 to vector<8x16xf32>
    %68 = arith.cmpf ogt, %49, %67 : vector<8x16xf32>
    %69 = arith.extui %68 : vector<8x16xi1> to vector<8x16xi32>
    %70 = arith.addi %66, %69 : vector<8x16xi32>
    %cst_24 = arith.constant 106.050385 : f32
    %71 = vector.broadcast %cst_24 : f32 to vector<8x16xf32>
    %72 = arith.cmpf ogt, %49, %71 : vector<8x16xf32>
    %73 = arith.extui %72 : vector<8x16xi1> to vector<8x16xi32>
    %74 = arith.addi %70, %73 : vector<8x16xi32>
    %cst_25 = arith.constant 136.485306 : f32
    %75 = vector.broadcast %cst_25 : f32 to vector<8x16xf32>
    %76 = arith.cmpf ogt, %49, %75 : vector<8x16xf32>
    %77 = arith.extui %76 : vector<8x16xi1> to vector<8x16xi32>
    %78 = arith.addi %74, %77 : vector<8x16xi32>
    %cst_26 = arith.constant 170.754532 : f32
    %79 = vector.broadcast %cst_26 : f32 to vector<8x16xf32>
    %80 = arith.cmpf ogt, %49, %79 : vector<8x16xf32>
    %81 = arith.extui %80 : vector<8x16xi1> to vector<8x16xi32>
    %82 = arith.addi %78, %81 : vector<8x16xi32>
    %cst_27 = arith.constant 208.858078 : f32
    %83 = vector.broadcast %cst_27 : f32 to vector<8x16xf32>
    %84 = arith.cmpf ogt, %49, %83 : vector<8x16xf32>
    %85 = arith.extui %84 : vector<8x16xi1> to vector<8x16xi32>
    %86 = arith.addi %82, %85 : vector<8x16xi32>
    %cst_28 = arith.constant 250.795944 : f32
    %87 = vector.broadcast %cst_28 : f32 to vector<8x16xf32>
    %88 = arith.cmpf ogt, %49, %87 : vector<8x16xf32>
    %89 = arith.extui %88 : vector<8x16xi1> to vector<8x16xi32>
    %90 = arith.addi %86, %89 : vector<8x16xi32>
    %cst_29 = arith.constant 296.568146 : f32
    %91 = vector.broadcast %cst_29 : f32 to vector<8x16xf32>
    %92 = arith.cmpf ogt, %49, %91 : vector<8x16xf32>
    %93 = arith.extui %92 : vector<8x16xi1> to vector<8x16xi32>
    %94 = arith.addi %90, %93 : vector<8x16xi32>
    %cst_30 = arith.constant 346.174652 : f32
    %95 = vector.broadcast %cst_30 : f32 to vector<8x16xf32>
    %96 = arith.cmpf ogt, %49, %95 : vector<8x16xf32>
    %97 = arith.extui %96 : vector<8x16xi1> to vector<8x16xi32>
    %98 = arith.addi %94, %97 : vector<8x16xi32>
    %cst_31 = arith.constant 399.615479 : f32
    %99 = vector.broadcast %cst_31 : f32 to vector<8x16xf32>
    %100 = arith.cmpf ogt, %49, %99 : vector<8x16xf32>
    %101 = arith.extui %100 : vector<8x16xi1> to vector<8x16xi32>
    %102 = arith.addi %98, %101 : vector<8x16xi32>
    %cst_32 = arith.constant 456.890625 : f32
    %103 = vector.broadcast %cst_32 : f32 to vector<8x16xf32>
    %104 = arith.cmpf ogt, %49, %103 : vector<8x16xf32>
    %105 = arith.extui %104 : vector<8x16xi1> to vector<8x16xi32>
    %106 = arith.addi %102, %105 : vector<8x16xi32>
    %107 = tpu.iota {dimensions = array<i32: 2>} : vector<8x16x15xi32>
    %108 = vector.shape_cast %106 : vector<8x16xi32> to vector<8x16x1xi32>
    %109 = vector.broadcast %108 : vector<8x16x1xi32> to vector<8x16x15xi32>
    %110 = arith.cmpi eq, %109, %107 : vector<8x16x15xi32>
    %111 = arith.extui %110 : vector<8x16x15xi1> to vector<8x16x15xi32>
    %112 = arith.sitofp %111 : vector<8x16x15xi32> to vector<8x16x15xf32>
    %c0_33 = arith.constant 0 : index
    %c0_34 = arith.constant 0 : index
    %113 = vector.load %arg8[%c0_33, %c0_34] : memref<15x128xf32, #tpu.memory_space<vmem>>, vector<15x128xf32>
    "tpu.trace_start"() <{level = 10 : i32, message = "ijv,vc->ijc"}> : () -> ()
    %cst_35 = arith.constant dense<0.000000e+00> : vector<8x16x128xf32>
    %114 = tpu.matmul %112, %113, %cst_35 {dimension_numbers = #tpu.dot_dimension_numbers<[2], [0], [0, 1], [1], [0, 0, 0, 1, 1, 1], [], []>} : vector<8x16x15xf32>, vector<15x128xf32>, vector<8x16x128xf32> -> vector<8x16x128xf32>
    "tpu.trace_stop"() : () -> ()
    %c0_36 = arith.constant 0 : index
    %c0_37 = arith.constant 0 : index
    %c0_38 = arith.constant 0 : index
    %c0_39 = arith.constant 0 : index
    %115 = vector.load %arg3[%c0_36, %c0_37, %c0_38, %c0_39] : memref<1x8x16x128xf32, #tpu.memory_space<vmem>>, vector<1x8x16x128xf32>
    %116 = vector.shape_cast %115 : vector<1x8x16x128xf32> to vector<8x16x128xf32>
    %117 = arith.addf %116, %25 : vector<8x16x128xf32>
    %118 = arith.addf %117, %114 : vector<8x16x128xf32>
    %c0_40 = arith.constant 0 : index
    %c0_41 = arith.constant 0 : index
    %c0_42 = arith.constant 0 : index
    %c0_43 = arith.constant 0 : index
    %119 = vector.load %arg11[%c0_40, %c0_41, %c0_42, %c0_43] : memref<1x8x16x128xf32, #tpu.memory_space<vmem>>, vector<1x8x16x128xf32>
    %120 = vector.shape_cast %119 : vector<1x8x16x128xf32> to vector<8x16x128xf32>
    %121 = vector.shape_cast %118 : vector<8x16x128xf32> to vector<1x8x16x128xf32>
    tpu.vector_store %arg11[%c0_40, %c0_41, %c0_42, %c0_43], %121 {strides = array<i32>} : memref<1x8x16x128xf32, #tpu.memory_space<vmem>>, vector<1x8x16x128xf32>,
    %122 = arith.truncf %118 : vector<8x16x128xf32> to vector<8x16x128xbf16>
    %c0_44 = arith.constant 0 : index
    %c0_45 = arith.constant 0 : index
    %123 = vector.load %arg9[%c0_44, %c0_45] : memref<128x128xbf16, #tpu.memory_space<vmem>>, vector<128x128xbf16>
    "tpu.trace_start"() <{level = 10 : i32, message = "ijc,cd->ijd"}> : () -> ()
    %cst_46 = arith.constant dense<0.000000e+00> : vector<8x16x128xf32>
    %124 = tpu.matmul %122, %123, %cst_46 {dimension_numbers = #tpu.dot_dimension_numbers<[2], [0], [0, 1], [1], [0, 0, 0, 1, 1, 1], [], []>} : vector<8x16x128xbf16>, vector<128x128xbf16>, vector<8x16x128xf32> -> vector<8x16x128xf32>
    "tpu.trace_stop"() : () -> ()
    %c0_47 = arith.constant 0 : index
    %c0_48 = arith.constant 0 : index
    %c0_49 = arith.constant 0 : index
    %125 = vector.load %arg10[%c0_47, %c0_48, %c0_49] : memref<1x1x128xf32, #tpu.memory_space<vmem>>, vector<1x1x128xf32>
    %126 = vector.broadcast %125 : vector<1x1x128xf32> to vector<8x16x128xf32>
    %127 = arith.addf %124, %126 : vector<8x16x128xf32>
    %c0_50 = arith.constant 0 : index
    %c0_51 = arith.constant 0 : index
    %c0_52 = arith.constant 0 : index
    %c0_53 = arith.constant 0 : index
    %128 = vector.load %arg12[%c0_50, %c0_51, %c0_52, %c0_53] : memref<1x8x16x128xf32, #tpu.memory_space<vmem>>, vector<1x8x16x128xf32>
    %129 = vector.shape_cast %128 : vector<1x8x16x128xf32> to vector<8x16x128xf32>
    %130 = vector.shape_cast %127 : vector<8x16x128xf32> to vector<1x8x16x128xf32>
    tpu.vector_store %arg12[%c0_50, %c0_51, %c0_52, %c0_53], %130 {strides = array<i32>} : memref<1x8x16x128xf32, #tpu.memory_space<vmem>>, vector<1x8x16x128xf32>,
    return
  }
  func.func @transform_0(%arg0: i32, %arg1: i32) -> (i32, i32, i32, i32) {
    %c0_i32 = arith.constant 0 : i32
    %c0_i32_0 = arith.constant 0 : i32
    %c0_i32_1 = arith.constant 0 : i32
    return %arg0, %arg1, %c0_i32, %c0_i32_0 : i32, i32, i32, i32
  }
  func.func @transform_1(%arg0: i32, %arg1: i32) -> (i32, i32, i32, i32) {
    %c0_i32 = arith.constant 0 : i32
    %c0_i32_0 = arith.constant 0 : i32
    %c0_i32_1 = arith.constant 0 : i32
    return %arg0, %arg1, %c0_i32, %c0_i32_0 : i32, i32, i32, i32
  }
  func.func @transform_2(%arg0: i32, %arg1: i32) -> (i32, i32, i32) {
    %c0_i32 = arith.constant 0 : i32
    %c0_i32_0 = arith.constant 0 : i32
    return %arg0, %arg1, %c0_i32 : i32, i32, i32
  }
  func.func @transform_3(%arg0: i32, %arg1: i32) -> (i32, i32, i32) {
    %c0_i32 = arith.constant 0 : i32
    %c0_i32_0 = arith.constant 0 : i32
    %c0_i32_1 = arith.constant 0 : i32
    return %arg0, %c0_i32, %c0_i32_0 : i32, i32, i32
  }
  func.func @transform_4(%arg0: i32, %arg1: i32) -> (i32, i32, i32) {
    %c0_i32 = arith.constant 0 : i32
    %c0_i32_0 = arith.constant 0 : i32
    %c0_i32_1 = arith.constant 0 : i32
    %c0_i32_2 = arith.constant 0 : i32
    return %c0_i32, %c0_i32_0, %c0_i32_1 : i32, i32, i32
  }
  func.func @transform_5(%arg0: i32, %arg1: i32) -> (i32, i32, i32) {
    %c0_i32 = arith.constant 0 : i32
    %c0_i32_0 = arith.constant 0 : i32
    %c0_i32_1 = arith.constant 0 : i32
    %c0_i32_2 = arith.constant 0 : i32
    return %c0_i32, %c0_i32_0, %c0_i32_1 : i32, i32, i32
  }
  func.func @transform_6(%arg0: i32, %arg1: i32) -> (i32, i32) {
    %c0_i32 = arith.constant 0 : i32
    %c0_i32_0 = arith.constant 0 : i32
    %c0_i32_1 = arith.constant 0 : i32
    return %c0_i32, %c0_i32_0 : i32, i32
  }
  func.func @transform_7(%arg0: i32, %arg1: i32) -> (i32, i32) {
    %c0_i32 = arith.constant 0 : i32
    %c0_i32_0 = arith.constant 0 : i32
    %c0_i32_1 = arith.constant 0 : i32
    return %c0_i32, %c0_i32_0 : i32, i32
  }
  func.func @transform_8(%arg0: i32, %arg1: i32) -> (i32, i32, i32) {
    %c0_i32 = arith.constant 0 : i32
    %c0_i32_0 = arith.constant 0 : i32
    %c0_i32_1 = arith.constant 0 : i32
    %c0_i32_2 = arith.constant 0 : i32
    return %c0_i32, %c0_i32_0, %c0_i32_1 : i32, i32, i32
  }
  func.func @transform_9(%arg0: i32, %arg1: i32) -> (i32, i32, i32, i32) {
    %c0_i32 = arith.constant 0 : i32
    %c0_i32_0 = arith.constant 0 : i32
    %c0_i32_1 = arith.constant 0 : i32
    return %arg0, %arg1, %c0_i32, %c0_i32_0 : i32, i32, i32, i32
  }
  func.func @transform_10(%arg0: i32, %arg1: i32) -> (i32, i32, i32, i32) {
    %c0_i32 = arith.constant 0 : i32
    %c0_i32_0 = arith.constant 0 : i32
    %c0_i32_1 = arith.constant 0 : i32
    return %arg0, %arg1, %c0_i32, %c0_i32_0 : i32, i32, i32, i32
  }
}

module attributes {stable_mosaic.version = 11 : i64} {
  func.func @_fused_s_kernel(%arg0: i32, %arg1: memref<16x128xf32, #tpu.memory_space<vmem>>, %arg2: memref<16x128xf32, #tpu.memory_space<vmem>>, %arg3: memref<1x128xf32, #tpu.memory_space<vmem>>, %arg4: memref<1x128xf32, #tpu.memory_space<vmem>>, %arg5: memref<128x128xbf16, #tpu.memory_space<vmem>>, %arg6: memref<1x128xf32, #tpu.memory_space<vmem>>, %arg7: memref<128x128xbf16, #tpu.memory_space<vmem>>, %arg8: memref<1x128xf32, #tpu.memory_space<vmem>>, %arg9: memref<16x128xf32, #tpu.memory_space<vmem>>, %arg10: memref<16x128xf32, #tpu.memory_space<vmem>>, %arg11: memref<16x128xf32, #tpu.memory_space<vmem>>, %arg12: memref<16x128xf32, #tpu.memory_space<vmem>>) attributes {dimension_semantics = [#tpu.dimension_semantics<parallel>], iteration_bounds = array<i64: 2>, scalar_prefetch = 0 : i64, scratch_operands = 0 : i64, tpu.core_type = #tpu.core_type<tc>, window_params = [{transform_indices = @transform_0, window_bounds = array<i64: 16, 128>}, {transform_indices = @transform_1, window_bounds = array<i64: 16, 128>}, {pipeline_mode = #tpu.pipeline_mode<synchronous>, transform_indices = @transform_2, window_bounds = array<i64: 1, 128>}, {pipeline_mode = #tpu.pipeline_mode<synchronous>, transform_indices = @transform_3, window_bounds = array<i64: 1, 128>}, {pipeline_mode = #tpu.pipeline_mode<synchronous>, transform_indices = @transform_4, window_bounds = array<i64: 128, 128>}, {pipeline_mode = #tpu.pipeline_mode<synchronous>, transform_indices = @transform_5, window_bounds = array<i64: 1, 128>}, {pipeline_mode = #tpu.pipeline_mode<synchronous>, transform_indices = @transform_6, window_bounds = array<i64: 128, 128>}, {pipeline_mode = #tpu.pipeline_mode<synchronous>, transform_indices = @transform_7, window_bounds = array<i64: 1, 128>}, {transform_indices = @transform_8, window_bounds = array<i64: 16, 128>}, {transform_indices = @transform_9, window_bounds = array<i64: 16, 128>}, {transform_indices = @transform_10, window_bounds = array<i64: 16, 128>}, {transform_indices = @transform_11, window_bounds = array<i64: 16, 128>}]} {
    %c0 = arith.constant 0 : index
    %c0_0 = arith.constant 0 : index
    %0 = vector.load %arg1[%c0, %c0_0] : memref<16x128xf32, #tpu.memory_space<vmem>>, vector<16x128xf32>
    %cst = arith.constant dense<0.000000e+00> : vector<16xf32>
    %1 = vector.multi_reduction <add>, %0, %cst [1] : vector<16x128xf32> to vector<16xf32>
    %2 = vector.shape_cast %1 : vector<16xf32> to vector<16x1xf32>
    %cst_1 = arith.constant 1.280000e+02 : f32
    %3 = vector.broadcast %cst_1 : f32 to vector<16x1xf32>
    %4 = arith.divf %2, %3 : vector<16x1xf32>
    %5 = vector.broadcast %4 : vector<16x1xf32> to vector<16x128xf32>
    %6 = arith.subf %0, %5 : vector<16x128xf32>
    %7 = arith.mulf %6, %6 : vector<16x128xf32>
    %cst_2 = arith.constant dense<0.000000e+00> : vector<16xf32>
    %8 = vector.multi_reduction <add>, %7, %cst_2 [1] : vector<16x128xf32> to vector<16xf32>
    %9 = vector.shape_cast %8 : vector<16xf32> to vector<16x1xf32>
    %cst_3 = arith.constant 1.280000e+02 : f32
    %10 = vector.broadcast %cst_3 : f32 to vector<16x1xf32>
    %11 = arith.divf %9, %10 : vector<16x1xf32>
    %12 = vector.broadcast %4 : vector<16x1xf32> to vector<16x128xf32>
    %13 = arith.subf %0, %12 : vector<16x128xf32>
    %cst_4 = arith.constant 9.99999974E-6 : f32
    %14 = vector.broadcast %cst_4 : f32 to vector<16x1xf32>
    %15 = arith.addf %11, %14 : vector<16x1xf32>
    %16 = math.rsqrt %15 : vector<16x1xf32>
    %17 = vector.broadcast %16 : vector<16x1xf32> to vector<16x128xf32>
    %18 = arith.mulf %13, %17 : vector<16x128xf32>
    %c0_5 = arith.constant 0 : index
    %c0_6 = arith.constant 0 : index
    %19 = vector.load %arg3[%c0_5, %c0_6] : memref<1x128xf32, #tpu.memory_space<vmem>>, vector<1x128xf32>
    %20 = vector.broadcast %19 : vector<1x128xf32> to vector<16x128xf32>
    %21 = arith.mulf %18, %20 : vector<16x128xf32>
    %c0_7 = arith.constant 0 : index
    %c0_8 = arith.constant 0 : index
    %22 = vector.load %arg4[%c0_7, %c0_8] : memref<1x128xf32, #tpu.memory_space<vmem>>, vector<1x128xf32>
    %23 = vector.broadcast %22 : vector<1x128xf32> to vector<16x128xf32>
    %24 = arith.addf %21, %23 : vector<16x128xf32>
    %c0_9 = arith.constant 0 : index
    %c0_10 = arith.constant 0 : index
    %25 = vector.load %arg2[%c0_9, %c0_10] : memref<16x128xf32, #tpu.memory_space<vmem>>, vector<16x128xf32>
    %26 = arith.addf %25, %24 : vector<16x128xf32>
    %c0_11 = arith.constant 0 : index
    %c0_12 = arith.constant 0 : index
    %27 = vector.load %arg9[%c0_11, %c0_12] : memref<16x128xf32, #tpu.memory_space<vmem>>, vector<16x128xf32>
    tpu.vector_store %arg9[%c0_11, %c0_12], %26 {strides = array<i32>} : memref<16x128xf32, #tpu.memory_space<vmem>>, vector<16x128xf32>,
    %28 = arith.truncf %26 : vector<16x128xf32> to vector<16x128xbf16>
    %c0_13 = arith.constant 0 : index
    %c0_14 = arith.constant 0 : index
    %29 = vector.load %arg5[%c0_13, %c0_14] : memref<128x128xbf16, #tpu.memory_space<vmem>>, vector<128x128xbf16>
    %cst_15 = arith.constant dense<0.000000e+00> : vector<16x128xf32>
    %30 = tpu.matmul %28, %29, %cst_15 {dimension_numbers = #tpu.dot_dimension_numbers<[1], [0], [0], [1], [0, 0, 1, 1], [], []>} : vector<16x128xbf16>, vector<128x128xbf16>, vector<16x128xf32> -> vector<16x128xf32>
    %c0_16 = arith.constant 0 : index
    %c0_17 = arith.constant 0 : index
    %31 = vector.load %arg6[%c0_16, %c0_17] : memref<1x128xf32, #tpu.memory_space<vmem>>, vector<1x128xf32>
    %32 = vector.broadcast %31 : vector<1x128xf32> to vector<16x128xf32>
    %33 = arith.addf %30, %32 : vector<16x128xf32>
    %c0_18 = arith.constant 0 : index
    %c0_19 = arith.constant 0 : index
    %34 = vector.load %arg10[%c0_18, %c0_19] : memref<16x128xf32, #tpu.memory_space<vmem>>, vector<16x128xf32>
    tpu.vector_store %arg10[%c0_18, %c0_19], %33 {strides = array<i32>} : memref<16x128xf32, #tpu.memory_space<vmem>>, vector<16x128xf32>,
    %35 = arith.truncf %33 : vector<16x128xf32> to vector<16x128xbf16>
    %c0_20 = arith.constant 0 : index
    %c0_21 = arith.constant 0 : index
    %36 = vector.load %arg7[%c0_20, %c0_21] : memref<128x128xbf16, #tpu.memory_space<vmem>>, vector<128x128xbf16>
    %cst_22 = arith.constant dense<0.000000e+00> : vector<16x128xf32>
    %37 = tpu.matmul %35, %36, %cst_22 {dimension_numbers = #tpu.dot_dimension_numbers<[1], [0], [0], [1], [0, 0, 1, 1], [], []>} : vector<16x128xbf16>, vector<128x128xbf16>, vector<16x128xf32> -> vector<16x128xf32>
    %c0_23 = arith.constant 0 : index
    %c0_24 = arith.constant 0 : index
    %38 = vector.load %arg8[%c0_23, %c0_24] : memref<1x128xf32, #tpu.memory_space<vmem>>, vector<1x128xf32>
    %39 = vector.broadcast %38 : vector<1x128xf32> to vector<16x128xf32>
    %40 = arith.addf %37, %39 : vector<16x128xf32>
    %c0_25 = arith.constant 0 : index
    %c0_26 = arith.constant 0 : index
    %41 = vector.load %arg11[%c0_25, %c0_26] : memref<16x128xf32, #tpu.memory_space<vmem>>, vector<16x128xf32>
    tpu.vector_store %arg11[%c0_25, %c0_26], %40 {strides = array<i32>} : memref<16x128xf32, #tpu.memory_space<vmem>>, vector<16x128xf32>,
    %42 = vector.extract_strided_slice %40 {offsets = [0, 3], sizes = [16, 1], strides = [1, 1]} : vector<16x128xf32> to vector<16x1xf32>
    %43 = vector.extract_strided_slice %40 {offsets = [0, 0], sizes = [16, 1], strides = [1, 1]} : vector<16x128xf32> to vector<16x1xf32>
    %44 = arith.subf %42, %43 : vector<16x1xf32>
    %45 = vector.extract_strided_slice %40 {offsets = [0, 4], sizes = [16, 1], strides = [1, 1]} : vector<16x128xf32> to vector<16x1xf32>
    %46 = vector.extract_strided_slice %40 {offsets = [0, 1], sizes = [16, 1], strides = [1, 1]} : vector<16x128xf32> to vector<16x1xf32>
    %47 = arith.subf %45, %46 : vector<16x1xf32>
    %48 = vector.extract_strided_slice %40 {offsets = [0, 5], sizes = [16, 1], strides = [1, 1]} : vector<16x128xf32> to vector<16x1xf32>
    %49 = vector.extract_strided_slice %40 {offsets = [0, 2], sizes = [16, 1], strides = [1, 1]} : vector<16x128xf32> to vector<16x1xf32>
    %50 = arith.subf %48, %49 : vector<16x1xf32>
    %51 = vector.extract_strided_slice %40 {offsets = [0, 6], sizes = [16, 1], strides = [1, 1]} : vector<16x128xf32> to vector<16x1xf32>
    %52 = vector.extract_strided_slice %40 {offsets = [0, 3], sizes = [16, 1], strides = [1, 1]} : vector<16x128xf32> to vector<16x1xf32>
    %53 = arith.subf %51, %52 : vector<16x1xf32>
    %54 = vector.extract_strided_slice %40 {offsets = [0, 7], sizes = [16, 1], strides = [1, 1]} : vector<16x128xf32> to vector<16x1xf32>
    %55 = vector.extract_strided_slice %40 {offsets = [0, 4], sizes = [16, 1], strides = [1, 1]} : vector<16x128xf32> to vector<16x1xf32>
    %56 = arith.subf %54, %55 : vector<16x1xf32>
    %57 = vector.extract_strided_slice %40 {offsets = [0, 8], sizes = [16, 1], strides = [1, 1]} : vector<16x128xf32> to vector<16x1xf32>
    %58 = vector.extract_strided_slice %40 {offsets = [0, 5], sizes = [16, 1], strides = [1, 1]} : vector<16x128xf32> to vector<16x1xf32>
    %59 = arith.subf %57, %58 : vector<16x1xf32>
    %60 = arith.mulf %47, %59 : vector<16x1xf32>
    %61 = arith.mulf %50, %56 : vector<16x1xf32>
    %62 = arith.subf %60, %61 : vector<16x1xf32>
    %63 = arith.mulf %50, %53 : vector<16x1xf32>
    %64 = arith.mulf %44, %59 : vector<16x1xf32>
    %65 = arith.subf %63, %64 : vector<16x1xf32>
    %66 = arith.mulf %44, %56 : vector<16x1xf32>
    %67 = arith.mulf %47, %53 : vector<16x1xf32>
    %68 = arith.subf %66, %67 : vector<16x1xf32>
    %cst_27 = arith.constant -0.582734287 : f32
    %69 = vector.broadcast %cst_27 : f32 to vector<16x1xf32>
    %70 = arith.mulf %69, %62 : vector<16x1xf32>
    %cst_28 = arith.constant 0.568028271 : f32
    %71 = vector.broadcast %cst_28 : f32 to vector<16x1xf32>
    %72 = arith.mulf %71, %44 : vector<16x1xf32>
    %73 = arith.addf %70, %72 : vector<16x1xf32>
    %cst_29 = arith.constant 0.540674686 : f32
    %74 = vector.broadcast %cst_29 : f32 to vector<16x1xf32>
    %75 = arith.mulf %74, %53 : vector<16x1xf32>
    %76 = arith.subf %73, %75 : vector<16x1xf32>
    %77 = vector.extract_strided_slice %40 {offsets = [0, 3], sizes = [16, 1], strides = [1, 1]} : vector<16x128xf32> to vector<16x1xf32>
    %78 = arith.addf %76, %77 : vector<16x1xf32>
    %cst_30 = arith.constant -0.582734287 : f32
    %79 = vector.broadcast %cst_30 : f32 to vector<16x1xf32>
    %80 = arith.mulf %79, %65 : vector<16x1xf32>
    %cst_31 = arith.constant 0.568028271 : f32
    %81 = vector.broadcast %cst_31 : f32 to vector<16x1xf32>
    %82 = arith.mulf %81, %47 : vector<16x1xf32>
    %83 = arith.addf %80, %82 : vector<16x1xf32>
    %cst_32 = arith.constant 0.540674686 : f32
    %84 = vector.broadcast %cst_32 : f32 to vector<16x1xf32>
    %85 = arith.mulf %84, %56 : vector<16x1xf32>
    %86 = arith.subf %83, %85 : vector<16x1xf32>
    %87 = vector.extract_strided_slice %40 {offsets = [0, 4], sizes = [16, 1], strides = [1, 1]} : vector<16x128xf32> to vector<16x1xf32>
    %88 = arith.addf %86, %87 : vector<16x1xf32>
    %cst_33 = arith.constant -0.582734287 : f32
    %89 = vector.broadcast %cst_33 : f32 to vector<16x1xf32>
    %90 = arith.mulf %89, %68 : vector<16x1xf32>
    %cst_34 = arith.constant 0.568028271 : f32
    %91 = vector.broadcast %cst_34 : f32 to vector<16x1xf32>
    %92 = arith.mulf %91, %50 : vector<16x1xf32>
    %93 = arith.addf %90, %92 : vector<16x1xf32>
    %cst_35 = arith.constant 0.540674686 : f32
    %94 = vector.broadcast %cst_35 : f32 to vector<16x1xf32>
    %95 = arith.mulf %94, %59 : vector<16x1xf32>
    %96 = arith.subf %93, %95 : vector<16x1xf32>
    %97 = vector.extract_strided_slice %40 {offsets = [0, 5], sizes = [16, 1], strides = [1, 1]} : vector<16x128xf32> to vector<16x1xf32>
    %98 = arith.addf %96, %97 : vector<16x1xf32>
    %99 = tpu.iota {dimensions = array<i32: 1>} : vector<16x128xi32>
    %c0_i32 = arith.constant 0 : i32
    %100 = vector.broadcast %c0_i32 : i32 to vector<16x128xi32>
    %101 = arith.cmpi eq, %99, %100 : vector<16x128xi32>
    %cst_36 = arith.constant 0.000000e+00 : f32
    %102 = vector.shape_cast %78 : vector<16x1xf32> to vector<16x1xf32>
    %103 = vector.broadcast %102 : vector<16x1xf32> to vector<16x128xf32>
    %104 = vector.broadcast %cst_36 : f32 to vector<16x128xf32>
    %105 = arith.select %101, %103, %104 : vector<16x128xi1>, vector<16x128xf32>
    %c1_i32 = arith.constant 1 : i32
    %106 = vector.broadcast %c1_i32 : i32 to vector<16x128xi32>
    %107 = arith.cmpi eq, %99, %106 : vector<16x128xi32>
    %cst_37 = arith.constant 0.000000e+00 : f32
    %108 = vector.shape_cast %88 : vector<16x1xf32> to vector<16x1xf32>
    %109 = vector.broadcast %108 : vector<16x1xf32> to vector<16x128xf32>
    %110 = vector.broadcast %cst_37 : f32 to vector<16x128xf32>
    %111 = arith.select %107, %109, %110 : vector<16x128xi1>, vector<16x128xf32>
    %112 = arith.addf %105, %111 : vector<16x128xf32>
    %c2_i32 = arith.constant 2 : i32
    %113 = vector.broadcast %c2_i32 : i32 to vector<16x128xi32>
    %114 = arith.cmpi eq, %99, %113 : vector<16x128xi32>
    %cst_38 = arith.constant 0.000000e+00 : f32
    %115 = vector.shape_cast %98 : vector<16x1xf32> to vector<16x1xf32>
    %116 = vector.broadcast %115 : vector<16x1xf32> to vector<16x128xf32>
    %117 = vector.broadcast %cst_38 : f32 to vector<16x128xf32>
    %118 = arith.select %114, %116, %117 : vector<16x128xi1>, vector<16x128xf32>
    %119 = arith.addf %112, %118 : vector<16x128xf32>
    %c0_39 = arith.constant 0 : index
    %c0_40 = arith.constant 0 : index
    %120 = vector.load %arg12[%c0_39, %c0_40] : memref<16x128xf32, #tpu.memory_space<vmem>>, vector<16x128xf32>
    tpu.vector_store %arg12[%c0_39, %c0_40], %119 {strides = array<i32>} : memref<16x128xf32, #tpu.memory_space<vmem>>, vector<16x128xf32>,
    return
  }
  func.func @transform_0(%arg0: i32) -> (i32, i32) {
    %c0_i32 = arith.constant 0 : i32
    %c0_i32_0 = arith.constant 0 : i32
    return %arg0, %c0_i32 : i32, i32
  }
  func.func @transform_1(%arg0: i32) -> (i32, i32) {
    %c0_i32 = arith.constant 0 : i32
    %c0_i32_0 = arith.constant 0 : i32
    return %arg0, %c0_i32 : i32, i32
  }
  func.func @transform_2(%arg0: i32) -> (i32, i32) {
    %c0_i32 = arith.constant 0 : i32
    %c0_i32_0 = arith.constant 0 : i32
    %c0_i32_1 = arith.constant 0 : i32
    return %c0_i32, %c0_i32_0 : i32, i32
  }
  func.func @transform_3(%arg0: i32) -> (i32, i32) {
    %c0_i32 = arith.constant 0 : i32
    %c0_i32_0 = arith.constant 0 : i32
    %c0_i32_1 = arith.constant 0 : i32
    return %c0_i32, %c0_i32_0 : i32, i32
  }
  func.func @transform_4(%arg0: i32) -> (i32, i32) {
    %c0_i32 = arith.constant 0 : i32
    %c0_i32_0 = arith.constant 0 : i32
    %c0_i32_1 = arith.constant 0 : i32
    return %c0_i32, %c0_i32_0 : i32, i32
  }
  func.func @transform_5(%arg0: i32) -> (i32, i32) {
    %c0_i32 = arith.constant 0 : i32
    %c0_i32_0 = arith.constant 0 : i32
    %c0_i32_1 = arith.constant 0 : i32
    return %c0_i32, %c0_i32_0 : i32, i32
  }
  func.func @transform_6(%arg0: i32) -> (i32, i32) {
    %c0_i32 = arith.constant 0 : i32
    %c0_i32_0 = arith.constant 0 : i32
    %c0_i32_1 = arith.constant 0 : i32
    return %c0_i32, %c0_i32_0 : i32, i32
  }
  func.func @transform_7(%arg0: i32) -> (i32, i32) {
    %c0_i32 = arith.constant 0 : i32
    %c0_i32_0 = arith.constant 0 : i32
    %c0_i32_1 = arith.constant 0 : i32
    return %c0_i32, %c0_i32_0 : i32, i32
  }
  func.func @transform_8(%arg0: i32) -> (i32, i32) {
    %c0_i32 = arith.constant 0 : i32
    %c0_i32_0 = arith.constant 0 : i32
    return %arg0, %c0_i32 : i32, i32
  }
  func.func @transform_9(%arg0: i32) -> (i32, i32) {
    %c0_i32 = arith.constant 0 : i32
    %c0_i32_0 = arith.constant 0 : i32
    return %arg0, %c0_i32 : i32, i32
  }
  func.func @transform_10(%arg0: i32) -> (i32, i32) {
    %c0_i32 = arith.constant 0 : i32
    %c0_i32_0 = arith.constant 0 : i32
    return %arg0, %c0_i32 : i32, i32
  }
  func.func @transform_11(%arg0: i32) -> (i32, i32) {
    %c0_i32 = arith.constant 0 : i32
    %c0_i32_0 = arith.constant 0 : i32
    return %arg0, %c0_i32 : i32, i32
  }
}

module attributes {stable_mosaic.version = 11 : i64} {
  func.func @_fused_s_kernel(%arg0: i32, %arg1: memref<16x128xf32, #tpu.memory_space<vmem>>, %arg2: memref<16x128xf32, #tpu.memory_space<vmem>>, %arg3: memref<1x128xf32, #tpu.memory_space<vmem>>, %arg4: memref<1x128xf32, #tpu.memory_space<vmem>>, %arg5: memref<128x128xbf16, #tpu.memory_space<vmem>>, %arg6: memref<1x128xf32, #tpu.memory_space<vmem>>, %arg7: memref<128x128xbf16, #tpu.memory_space<vmem>>, %arg8: memref<1x128xf32, #tpu.memory_space<vmem>>, %arg9: memref<16x128xf32, #tpu.memory_space<vmem>>, %arg10: memref<16x128xf32, #tpu.memory_space<vmem>>, %arg11: memref<16x128xf32, #tpu.memory_space<vmem>>, %arg12: memref<16x128xf32, #tpu.memory_space<vmem>>) attributes {dimension_semantics = [#tpu.dimension_semantics<parallel>], iteration_bounds = array<i64: 2>, scalar_prefetch = 0 : i64, scratch_operands = 0 : i64, tpu.core_type = #tpu.core_type<tc>, window_params = [{transform_indices = @transform_0, window_bounds = array<i64: 16, 128>}, {transform_indices = @transform_1, window_bounds = array<i64: 16, 128>}, {pipeline_mode = #tpu.pipeline_mode<synchronous>, transform_indices = @transform_2, window_bounds = array<i64: 1, 128>}, {pipeline_mode = #tpu.pipeline_mode<synchronous>, transform_indices = @transform_3, window_bounds = array<i64: 1, 128>}, {pipeline_mode = #tpu.pipeline_mode<synchronous>, transform_indices = @transform_4, window_bounds = array<i64: 128, 128>}, {pipeline_mode = #tpu.pipeline_mode<synchronous>, transform_indices = @transform_5, window_bounds = array<i64: 1, 128>}, {pipeline_mode = #tpu.pipeline_mode<synchronous>, transform_indices = @transform_6, window_bounds = array<i64: 128, 128>}, {pipeline_mode = #tpu.pipeline_mode<synchronous>, transform_indices = @transform_7, window_bounds = array<i64: 1, 128>}, {transform_indices = @transform_8, window_bounds = array<i64: 16, 128>}, {transform_indices = @transform_9, window_bounds = array<i64: 16, 128>}, {transform_indices = @transform_10, window_bounds = array<i64: 16, 128>}, {transform_indices = @transform_11, window_bounds = array<i64: 16, 128>}]} {
    %c0 = arith.constant 0 : index
    %c0_0 = arith.constant 0 : index
    %0 = vector.load %arg1[%c0, %c0_0] : memref<16x128xf32, #tpu.memory_space<vmem>>, vector<16x128xf32>
    %cst = arith.constant dense<0.000000e+00> : vector<16xf32>
    %1 = vector.multi_reduction <add>, %0, %cst [1] : vector<16x128xf32> to vector<16xf32>
    %2 = vector.shape_cast %1 : vector<16xf32> to vector<16x1xf32>
    %cst_1 = arith.constant 1.280000e+02 : f32
    %3 = vector.broadcast %cst_1 : f32 to vector<16x1xf32>
    %4 = arith.divf %2, %3 : vector<16x1xf32>
    %5 = vector.broadcast %4 : vector<16x1xf32> to vector<16x128xf32>
    %6 = arith.subf %0, %5 : vector<16x128xf32>
    %7 = arith.mulf %6, %6 : vector<16x128xf32>
    %cst_2 = arith.constant dense<0.000000e+00> : vector<16xf32>
    %8 = vector.multi_reduction <add>, %7, %cst_2 [1] : vector<16x128xf32> to vector<16xf32>
    %9 = vector.shape_cast %8 : vector<16xf32> to vector<16x1xf32>
    %cst_3 = arith.constant 1.280000e+02 : f32
    %10 = vector.broadcast %cst_3 : f32 to vector<16x1xf32>
    %11 = arith.divf %9, %10 : vector<16x1xf32>
    %12 = vector.broadcast %4 : vector<16x1xf32> to vector<16x128xf32>
    %13 = arith.subf %0, %12 : vector<16x128xf32>
    %cst_4 = arith.constant 9.99999974E-6 : f32
    %14 = vector.broadcast %cst_4 : f32 to vector<16x1xf32>
    %15 = arith.addf %11, %14 : vector<16x1xf32>
    %16 = math.rsqrt %15 : vector<16x1xf32>
    %17 = vector.broadcast %16 : vector<16x1xf32> to vector<16x128xf32>
    %18 = arith.mulf %13, %17 : vector<16x128xf32>
    %c0_5 = arith.constant 0 : index
    %c0_6 = arith.constant 0 : index
    %19 = vector.load %arg3[%c0_5, %c0_6] : memref<1x128xf32, #tpu.memory_space<vmem>>, vector<1x128xf32>
    %20 = vector.broadcast %19 : vector<1x128xf32> to vector<16x128xf32>
    %21 = arith.mulf %18, %20 : vector<16x128xf32>
    %c0_7 = arith.constant 0 : index
    %c0_8 = arith.constant 0 : index
    %22 = vector.load %arg4[%c0_7, %c0_8] : memref<1x128xf32, #tpu.memory_space<vmem>>, vector<1x128xf32>
    %23 = vector.broadcast %22 : vector<1x128xf32> to vector<16x128xf32>
    %24 = arith.addf %21, %23 : vector<16x128xf32>
    %c0_9 = arith.constant 0 : index
    %c0_10 = arith.constant 0 : index
    %25 = vector.load %arg2[%c0_9, %c0_10] : memref<16x128xf32, #tpu.memory_space<vmem>>, vector<16x128xf32>
    %26 = arith.addf %25, %24 : vector<16x128xf32>
    %c0_11 = arith.constant 0 : index
    %c0_12 = arith.constant 0 : index
    %27 = vector.load %arg9[%c0_11, %c0_12] : memref<16x128xf32, #tpu.memory_space<vmem>>, vector<16x128xf32>
    tpu.vector_store %arg9[%c0_11, %c0_12], %26 {strides = array<i32>} : memref<16x128xf32, #tpu.memory_space<vmem>>, vector<16x128xf32>,
    %28 = arith.truncf %26 : vector<16x128xf32> to vector<16x128xbf16>
    %c0_13 = arith.constant 0 : index
    %c0_14 = arith.constant 0 : index
    %29 = vector.load %arg5[%c0_13, %c0_14] : memref<128x128xbf16, #tpu.memory_space<vmem>>, vector<128x128xbf16>
    %cst_15 = arith.constant dense<0.000000e+00> : vector<16x128xf32>
    %30 = tpu.matmul %28, %29, %cst_15 {dimension_numbers = #tpu.dot_dimension_numbers<[1], [0], [0], [1], [0, 0, 1, 1], [], []>} : vector<16x128xbf16>, vector<128x128xbf16>, vector<16x128xf32> -> vector<16x128xf32>
    %c0_16 = arith.constant 0 : index
    %c0_17 = arith.constant 0 : index
    %31 = vector.load %arg6[%c0_16, %c0_17] : memref<1x128xf32, #tpu.memory_space<vmem>>, vector<1x128xf32>
    %32 = vector.broadcast %31 : vector<1x128xf32> to vector<16x128xf32>
    %33 = arith.addf %30, %32 : vector<16x128xf32>
    %c0_18 = arith.constant 0 : index
    %c0_19 = arith.constant 0 : index
    %34 = vector.load %arg10[%c0_18, %c0_19] : memref<16x128xf32, #tpu.memory_space<vmem>>, vector<16x128xf32>
    tpu.vector_store %arg10[%c0_18, %c0_19], %33 {strides = array<i32>} : memref<16x128xf32, #tpu.memory_space<vmem>>, vector<16x128xf32>,
    %35 = arith.truncf %33 : vector<16x128xf32> to vector<16x128xbf16>
    %c0_20 = arith.constant 0 : index
    %c0_21 = arith.constant 0 : index
    %36 = vector.load %arg7[%c0_20, %c0_21] : memref<128x128xbf16, #tpu.memory_space<vmem>>, vector<128x128xbf16>
    %cst_22 = arith.constant dense<0.000000e+00> : vector<16x128xf32>
    %37 = tpu.matmul %35, %36, %cst_22 {dimension_numbers = #tpu.dot_dimension_numbers<[1], [0], [0], [1], [0, 0, 1, 1], [], []>} : vector<16x128xbf16>, vector<128x128xbf16>, vector<16x128xf32> -> vector<16x128xf32>
    %c0_23 = arith.constant 0 : index
    %c0_24 = arith.constant 0 : index
    %38 = vector.load %arg8[%c0_23, %c0_24] : memref<1x128xf32, #tpu.memory_space<vmem>>, vector<1x128xf32>
    %39 = vector.broadcast %38 : vector<1x128xf32> to vector<16x128xf32>
    %40 = arith.addf %37, %39 : vector<16x128xf32>
    %c0_25 = arith.constant 0 : index
    %c0_26 = arith.constant 0 : index
    %41 = vector.load %arg11[%c0_25, %c0_26] : memref<16x128xf32, #tpu.memory_space<vmem>>, vector<16x128xf32>
    tpu.vector_store %arg11[%c0_25, %c0_26], %40 {strides = array<i32>} : memref<16x128xf32, #tpu.memory_space<vmem>>, vector<16x128xf32>,
    %42 = vector.extract_strided_slice %40 {offsets = [0, 3], sizes = [16, 1], strides = [1, 1]} : vector<16x128xf32> to vector<16x1xf32>
    %43 = vector.extract_strided_slice %40 {offsets = [0, 0], sizes = [16, 1], strides = [1, 1]} : vector<16x128xf32> to vector<16x1xf32>
    %44 = arith.subf %42, %43 : vector<16x1xf32>
    %45 = vector.extract_strided_slice %40 {offsets = [0, 4], sizes = [16, 1], strides = [1, 1]} : vector<16x128xf32> to vector<16x1xf32>
    %46 = vector.extract_strided_slice %40 {offsets = [0, 1], sizes = [16, 1], strides = [1, 1]} : vector<16x128xf32> to vector<16x1xf32>
    %47 = arith.subf %45, %46 : vector<16x1xf32>
    %48 = vector.extract_strided_slice %40 {offsets = [0, 5], sizes = [16, 1], strides = [1, 1]} : vector<16x128xf32> to vector<16x1xf32>
    %49 = vector.extract_strided_slice %40 {offsets = [0, 2], sizes = [16, 1], strides = [1, 1]} : vector<16x128xf32> to vector<16x1xf32>
    %50 = arith.subf %48, %49 : vector<16x1xf32>
    %51 = vector.extract_strided_slice %40 {offsets = [0, 6], sizes = [16, 1], strides = [1, 1]} : vector<16x128xf32> to vector<16x1xf32>
    %52 = vector.extract_strided_slice %40 {offsets = [0, 3], sizes = [16, 1], strides = [1, 1]} : vector<16x128xf32> to vector<16x1xf32>
    %53 = arith.subf %51, %52 : vector<16x1xf32>
    %54 = vector.extract_strided_slice %40 {offsets = [0, 7], sizes = [16, 1], strides = [1, 1]} : vector<16x128xf32> to vector<16x1xf32>
    %55 = vector.extract_strided_slice %40 {offsets = [0, 4], sizes = [16, 1], strides = [1, 1]} : vector<16x128xf32> to vector<16x1xf32>
    %56 = arith.subf %54, %55 : vector<16x1xf32>
    %57 = vector.extract_strided_slice %40 {offsets = [0, 8], sizes = [16, 1], strides = [1, 1]} : vector<16x128xf32> to vector<16x1xf32>
    %58 = vector.extract_strided_slice %40 {offsets = [0, 5], sizes = [16, 1], strides = [1, 1]} : vector<16x128xf32> to vector<16x1xf32>
    %59 = arith.subf %57, %58 : vector<16x1xf32>
    %60 = arith.mulf %47, %59 : vector<16x1xf32>
    %61 = arith.mulf %50, %56 : vector<16x1xf32>
    %62 = arith.subf %60, %61 : vector<16x1xf32>
    %63 = arith.mulf %50, %53 : vector<16x1xf32>
    %64 = arith.mulf %44, %59 : vector<16x1xf32>
    %65 = arith.subf %63, %64 : vector<16x1xf32>
    %66 = arith.mulf %44, %56 : vector<16x1xf32>
    %67 = arith.mulf %47, %53 : vector<16x1xf32>
    %68 = arith.subf %66, %67 : vector<16x1xf32>
    %cst_27 = arith.constant -0.582734287 : f32
    %69 = vector.broadcast %cst_27 : f32 to vector<16x1xf32>
    %70 = arith.mulf %69, %62 : vector<16x1xf32>
    %cst_28 = arith.constant 0.568028271 : f32
    %71 = vector.broadcast %cst_28 : f32 to vector<16x1xf32>
    %72 = arith.mulf %71, %44 : vector<16x1xf32>
    %73 = arith.addf %70, %72 : vector<16x1xf32>
    %cst_29 = arith.constant 0.540674686 : f32
    %74 = vector.broadcast %cst_29 : f32 to vector<16x1xf32>
    %75 = arith.mulf %74, %53 : vector<16x1xf32>
    %76 = arith.subf %73, %75 : vector<16x1xf32>
    %77 = vector.extract_strided_slice %40 {offsets = [0, 3], sizes = [16, 1], strides = [1, 1]} : vector<16x128xf32> to vector<16x1xf32>
    %78 = arith.addf %76, %77 : vector<16x1xf32>
    %cst_30 = arith.constant -0.582734287 : f32
    %79 = vector.broadcast %cst_30 : f32 to vector<16x1xf32>
    %80 = arith.mulf %79, %65 : vector<16x1xf32>
    %cst_31 = arith.constant 0.568028271 : f32
    %81 = vector.broadcast %cst_31 : f32 to vector<16x1xf32>
    %82 = arith.mulf %81, %47 : vector<16x1xf32>
    %83 = arith.addf %80, %82 : vector<16x1xf32>
    %cst_32 = arith.constant 0.540674686 : f32
    %84 = vector.broadcast %cst_32 : f32 to vector<16x1xf32>
    %85 = arith.mulf %84, %56 : vector<16x1xf32>
    %86 = arith.subf %83, %85 : vector<16x1xf32>
    %87 = vector.extract_strided_slice %40 {offsets = [0, 4], sizes = [16, 1], strides = [1, 1]} : vector<16x128xf32> to vector<16x1xf32>
    %88 = arith.addf %86, %87 : vector<16x1xf32>
    %cst_33 = arith.constant -0.582734287 : f32
    %89 = vector.broadcast %cst_33 : f32 to vector<16x1xf32>
    %90 = arith.mulf %89, %68 : vector<16x1xf32>
    %cst_34 = arith.constant 0.568028271 : f32
    %91 = vector.broadcast %cst_34 : f32 to vector<16x1xf32>
    %92 = arith.mulf %91, %50 : vector<16x1xf32>
    %93 = arith.addf %90, %92 : vector<16x1xf32>
    %cst_35 = arith.constant 0.540674686 : f32
    %94 = vector.broadcast %cst_35 : f32 to vector<16x1xf32>
    %95 = arith.mulf %94, %59 : vector<16x1xf32>
    %96 = arith.subf %93, %95 : vector<16x1xf32>
    %97 = vector.extract_strided_slice %40 {offsets = [0, 5], sizes = [16, 1], strides = [1, 1]} : vector<16x128xf32> to vector<16x1xf32>
    %98 = arith.addf %96, %97 : vector<16x1xf32>
    %99 = tpu.iota {dimensions = array<i32: 1>} : vector<16x128xi32>
    %c0_i32 = arith.constant 0 : i32
    %100 = vector.broadcast %c0_i32 : i32 to vector<16x128xi32>
    %101 = arith.cmpi eq, %99, %100 : vector<16x128xi32>
    %cst_36 = arith.constant 0.000000e+00 : f32
    %102 = vector.shape_cast %78 : vector<16x1xf32> to vector<16x1xf32>
    %103 = vector.broadcast %102 : vector<16x1xf32> to vector<16x128xf32>
    %104 = vector.broadcast %cst_36 : f32 to vector<16x128xf32>
    %105 = arith.select %101, %103, %104 : vector<16x128xi1>, vector<16x128xf32>
    %c1_i32 = arith.constant 1 : i32
    %106 = vector.broadcast %c1_i32 : i32 to vector<16x128xi32>
    %107 = arith.cmpi eq, %99, %106 : vector<16x128xi32>
    %cst_37 = arith.constant 0.000000e+00 : f32
    %108 = vector.shape_cast %88 : vector<16x1xf32> to vector<16x1xf32>
    %109 = vector.broadcast %108 : vector<16x1xf32> to vector<16x128xf32>
    %110 = vector.broadcast %cst_37 : f32 to vector<16x128xf32>
    %111 = arith.select %107, %109, %110 : vector<16x128xi1>, vector<16x128xf32>
    %112 = arith.addf %105, %111 : vector<16x128xf32>
    %c2_i32 = arith.constant 2 : i32
    %113 = vector.broadcast %c2_i32 : i32 to vector<16x128xi32>
    %114 = arith.cmpi eq, %99, %113 : vector<16x128xi32>
    %cst_38 = arith.constant 0.000000e+00 : f32
    %115 = vector.shape_cast %98 : vector<16x1xf32> to vector<16x1xf32>
    %116 = vector.broadcast %115 : vector<16x1xf32> to vector<16x128xf32>
    %117 = vector.broadcast %cst_38 : f32 to vector<16x128xf32>
    %118 = arith.select %114, %116, %117 : vector<16x128xi1>, vector<16x128xf32>
    %119 = arith.addf %112, %118 : vector<16x128xf32>
    %c0_39 = arith.constant 0 : index
    %c0_40 = arith.constant 0 : index
    %120 = vector.load %arg12[%c0_39, %c0_40] : memref<16x128xf32, #tpu.memory_space<vmem>>, vector<16x128xf32>
    tpu.vector_store %arg12[%c0_39, %c0_40], %119 {strides = array<i32>} : memref<16x128xf32, #tpu.memory_space<vmem>>, vector<16x128xf32>,
    return
  }
  func.func @transform_0(%arg0: i32) -> (i32, i32) {
    %c0_i32 = arith.constant 0 : i32
    %c0_i32_0 = arith.constant 0 : i32
    return %arg0, %c0_i32 : i32, i32
  }
  func.func @transform_1(%arg0: i32) -> (i32, i32) {
    %c0_i32 = arith.constant 0 : i32
    %c0_i32_0 = arith.constant 0 : i32
    return %arg0, %c0_i32 : i32, i32
  }
  func.func @transform_2(%arg0: i32) -> (i32, i32) {
    %c0_i32 = arith.constant 0 : i32
    %c0_i32_0 = arith.constant 0 : i32
    %c0_i32_1 = arith.constant 0 : i32
    return %c0_i32, %c0_i32_0 : i32, i32
  }
  func.func @transform_3(%arg0: i32) -> (i32, i32) {
    %c0_i32 = arith.constant 0 : i32
    %c0_i32_0 = arith.constant 0 : i32
    %c0_i32_1 = arith.constant 0 : i32
    return %c0_i32, %c0_i32_0 : i32, i32
  }
  func.func @transform_4(%arg0: i32) -> (i32, i32) {
    %c0_i32 = arith.constant 0 : i32
    %c0_i32_0 = arith.constant 0 : i32
    %c0_i32_1 = arith.constant 0 : i32
    return %c0_i32, %c0_i32_0 : i32, i32
  }
  func.func @transform_5(%arg0: i32) -> (i32, i32) {
    %c0_i32 = arith.constant 0 : i32
    %c0_i32_0 = arith.constant 0 : i32
    %c0_i32_1 = arith.constant 0 : i32
    return %c0_i32, %c0_i32_0 : i32, i32
  }
  func.func @transform_6(%arg0: i32) -> (i32, i32) {
    %c0_i32 = arith.constant 0 : i32
    %c0_i32_0 = arith.constant 0 : i32
    %c0_i32_1 = arith.constant 0 : i32
    return %c0_i32, %c0_i32_0 : i32, i32
  }
  func.func @transform_7(%arg0: i32) -> (i32, i32) {
    %c0_i32 = arith.constant 0 : i32
    %c0_i32_0 = arith.constant 0 : i32
    %c0_i32_1 = arith.constant 0 : i32
    return %c0_i32, %c0_i32_0 : i32, i32
  }
  func.func @transform_8(%arg0: i32) -> (i32, i32) {
    %c0_i32 = arith.constant 0 : i32
    %c0_i32_0 = arith.constant 0 : i32
    return %arg0, %c0_i32 : i32, i32
  }
  func.func @transform_9(%arg0: i32) -> (i32, i32) {
    %c0_i32 = arith.constant 0 : i32
    %c0_i32_0 = arith.constant 0 : i32
    return %arg0, %c0_i32 : i32, i32
  }
  func.func @transform_10(%arg0: i32) -> (i32, i32) {
    %c0_i32 = arith.constant 0 : i32
    %c0_i32_0 = arith.constant 0 : i32
    return %arg0, %c0_i32 : i32, i32
  }
  func.func @transform_11(%arg0: i32) -> (i32, i32) {
    %c0_i32 = arith.constant 0 : i32
    %c0_i32_0 = arith.constant 0 : i32
    return %arg0, %c0_i32 : i32, i32
  }
}

module attributes {stable_mosaic.version = 11 : i64} {
  func.func @_distogram_kernel(%arg0: i32, %arg1: i32, %arg2: memref<1x8x128xf32, #tpu.memory_space<vmem>>, %arg3: memref<1x8x16xf32, #tpu.memory_space<vmem>>, %arg4: memref<1x8x16xi32, #tpu.memory_space<vmem>>) attributes {dimension_semantics = [#tpu.dimension_semantics<parallel>, #tpu.dimension_semantics<parallel>], iteration_bounds = array<i64: 2, 2>, scalar_prefetch = 0 : i64, scratch_operands = 0 : i64, tpu.core_type = #tpu.core_type<tc>, window_params = [{transform_indices = @transform_0, window_bounds = array<i64: 1, 8, 128>}, {transform_indices = @transform_1, window_bounds = array<i64: 1, 8, 16>}, {transform_indices = @transform_2, window_bounds = array<i64: 1, 8, 16>}]} {
    %c0 = arith.constant 0 : index
    %c0_0 = arith.constant 0 : index
    %c0_1 = arith.constant 0 : index
    %0 = vector.load %arg2[%c0, %c0_0, %c0_1] : memref<1x8x128xf32, #tpu.memory_space<vmem>>, vector<1x8x128xf32>
    %1 = vector.shape_cast %0 : vector<1x8x128xf32> to vector<8x128xf32>
    %c0_2 = arith.constant 0 : index
    %c0_3 = arith.constant 0 : index
    %c0_4 = arith.constant 0 : index
    %2 = vector.load %arg3[%c0_2, %c0_3, %c0_4] : memref<1x8x16xf32, #tpu.memory_space<vmem>>, vector<1x8x16xf32>
    %3 = vector.shape_cast %2 : vector<1x8x16xf32> to vector<8x16xf32>
    %4 = vector.extract_strided_slice %1 {offsets = [0, 0], sizes = [8, 1], strides = [1, 1]} : vector<8x128xf32> to vector<8x1xf32>
    %5 = vector.extract_strided_slice %3 {offsets = [0, 0], sizes = [1, 16], strides = [1, 1]} : vector<8x16xf32> to vector<1x16xf32>
    %6 = vector.broadcast %4 : vector<8x1xf32> to vector<8x16xf32>
    %7 = vector.broadcast %5 : vector<1x16xf32> to vector<8x16xf32>
    %8 = arith.subf %6, %7 : vector<8x16xf32>
    %9 = vector.extract_strided_slice %1 {offsets = [0, 1], sizes = [8, 1], strides = [1, 1]} : vector<8x128xf32> to vector<8x1xf32>
    %10 = vector.extract_strided_slice %3 {offsets = [1, 0], sizes = [1, 16], strides = [1, 1]} : vector<8x16xf32> to vector<1x16xf32>
    %11 = vector.broadcast %9 : vector<8x1xf32> to vector<8x16xf32>
    %12 = vector.broadcast %10 : vector<1x16xf32> to vector<8x16xf32>
    %13 = arith.subf %11, %12 : vector<8x16xf32>
    %14 = vector.extract_strided_slice %1 {offsets = [0, 2], sizes = [8, 1], strides = [1, 1]} : vector<8x128xf32> to vector<8x1xf32>
    %15 = vector.extract_strided_slice %3 {offsets = [2, 0], sizes = [1, 16], strides = [1, 1]} : vector<8x16xf32> to vector<1x16xf32>
    %16 = vector.broadcast %14 : vector<8x1xf32> to vector<8x16xf32>
    %17 = vector.broadcast %15 : vector<1x16xf32> to vector<8x16xf32>
    %18 = arith.subf %16, %17 : vector<8x16xf32>
    %19 = arith.mulf %8, %8 : vector<8x16xf32>
    %20 = arith.mulf %13, %13 : vector<8x16xf32>
    %21 = arith.addf %19, %20 : vector<8x16xf32>
    %22 = arith.mulf %18, %18 : vector<8x16xf32>
    %23 = arith.addf %21, %22 : vector<8x16xf32>
    %c0_i32 = arith.constant 0 : i32
    %24 = vector.broadcast %c0_i32 : i32 to vector<8x16xi32>
    %cst = arith.constant 11.390625 : f32
    %25 = vector.broadcast %cst : f32 to vector<8x16xf32>
    %26 = arith.cmpf ogt, %23, %25 : vector<8x16xf32>
    %27 = arith.extui %26 : vector<8x16xi1> to vector<8x16xi32>
    %28 = arith.addi %24, %27 : vector<8x16xi32>
    %cst_5 = arith.constant 22.6539383 : f32
    %29 = vector.broadcast %cst_5 : f32 to vector<8x16xf32>
    %30 = arith.cmpf ogt, %23, %29 : vector<8x16xf32>
    %31 = arith.extui %30 : vector<8x16xi1> to vector<8x16xi32>
    %32 = arith.addi %28, %31 : vector<8x16xi32>
    %cst_6 = arith.constant 37.7515717 : f32
    %33 = vector.broadcast %cst_6 : f32 to vector<8x16xf32>
    %34 = arith.cmpf ogt, %23, %33 : vector<8x16xf32>
    %35 = arith.extui %34 : vector<8x16xi1> to vector<8x16xi32>
    %36 = arith.addi %32, %35 : vector<8x16xi32>
    %cst_7 = arith.constant 56.6835251 : f32
    %37 = vector.broadcast %cst_7 : f32 to vector<8x16xf32>
    %38 = arith.cmpf ogt, %23, %37 : vector<8x16xf32>
    %39 = arith.extui %38 : vector<8x16xi1> to vector<8x16xi32>
    %40 = arith.addi %36, %39 : vector<8x16xi32>
    %cst_8 = arith.constant 79.4497985 : f32
    %41 = vector.broadcast %cst_8 : f32 to vector<8x16xf32>
    %42 = arith.cmpf ogt, %23, %41 : vector<8x16xf32>
    %43 = arith.extui %42 : vector<8x16xi1> to vector<8x16xi32>
    %44 = arith.addi %40, %43 : vector<8x16xi32>
    %cst_9 = arith.constant 106.050385 : f32
    %45 = vector.broadcast %cst_9 : f32 to vector<8x16xf32>
    %46 = arith.cmpf ogt, %23, %45 : vector<8x16xf32>
    %47 = arith.extui %46 : vector<8x16xi1> to vector<8x16xi32>
    %48 = arith.addi %44, %47 : vector<8x16xi32>
    %cst_10 = arith.constant 136.485306 : f32
    %49 = vector.broadcast %cst_10 : f32 to vector<8x16xf32>
    %50 = arith.cmpf ogt, %23, %49 : vector<8x16xf32>
    %51 = arith.extui %50 : vector<8x16xi1> to vector<8x16xi32>
    %52 = arith.addi %48, %51 : vector<8x16xi32>
    %cst_11 = arith.constant 170.754532 : f32
    %53 = vector.broadcast %cst_11 : f32 to vector<8x16xf32>
    %54 = arith.cmpf ogt, %23, %53 : vector<8x16xf32>
    %55 = arith.extui %54 : vector<8x16xi1> to vector<8x16xi32>
    %56 = arith.addi %52, %55 : vector<8x16xi32>
    %cst_12 = arith.constant 208.858078 : f32
    %57 = vector.broadcast %cst_12 : f32 to vector<8x16xf32>
    %58 = arith.cmpf ogt, %23, %57 : vector<8x16xf32>
    %59 = arith.extui %58 : vector<8x16xi1> to vector<8x16xi32>
    %60 = arith.addi %56, %59 : vector<8x16xi32>
    %cst_13 = arith.constant 250.795944 : f32
    %61 = vector.broadcast %cst_13 : f32 to vector<8x16xf32>
    %62 = arith.cmpf ogt, %23, %61 : vector<8x16xf32>
    %63 = arith.extui %62 : vector<8x16xi1> to vector<8x16xi32>
    %64 = arith.addi %60, %63 : vector<8x16xi32>
    %cst_14 = arith.constant 296.568146 : f32
    %65 = vector.broadcast %cst_14 : f32 to vector<8x16xf32>
    %66 = arith.cmpf ogt, %23, %65 : vector<8x16xf32>
    %67 = arith.extui %66 : vector<8x16xi1> to vector<8x16xi32>
    %68 = arith.addi %64, %67 : vector<8x16xi32>
    %cst_15 = arith.constant 346.174652 : f32
    %69 = vector.broadcast %cst_15 : f32 to vector<8x16xf32>
    %70 = arith.cmpf ogt, %23, %69 : vector<8x16xf32>
    %71 = arith.extui %70 : vector<8x16xi1> to vector<8x16xi32>
    %72 = arith.addi %68, %71 : vector<8x16xi32>
    %cst_16 = arith.constant 399.615479 : f32
    %73 = vector.broadcast %cst_16 : f32 to vector<8x16xf32>
    %74 = arith.cmpf ogt, %23, %73 : vector<8x16xf32>
    %75 = arith.extui %74 : vector<8x16xi1> to vector<8x16xi32>
    %76 = arith.addi %72, %75 : vector<8x16xi32>
    %cst_17 = arith.constant 456.890625 : f32
    %77 = vector.broadcast %cst_17 : f32 to vector<8x16xf32>
    %78 = arith.cmpf ogt, %23, %77 : vector<8x16xf32>
    %79 = arith.extui %78 : vector<8x16xi1> to vector<8x16xi32>
    %80 = arith.addi %76, %79 : vector<8x16xi32>
    %c0_18 = arith.constant 0 : index
    %c0_19 = arith.constant 0 : index
    %c0_20 = arith.constant 0 : index
    %81 = vector.load %arg4[%c0_18, %c0_19, %c0_20] : memref<1x8x16xi32, #tpu.memory_space<vmem>>, vector<1x8x16xi32>
    %82 = vector.shape_cast %81 : vector<1x8x16xi32> to vector<8x16xi32>
    %83 = vector.shape_cast %80 : vector<8x16xi32> to vector<1x8x16xi32>
    tpu.vector_store %arg4[%c0_18, %c0_19, %c0_20], %83 {strides = array<i32>} : memref<1x8x16xi32, #tpu.memory_space<vmem>>, vector<1x8x16xi32>,
    return
  }
  func.func @transform_0(%arg0: i32, %arg1: i32) -> (i32, i32, i32) {
    %c0_i32 = arith.constant 0 : i32
    %c0_i32_0 = arith.constant 0 : i32
    return %arg0, %arg1, %c0_i32 : i32, i32, i32
  }
  func.func @transform_1(%arg0: i32, %arg1: i32) -> (i32, i32, i32) {
    %c0_i32 = arith.constant 0 : i32
    %c0_i32_0 = arith.constant 0 : i32
    %c0_i32_1 = arith.constant 0 : i32
    return %arg0, %c0_i32, %c0_i32_0 : i32, i32, i32
  }
  func.func @transform_2(%arg0: i32, %arg1: i32) -> (i32, i32, i32) {
    %c0_i32 = arith.constant 0 : i32
    %c0_i32_0 = arith.constant 0 : i32
    return %arg0, %arg1, %c0_i32 : i32, i32, i32
  }
}

</mosaic_0001>

<bundles_post_ra>
// kernel: folding_trunk_forward.6
= control target key start
LH: loop header
LB: loop body
LE: loop exit
PB: predicated region body
PF: predicated region fallthrough
CT: control target
= control target key end

     0   :  { %8 = vsyncpa [#allocation3], 0  ;;  %s1381_s0 = inlined_call_operand.hbm [shape: f32[2,16,16,128], index: 0, kind: input, shape index: {}]   ;;  %s1382_s1 = inlined_call_operand.vmem [shape: s32[2,16,16], index: 1, kind: input, shape index: {}]   ;;  %s1383_s2 = inlined_call_operand.vmem [shape: f32[66,128], index: 2, kind: input, shape index: {}]   ;;  %s1384_s3 = inlined_call_operand.vmem [shape: f32[2,16,16,128], index: 3, kind: output, shape index: {}]  }
   0x1   :  { %10 = vsyncpa [#allocation3 + $0x1], 0  ;;  %s1111_s12 = smov 0   ;;  %s1113_s13 = smov 0  }
   0x2   :  { %s1115_s14 = smov 0   ;;  %s1117_s15 = smov 0  }
   0x3   :  { %s1119_s16 = smov 0   ;;  %s1121_s17 = smov 0  }
   0x4   :  { %s1123_s18 = smov 0   ;;  %s1125_s19 = smov 0  }
   0x5 LB: > { %s769_s20 = sadd.s32 4294967295, %s1085_s19   ;;  %s25_s21 = sadd.s32 1, %s1077_s17  ;;  %s1085_s19 = sphi %s1125_s19, %s16_s19   ;;  %s1081_s18 = sphi %s1123_s18, %s1395_s18   ;;  %s1077_s17 = sphi %s1121_s17, %s1394_s17   ;;  %s1073_s16 = sphi %s1119_s16, %s1393_s16   ;;  %s1069_s15 = sphi %s1117_s15, %s1392_s15   ;;  %s1065_s14 = sphi %s1115_s14, %s1391_s14   ;;  %s1061_s13 = sphi %s1113_s13, %s1390_s13   ;;  %s1057_s12 = sphi %s1111_s12, %s1389_s12  }
   0x6   : > { %p26_p0 = scmp.ge.s32.totalorder %s25_s21, 2  ;;  %s28_s22 = sadd.s32 1, %s1081_s18 }
   0x7   : > { %s37_s23 = sadd.s32 1, %s1065_s14  ;;  %p44_p1 = scmp.ne.s32.totalorder %s1065_s14, %s1061_s13 }
   0x8   : > { %s1397_s21 = smov (%p26_p0, %s25_s21), 0  ;;  %s1399_s22 = smov (!%p26_p0, %s28_s22), %s1081_s18 }
   0x9   : > { %s33_s24 = ssub.s32 %s1077_s17, %s1397_s21  ;;  %p45_p2 = scmp.eq.s32.totalorder %s1085_s19, 0 }
   0xa   : > { %p30_p3 = scmp.ge.s32.totalorder %s1399_s22, 2  ;;  %p50_p4 = scmp.ne.s32.totalorder %s1061_s13, %s1057_s12 }
   0xb   : > { %p1162_p5 = por %p45_p2, %p44_p1  ;;  %p51_p6 = scmp.eq.s32.totalorder %s769_s20, 0 }
   0xc   : > { %s1401_s22 = smov (%p30_p3, %s1399_s22), 0  ;;  %p921_p8 = scmp.lt.s32.totalorder %s1085_s19, 4 }
   0xd   : > { %p1168_p7 = por %p51_p6, %p50_p4  ;;  %s32_s27 = ssub.s32 %s1081_s18, %s1401_s22 }
   0xe   : > { %s34_s28 = sor.u32 %s33_s24, %s32_s27  ;;  %s154_s29 = sand.u32 1, %s1065_s14  }
   0xf   : > { %p35_p9 = scmp.eq.s32.totalorder %s34_s28, 0  ;;  %s773_s30 = sshll.u32 %s154_s29, 7 }
  0x10   : > { %s821_s4 = sshll.u32 %s1077_s17, 4  ;;  %s776_s6 = sshll.u32 %s1081_s18, 5 }
  0x11   : > { %s1178_s5 = scalar_select %p35_p9, %s1065_s14, %s37_s23  }
  0x12   : > { %s165_s7 = sadd.s32 %s821_s4, %s776_s6  ;;  %s158_s8 = scalar_lea.vmem [#allocation2], %s773_s30 }
  0x13   : > { %s168_s9 = sshll.u32 %s158_s8, 4  ;;  %s777_s10 = sshll.u32 %s165_s7, 7  ;;  %s1181_s9 = int_to_ptr.vmem [resolvable:$true] %s168_s9 }
  0x14   : > { %s1186_s20 = scalar_lea.hbm %s1381_s0, %s777_s10  ;;  %p1192_p10 = pnand %p921_p8, %p1162_p5 }
  0x15   : > { %s1197_s24 = scalar_lea.sflag [#allocation3], %s154_s29  ;;  %s989_s27 = scalar_lea.hbm %s1186_s20, 2048 }
  0x16   : > { %p990_p12 = scmp.ne.s32.totalorder %s1186_s20, %s989_s27  ;;  %p991_p13 = pneg %p1192_p10 }
  0x17   : > { %s994_s30 = scalar_lea.hbm %s1381_s0, 8192  ;;  %p995_p2 = scmp.lt.u32.totalorder %s1186_s20, %s1381_s0 }
  0x18   : > { %p992_p0 = pnand %p991_p13, %p990_p12  ;;  %p996_p3 = scmp.lt.u32.totalorder %s994_s30, %s989_s27 }
  0x19   : > { %p998_p5 = scmp.lt.u32.totalorder %s989_s27, %s1186_s20 }
  0x1a   : > { %p993_p1 = pneg %p992_p0  ;;  %p997_p4 = por %p996_p3, %p995_p2 }
  0x1c   : > { %p999_p6 = por %p998_p5, %p997_p4 }
  0x1e   : > { %p1000_p8 = pnand %p999_p6, %p993_p1 }
  0x20   : > { %1003 = shalt.err (!%p1000_p8)
}
  0x21   : > { %s1004_s29 = scalar_lea.vmem %s1181_s9, 2048  ;;  %s1087_s7 = smov [#allocation2]  }
  0x22   : > { %p1005_p9 = scmp.ne.s32.totalorder %s1181_s9, %s1004_s29  ;;  %s1009_s8 = sshll.u32 %s1087_s7, 4  ;;  %s1010_s8 = int_to_ptr.vmem [resolvable:$false] %s1009_s8 }
  0x23   : > { %s1011_s10 = scalar_lea.vmem %s1010_s8, 4096  ;;  %p1012_p11 = scmp.lt.s32.totalorder %s1181_s9, %s1010_s8 }
  0x24   : > { %p1007_p12 = pnand %p1005_p9, %p991_p13  ;;  %p1013_p2 = scmp.lt.s32.totalorder %s1011_s10, %s1004_s29 }
  0x26   : > { %p1008_p0 = pneg %p1007_p12  ;;  %p1014_p3 = por %p1013_p2, %p1012_p11 }
  0x28   : > { %p1015_p4 = pnand %p1014_p3, %p1008_p0 }
  0x2a   : > { %1018 = shalt.err (!%p1015_p4)
}
  0x2b   : > { %s1088_s11 = smov 128   ;;  %s1089_s12 = smov 8  }
  0x2c   : > { %920 = dma.hbm_to_vmem [thread:$0]  (!%p1192_p10), %s1186_s20, 2048, %s1181_s9, %s1197_s24, %s1088_s11, %s1088_s11, %s1089_s12  }
  0x2d   : > { %p187_p13 = scmp.lt.s32.totalorder %s1085_s19, 5  ;;  %p1388_p1 = scmp.ge.s32.totalorder %s1085_s19, 1 }
  0x2f   : > { %p188_p5 = pnand %p1388_p1, %p187_p13 }
  0x30   : > { %s193_s27 = sand.u32 (!%p188_p5), 1, %s1061_s13  }
  0x31   : > { %191 = sbr.rel (%p188_p5) target bundleno = 429 (0x1ad), region = 32  ;;  %s779_s25 = sshll.u32 (!%p188_p5), %s193_s27, 7 }
  0x32   : > { %s194_s28 = scalar_lea.sflag (!%p188_p5), [#allocation3], %s193_s27  ;;  %s1229_s30 = scalar_lea.vmem (!%p188_p5), [#allocation2], %s779_s25 }
  0x38   : > { %1052 = dma.done.wait (%p1168_p7), %s194_s28, 2048  }
  0x39   : > { %1054 = vsyncadd (%p1168_p7), %s194_s28, 4294965248  ;;  %p234_p10 = scmp.lt.s32.totalorder %s1073_s16, 1  ;;  %p236_p11 = scmp.lt.s32.totalorder %s1069_s15, 1  ;;  %v254_v0 = vlaneseq  ;;  %v392_v4 = vld [vmem:[%s1383_s2] sm:$0xff]  ;;  %v393_v5 = vld [vmem:[%s1383_s2 + $0x8] sm:$0xff]  ;;  %vm450_vm0 = vcmask 1041408  }
  0x3a   : > { %v889_v7 = vpack.c.bf16 %v393_v5, %v392_v4  ;;  %v394_v8 = vld [vmem:[%s1383_s2 + $0x10] sm:$0xff]  ;;  %v395_v9 = vld [vmem:[%s1383_s2 + $0x18] sm:$0xff]  ;;  %v396_v11 = vld [vmem:[%s1383_s2 + $0x20] sm:$0xff]  ;;  %vm401_vm1 = vcmask 539648   ;;  %v1090_v35 = vmov 0.0   ;;  %s782_s8 = sshll.u32 %s1069_s15, 3 }
  0x3b   : > { %s1403_s16 = smov (!%p234_p10, %s1073_s16), 1  ;;  %v1241_v1 = vshrl.u32 %v254_v0, 7  ;;  %v397_v12 = vld [vmem:[%s1383_s2 + $0x28] sm:$0xff]  ;;  %v893_v16 = vpack.c.bf16 %v395_v9, %v394_v8  ;;  %v398_v18 = vld [vmem:[%s1383_s2 + $0x30] sm:$0xff]  ;;  %v399_v19 = vld [vmem:[%s1383_s2 + $0x38] sm:$0xff]  ;;  %v1284_v32 = vand.u32 127, %v254_v0 }
  0x3c   : > { %s237_s9 = scalar_select %p236_p11, %s1069_s15, 1  ;;  %890 = vmatprep.subr.bf16.mxu0 %v889_v7  ;;  %905 = vmatprep.subr.bf16.mxu1 %v889_v7  ;;  %v897_v17 = vpack.c.bf16 %v397_v12, %v396_v11  ;;  %v901_v22 = vpack.c.bf16 %v399_v19, %v398_v18  ;;  %v400_v25 = vld [vmem:[%s1383_s2 + $0x40] sm:$0x3]  ;;  %v608_v8 = vld [vmem:[%s1229_s30 + $0x48] sm:$0xff] }
  0x3d   : > { %s780_s20 = sshll.u32 %s1403_s16, 1  ;;  %v258_v2 = vsub.s32 0, %v1241_v1  ;;  %v302_v3 = vsub.s32 4, %v1241_v1  ;;  %v313_v14 = vsub.s32 5, %v1241_v1  ;;  %v269_v15 = vsub.s32 1, %v1241_v1  ;;  %892 = vmatpush3.bf16.msra.mxu0 %v889_v7  ;;  %910 = vmatpush3.bf16.msra.mxu1 %v889_v7  ;;  %p245_p7 = scmp.lt.s32.totalorder %s782_s8, 15 }
  0x3e   : > { %s239_s23 = sadd.s32 %s780_s20, %s237_s9  ;;  %894 = vmatprep.subr.bf16.mxu0 %v893_v16  ;;  %906 = vmatprep.subr.bf16.mxu1 %v893_v16  ;;  %v324_v23 = vsub.s32 6, %v1241_v1  ;;  %v280_v24 = vsub.s32 2, %v1241_v1  ;;  %v335_v28 = vsub.s32 7, %v1241_v1  ;;  %v291_v29 = vsub.s32 3, %v1241_v1  ;;  %s784_s11 = sshll.u32 %s1403_s16, 5  ;;  %v607_v9 = vld [vmem:[%s1229_s30 + $0x40] sm:$0xff] }
  0x3f   : > { %s781_s26 = sshll.u32 %s239_s23, 3  ;;  %s1405_s8 = smov (!%p245_p7, %s782_s8), 15 }
  0x40   : > { %s241_s6 = scalar_lea.vmem %s1382_s1, %s781_s26  ;;  %s783_s10 = sshll.u32 %s1405_s8, 1 }
  0x41   : > { %v253_v6 = vld [vmem:[%s241_s6] sm:$0xff]  ;;  %896 = vmatpush3.bf16.msra.mxu0 %v893_v16  ;;  %911 = vmatpush3.bf16.msra.mxu1 %v893_v16  ;;  %s249_s12 = sadd.s32 %s784_s11, %s783_s10  ;;  %v601_v16 = vld [vmem:[%s1229_s30 + $0x10] sm:$0xff] }
  0x42   : > { %v259_v10 = vrot.slane %v253_v6, %v258_v2  ;;  %v303_v13 = vrot.slane %v253_v6, %v302_v3  ;;  %v314_v20 = vrot.slane %v253_v6, %v313_v14  ;;  %v270_v21 = vrot.slane %v253_v6, %v269_v15  ;;  %898 = vmatprep.subr.bf16.mxu0 %v897_v17  ;;  %s785_s27 = sshll.u32 %s249_s12, 3  ;;  %v600_v2 = vld [vmem:[%s1229_s30 + $0x8] sm:$0xff]  ;;  %v599_v3 = vld [vmem:[%s1229_s30] sm:$0xff]  ;;  %v602_v14 = vld [vmem:[%s1229_s30 + $0x18] sm:$0xff] }
  0x43   : > { %907 = vmatprep.subr.bf16.mxu1 %v897_v17  ;;  %v325_v26 = vrot.slane %v253_v6, %v324_v23  ;;  %v281_v27 = vrot.slane %v253_v6, %v280_v24  ;;  %v336_v30 = vrot.slane %v253_v6, %v335_v28  ;;  %v292_v31 = vrot.slane %v253_v6, %v291_v29  ;;  %s1325_s9 = scalar_lea.vmem %s1384_s3, %s785_s27  ;;  %v610_v15 = vld [vmem:[%s1229_s30 + $0x58] sm:$0xff]  ;;  %v603_v28 = vld [vmem:[%s1229_s30 + $0x20] sm:$0xff] }
  0x44   : > { %265 = vbcast.lane.b32.xlu1 %v259_v10, 264  ;;  %261 = vbcast.lane.b32.xlu0 %v259_v10, 256  ;;  %v611_v29 = vld [vmem:[%s1229_s30 + $0x60] sm:$0xff] }
  0x45   : > { %900 = vmatpush3.bf16.msra.mxu0 %v897_v17  ;;  %912 = vmatpush3.bf16.msra.mxu1 %v897_v17  ;;  %v609_v17 = vld [vmem:[%s1229_s30 + $0x50] sm:$0xff] }
  0x46   : > { %902 = vmatprep.subr.bf16.mxu0 %v901_v22  ;;  %908 = vmatprep.subr.bf16.mxu1 %v901_v22 }
  0x48   : > { %309 = vbcast.lane.b32.xlu1 %v303_v13, 264  ;;  %305 = vbcast.lane.b32.xlu0 %v303_v13, 256 }
  0x49   : > { %904 = vmatpush3.bf16.msra.mxu0 %v901_v22  ;;  %913 = vmatpush3.bf16.msra.mxu1 %v901_v22 }
  0x4a   : > { %863 = vmatprep.subr.msk.mxu0 %vm450_vm0, %v400_v25  ;;  %909 = vmatprep.subr.msk.mxu1 %vm450_vm0, %v400_v25 }
  0x4c   : > { %316 = vbcast.lane.b32.xlu1 %v314_v20, 256  ;;  %272 = vbcast.lane.b32.xlu0 %v270_v21, 256 }
  0x4d   : > { %864 = vmatpush3.msk.msra.mxu0 %vm450_vm0, %v400_v25  ;;  %914 = vmatpush3.msk.msra.mxu1 %vm450_vm0, %v400_v25 }
  0x50   : > { %320 = vbcast.lane.b32.xlu1 %v314_v20, 264  ;;  %276 = vbcast.lane.b32.xlu0 %v270_v21, 264 }
  0x54   : > { %327 = vbcast.lane.b32.xlu1 %v325_v26, 256  ;;  %283 = vbcast.lane.b32.xlu0 %v281_v27, 256 }
  0x58   : > { %331 = vbcast.lane.b32.xlu1 %v325_v26, 264  ;;  %287 = vbcast.lane.b32.xlu0 %v281_v27, 264  ;;  %v604_v26 = vld [vmem:[%s1229_s30 + $0x28] sm:$0xff] }
  0x59   : > { %v612_v27 = vld [vmem:[%s1229_s30 + $0x68] sm:$0xff] }
  0x5c   : > { %338 = vbcast.lane.b32.xlu1 %v336_v30, 256  ;;  %294 = vbcast.lane.b32.xlu0 %v292_v31, 256 }
  0x60   : > { %342 = vbcast.lane.b32.xlu1 %v336_v30, 264  ;;  %298 = vbcast.lane.b32.xlu0 %v292_v31, 264 }
  0xb6   : > { %v266_v33 = vpop.permute.xlu1 %265  ;;  %v262_v34 = vpop.permute.xlu0 %261 }
  0xb7   : > { %vm345_vm2 = vcmp.eq.s32.totalorder %v266_v33, %v1284_v32  ;;  %vm344_vm3 = vcmp.eq.s32.totalorder %v262_v34, %v1284_v32 }
  0xb8   : > { %v787_v36 = vsel %vm345_vm2, 1.0, %v1090_v35  ;;  %v786_v37 = vsel %vm344_vm3, 1.0, %v1090_v35 }
  0xb9   : > { %865 = vmatprep.mubr.msk.f32.mxu0 %vm401_vm1, %v786_v37 }
  0xba   : > { %v310_v38 = vpop.permute.xlu1 %309  ;;  %866 = vmatmul.mubr.msk.f32.vlgmr.msra.gmra.mrb[0].mxu0 %vm401_vm1, %v787_v36  ;;  %v306_v39 = vpop.permute.xlu0 %305 }
  0xbb   : > { %vm353_vm4 = vcmp.eq.s32.totalorder %v310_v38, %v1284_v32  ;;  %vm352_vm5 = vcmp.eq.s32.totalorder %v306_v39, %v1284_v32  ;;  %v606_v38 = vld [vmem:[%s1229_s30 + $0x38] sm:$0xff] }
  0xbc   : > { %v795_v40 = vsel %vm353_vm4, 1.0, %v1090_v35  ;;  %v794_v41 = vsel %vm352_vm5, 1.0, %v1090_v35  ;;  %v614_v39 = vld [vmem:[%s1229_s30 + $0x78] sm:$0xff] }
  0xbd   : > { %877 = vmatprep.mubr.msk.f32.mxu1 %vm401_vm1, %v794_v41  ;;  %v613_v41 = vld [vmem:[%s1229_s30 + $0x70] sm:$0xff] }
  0xbe   : > { %v317_v42 = vpop.permute.xlu1 %316  ;;  %878 = vmatmul.mubr.msk.f32.vlgmr.msra.gmra.mrb[0].mxu1 %vm401_vm1, %v795_v40  ;;  %v273_v43 = vpop.permute.xlu0 %272  ;;  %v605_v40 = vld [vmem:[%s1229_s30 + $0x30] sm:$0xff] }
  0xbf   : > { %vm354_vm6 = vcmp.eq.s32.totalorder %v317_v42, %v1284_v32  ;;  %vm346_vm7 = vcmp.eq.s32.totalorder %v273_v43, %v1284_v32 }
  0xc0   : > { %v796_v44 = vsel %vm354_vm6, 1.0, %v1090_v35  ;;  %v788_v45 = vsel %vm346_vm7, 1.0, %v1090_v35 }
  0xc1   : > { %868 = vmatprep.mubr.msk.f32.mxu0 %vm401_vm1, %v788_v45  ;;  %880 = vmatprep.mubr.msk.f32.mxu1 %vm401_vm1, %v796_v44 }
  0xc2   : > { %v321_v46 = vpop.permute.xlu1 %320  ;;  %v277_v47 = vpop.permute.xlu0 %276 }
  0xc3   : > { %vm355_vm8 = vcmp.eq.s32.totalorder %v321_v46, %v1284_v32  ;;  %vm347_vm9 = vcmp.eq.s32.totalorder %v277_v47, %v1284_v32 }
  0xc4   : > { %v797_v48 = vsel %vm355_vm8, 1.0, %v1090_v35  ;;  %v789_v49 = vsel %vm347_vm9, 1.0, %v1090_v35 }
  0xc5   : > { %869 = vmatmul.mubr.msk.f32.gmra.mrb[2].mxu0 %vm401_vm1, %v789_v49  ;;  %881 = vmatmul.mubr.msk.f32.gmra.mrb[2].mxu1 %vm401_vm1, %v797_v48 }
  0xc6   : > { %v328_v50 = vpop.permute.xlu1 %327  ;;  %v284_v51 = vpop.permute.xlu0 %283 }
  0xc7   : > { %vm356_vm10 = vcmp.eq.s32.totalorder %v328_v50, %v1284_v32  ;;  %vm348_vm11 = vcmp.eq.s32.totalorder %v284_v51, %v1284_v32 }
  0xc8   : > { %v798_v52 = vsel %vm356_vm10, 1.0, %v1090_v35  ;;  %v790_v53 = vsel %vm348_vm11, 1.0, %v1090_v35 }
  0xc9   : > { %871 = vmatprep.mubr.msk.f32.mxu0 %vm401_vm1, %v790_v53  ;;  %883 = vmatprep.mubr.msk.f32.mxu1 %vm401_vm1, %v798_v52 }
  0xca   : > { %v332_v54 = vpop.permute.xlu1 %331  ;;  %v288_v55 = vpop.permute.xlu0 %287 }
  0xcb   : > { %vm357_vm12 = vcmp.eq.s32.totalorder %v332_v54, %v1284_v32  ;;  %vm349_vm13 = vcmp.eq.s32.totalorder %v288_v55, %v1284_v32 }
  0xcc   : > { %v799_v56 = vsel %vm357_vm12, 1.0, %v1090_v35  ;;  %v791_v57 = vsel %vm349_vm13, 1.0, %v1090_v35 }
  0xcd   : > { %872 = vmatmul.mubr.msk.f32.gmra.mrb[4].mxu0 %vm401_vm1, %v791_v57  ;;  %884 = vmatmul.mubr.msk.f32.gmra.mrb[4].mxu1 %vm401_vm1, %v799_v56 }
  0xce   : > { %v339_v58 = vpop.permute.xlu1 %338  ;;  %v295_v59 = vpop.permute.xlu0 %294 }
  0xcf   : > { %vm358_vm14 = vcmp.eq.s32.totalorder %v339_v58, %v1284_v32  ;;  %vm350_vm15 = vcmp.eq.s32.totalorder %v295_v59, %v1284_v32 }
  0xd0   : > { %v800_v60 = vsel %vm358_vm14, 1.0, %v1090_v35  ;;  %v792_v61 = vsel %vm350_vm15, 1.0, %v1090_v35 }
  0xd1   : > { %874 = vmatprep.mubr.msk.f32.mxu0 %vm401_vm1, %v792_v61  ;;  %886 = vmatprep.mubr.msk.f32.mxu1 %vm401_vm1, %v800_v60 }
  0xd2   : > { %v343_v62 = vpop.permute.xlu1 %342  ;;  %v299_v63 = vpop.permute.xlu0 %298 }
  0xd3   : > { %vm359_vm0 = vcmp.eq.s32.totalorder %v343_v62, %v1284_v32  ;;  %vm351_vm2 = vcmp.eq.s32.totalorder %v299_v63, %v1284_v32 }
  0xd4   : > { %v801_v0 = vsel %vm359_vm0, 1.0, %v1090_v35  ;;  %v793_v1 = vsel %vm351_vm2, 1.0, %v1090_v35 }
  0xd5   : > { %875 = vmatmul.mubr.msk.f32.gmra.mrb[6].mxu0 %vm401_vm1, %v793_v1  ;;  %887 = vmatmul.mubr.msk.f32.gmra.mrb[6].mxu1 %vm401_vm1, %v801_v0 }
 0x18d   : > { %v867_v4 = vpop.f32.mrb[0].mxu0 }
 0x18e   : > { %v616_v5 = vadd.f32 %v867_v4, %v600_v2  ;;  %v520_v6 = vpop.f32.mrb[1].mxu0 }
 0x18f   : > { %v615_v7 = vadd.f32 %v599_v3, %v520_v6 }
 0x190   : > { %632 = vst [vmem:[%s1325_s9 + $0x8] sm:$0xff] %v616_v5 }
 0x191   : > { %631 = vst [vmem:[%s1325_s9] sm:$0xff] %v615_v7  ;;  %v879_v10 = vpop.f32.mrb[0].mxu1 }
 0x192   : > { %v624_v11 = vadd.f32 %v879_v10, %v608_v8  ;;  %v560_v12 = vpop.f32.mrb[1].mxu1 }
 0x193   : > { %v623_v13 = vadd.f32 %v607_v9, %v560_v12 }
 0x194   : > { %640 = vst [vmem:[%s1325_s9 + $0x48] sm:$0xff] %v624_v11 }
 0x195   : > { %639 = vst [vmem:[%s1325_s9 + $0x40] sm:$0xff] %v623_v13 }
 0x198   : > { %v870_v18 = vpop.f32.mrb[2].mxu0  ;;  %v882_v19 = vpop.f32.mrb[2].mxu1 }
 0x199   : > { %v618_v20 = vadd.f32 %v870_v18, %v602_v14  ;;  %v626_v21 = vadd.f32 %v882_v19, %v610_v15  ;;  %v530_v22 = vpop.f32.mrb[3].mxu0  ;;  %v570_v23 = vpop.f32.mrb[3].mxu1 }
 0x19a   : > { %v617_v24 = vadd.f32 %v601_v16, %v530_v22  ;;  %v625_v25 = vadd.f32 %v609_v17, %v570_v23 }
 0x19b   : > { %634 = vst [vmem:[%s1325_s9 + $0x18] sm:$0xff] %v618_v20  ;;  %642 = vst [vmem:[%s1325_s9 + $0x58] sm:$0xff] %v626_v21 }
 0x19c   : > { %633 = vst [vmem:[%s1325_s9 + $0x10] sm:$0xff] %v617_v24  ;;  %641 = vst [vmem:[%s1325_s9 + $0x50] sm:$0xff] %v625_v25 }
 0x1a0   : > { %v873_v30 = vpop.f32.mrb[4].mxu0  ;;  %v885_v31 = vpop.f32.mrb[4].mxu1 }
 0x1a1   : > { %v620_v32 = vadd.f32 %v873_v30, %v604_v26  ;;  %v628_v33 = vadd.f32 %v885_v31, %v612_v27  ;;  %v540_v34 = vpop.f32.mrb[5].mxu0  ;;  %v580_v35 = vpop.f32.mrb[5].mxu1 }
 0x1a2   : > { %v619_v36 = vadd.f32 %v603_v28, %v540_v34  ;;  %v627_v37 = vadd.f32 %v611_v29, %v580_v35 }
 0x1a3   : > { %636 = vst [vmem:[%s1325_s9 + $0x28] sm:$0xff] %v620_v32  ;;  %644 = vst [vmem:[%s1325_s9 + $0x68] sm:$0xff] %v628_v33 }
 0x1a4   : > { %635 = vst [vmem:[%s1325_s9 + $0x20] sm:$0xff] %v619_v36  ;;  %643 = vst [vmem:[%s1325_s9 + $0x60] sm:$0xff] %v627_v37 }
 0x1a8   : > { %v876_v42 = vpop.f32.mrb[6].mxu0  ;;  %v888_v43 = vpop.f32.mrb[6].mxu1 }
 0x1a9   : > { %v622_v44 = vadd.f32 %v876_v42, %v606_v38  ;;  %v630_v45 = vadd.f32 %v888_v43, %v614_v39  ;;  %v550_v46 = vpop.f32.mrb[7].mxu0  ;;  %v590_v47 = vpop.f32.mrb[7].mxu1 }
 0x1aa   : > { %v621_v48 = vadd.f32 %v605_v40, %v550_v46  ;;  %v629_v49 = vadd.f32 %v613_v41, %v590_v47 }
 0x1ab   : > { %638 = vst [vmem:[%s1325_s9 + $0x38] sm:$0xff] %v622_v44  ;;  %646 = vst [vmem:[%s1325_s9 + $0x78] sm:$0xff] %v630_v45 }
 0x1ac   : > { %637 = vst [vmem:[%s1325_s9 + $0x30] sm:$0xff] %v621_v48  ;;  %645 = vst [vmem:[%s1325_s9 + $0x70] sm:$0xff] %v629_v49 }
 0x1ad PF: > { %s16_s19 = sadd.s32 1, %s1085_s19   ;;  %s1389_s12 = smov %s1061_s13 }
 0x1ae   : > { %p13_p6 = scmp.ge.s32.totalorder %s16_s19, 6   ;;  %s1390_s13 = smov %s1065_s14 }
 0x1af   : > { %s1391_s14 = smov %s1178_s5  ;;  %s1392_s15 = smov %s1077_s17 }
 0x1b0   : > { %s1393_s16 = smov %s1081_s18  ;;  %s1394_s17 = smov %s1397_s21 }
 0x1b1   : > { %s1395_s18 = smov %s1401_s22  ;;  %15 = sbr.rel (!%p13_p6) target bundleno = 5 (0x5), region = 75 }
 0x1b8   :  { %679 = vsyncpa [#allocation3], 1 }
 0x1b9   :  { %681 = vsyncpa [#allocation3 + $0x1], 1 }

// kernel: folding_trunk_forward.8
= control target key start
LH: loop header
LB: loop body
LE: loop exit
PB: predicated region body
PF: predicated region fallthrough
CT: control target
= control target key end

     0   :  { %s1755_s0 = inlined_call_operand.vmem [shape: f32[32,128], index: 0, kind: input, shape index: {}, may-alias: {0,8}]   ;;  %s1756_s1 = inlined_call_operand.vmem [shape: f32[32,128], index: 1, kind: input, shape index: {}]   ;;  %s1757_s2 = inlined_call_operand.vmem [shape: f32[1,128], index: 2, kind: input, shape index: {}]   ;;  %s1758_s3 = inlined_call_operand.vmem [shape: f32[1,128], index: 3, kind: input, shape index: {}]   ;;  %s1759_s4 = inlined_call_operand.vmem [shape: bf16[128,128], index: 4, kind: input, shape index: {}]   ;;  %s1760_s5 = inlined_call_operand.vmem [shape: f32[1,128], index: 5, kind: input, shape index: {}]   ;;  %s1761_s6 = inlined_call_operand.vmem [shape: bf16[128,128], index: 6, kind: input, shape index: {}]   ;;  %s1762_s7 = inlined_call_operand.vmem [shape: f32[1,128], index: 7, kind: input, shape index: {}]   ;;  %s1763_s8 = inlined_call_operand.vmem [shape: f32[32,128], index: 8, kind: output, shape index: {0}, may-alias: {0,8}]   ;;  %s1764_s9 = inlined_call_operand.hbm [shape: f32[32,128], index: 9, kind: output, shape index: {1}]   ;;  %s1765_s10 = inlined_call_operand.hbm [shape: f32[32,128], index: 10, kind: output, shape index: {2}]   ;;  %s1766_s11 = inlined_call_operand.vmem [shape: f32[32,128], index: 11, kind: output, shape index: {3}]  }
   0x1   :  { %1767 = sst [smem:[#allocation8_spill]] %s1755_s0 }
   0x2   :  { %1768 = sst [smem:[#allocation9_spill]] %s1756_s1 }
   0x3   :  { %1769 = sst [smem:[#allocation10_spill]] %s1757_s2 }
   0x4   :  { %1770 = sst [smem:[#allocation11_spill]] %s1758_s3 }
   0x5   :  { %1771 = sst [smem:[#allocation12_spill]] %s1759_s4 }
   0x6   :  { %17 = vsyncpa [#allocation3], 0 }
   0x7   :  { %19 = vsyncpa [#allocation3 + $0x1], 0 }
   0x8   :  { %20 = vsyncpa [#allocation5], 0 }
   0x9   :  { %22 = vsyncpa [#allocation5 + $0x1], 0  ;;  %s1472_s17 = smov 0   ;;  %s1474_s18 = smov 0  }
   0xa   :  { %s1476_s19 = smov 0   ;;  %s1478_s20 = smov 0  }
   0xb LB: > { %s1493_s21 = sadd.s32 4294967295, %s1394_s20   ;;  %s1114_s22 = sadd.s32 4294967294, %s1394_s20   ;;  %s1394_s20 = sphi %s1478_s20, %s1782_s20   ;;  %s1390_s19 = sphi %s1476_s19, %s1781_s19   ;;  %s1386_s18 = sphi %s1474_s18, %s1780_s18   ;;  %s1382_s17 = sphi %s1472_s17, %s1779_s17  }
   0xc   : > { %s1497_s23 = sadd.s32 1, %s1394_s20   ;;  %s239_s24 = sadd.s32 1, %s1390_s19 }
   0xd   : > { %s236_s25 = ssub.s32 %s1394_s20, %s1497_s23  ;;  %p249_p0 = scmp.ne.s32.totalorder %s1390_s19, %s1386_s18 }
   0xe   : > { %p237_p1 = scmp.eq.s32.totalorder %s236_s25, 0  ;;  %p250_p2 = scmp.eq.s32.totalorder %s1493_s21, 1 }
   0xf   : > { %p255_p3 = scmp.ne.s32.totalorder %s1386_s18, %s1382_s17  ;;  %p256_p4 = scmp.eq.s32.totalorder %s1114_s22, 1 }
  0x10   : > { %s1508_s26 = scalar_select %p237_p1, %s1390_s19, %s239_s24  }
  0x11   : > { %p1510_p5 = por %p250_p2, %p249_p0  ;;  %p1514_p6 = por %p256_p4, %p255_p3 }
  0x12   : > { %p1117_p7 = scmp.ge.s32.totalorder %s1394_s20, 1  ;;  %p362_p8 = scmp.lt.s32.totalorder %s1394_s20, 3 }
  0x14   : > { %p363_p9 = pnand %p1117_p7, %p362_p8 }
  0x15   : > { %s1120_s29 = sshll.u32 (!%p363_p9), %s1493_s21, 1  ;;  %s1774_s0 = sld [smem:[#allocation8_spill]] (!%p363_p9)  ;;  %v1396_v3 = vmov (!%p363_p9), 0.0   ;;  %vm1397_vm0 = vmmov (!%p363_p9), 0   ;;  %v1288_v19 = vld [vmem:[%s1761_s6] sm:$0xff] (!%p363_p9)   ;;  %v1289_v20 = vld [vmem:[%s1761_s6 + $0x8] sm:$0xff] (!%p363_p9)  }
  0x16   : > { %366 = sbr.rel (%p363_p9) target bundleno = 1293 (0x50d), region = 52  ;;  %p423_p10 = scmp.lt.s32.totalorder (!%p363_p9), %s1120_s29, 3  ;;  %1176 = vmatprep.subr.bf16.mxu0 (!%p363_p9), %v1396_v3  ;;  %1196 = vmatprep.subr.bf16.mxu1 (!%p363_p9), %v1396_v3  ;;  %v1290_v21 = vld [vmem:[%s1761_s6 + $0x10] sm:$0xff] (!%p363_p9)   ;;  %v1291_v22 = vld [vmem:[%s1761_s6 + $0x18] sm:$0xff] (!%p363_p9)   ;;  %v1292_v23 = vld [vmem:[%s1761_s6 + $0x20] sm:$0xff] (!%p363_p9)  }
  0x17   : > { %s1775_s4 = sld [smem:[#allocation12_spill]] (!%p363_p9)  ;;  %1192 = vmatprep.mubr.msk.bf16.mxu0 (!%p363_p9), %vm1397_vm0, %v1396_v3  ;;  %1212 = vmatprep.mubr.msk.bf16.mxu1 (!%p363_p9), %vm1397_vm0, %v1396_v3  ;;  %v1293_v24 = vld [vmem:[%s1761_s6 + $0x28] sm:$0xff] (!%p363_p9)   ;;  %s1776_s2 = sld [smem:[#allocation10_spill]] (!%p363_p9)  ;;  %v1294_v46 = vld [vmem:[%s1761_s6 + $0x30] sm:$0xff] (!%p363_p9)   ;;  %v1295_v47 = vld [vmem:[%s1761_s6 + $0x38] sm:$0xff] (!%p363_p9)  }
  0x18   : > { %1197 = vmatpush3.bf16.msra.mxu1 (!%p363_p9), %v1288_v19  ;;  %s1777_s1 = sld [smem:[#allocation9_spill]] (!%p363_p9)  ;;  %s1778_s3 = sld [smem:[#allocation11_spill]] (!%p363_p9)  ;;  %v1130_v48 = vld [vmem:[%s1760_s5] ss:$0 sm:$0xff] (!%p363_p9) }
  0x19   : > { %1198 = vmatprep.subr.bf16.mxu1 (!%p363_p9), %v1396_v3  ;;  %s1608_s13 = sand.u32 (!%p363_p9), 1, %s1386_s18   ;;  %v1139_v56 = vld [vmem:[%s1762_s7] ss:$0 sm:$0xff] (!%p363_p9)  ;;  %s1398_s12 = smov (!%p363_p9), 3  }
  0x1a   : > { %s1401_s15 = smov (!%p363_p9), 124   ;;  %s1402_s22 = smov (!%p363_p9), 127  }
  0x1b   : > { %s1403_s24 = smov (!%p363_p9), 1  }
  0x1c   : > { %1199 = vmatpush3.bf16.msra.mxu1 (!%p363_p9), %v1289_v20 }
  0x1d   : > { %s1784_s29 = smov (!%p423_p10, %s1120_s29), 3  ;;  %v1280_v2 = vld [vmem:[%s1775_s4] sm:$0xff]   ;;  %v1281_v12 = vld [vmem:[%s1775_s4 + $0x8] sm:$0xff]   ;;  %v1282_v13 = vld [vmem:[%s1775_s4 + $0x10] sm:$0xff]   ;;  %1200 = vmatprep.subr.bf16.mxu1 %v1396_v3 }
  0x1e   : > { %s1521_s30 = sshll.u32 %s1784_s29, 3  ;;  %1177 = vmatpush3.bf16.msra.mxu0 %v1280_v2  ;;  %v1283_v14 = vld [vmem:[%s1775_s4 + $0x18] sm:$0xff]   ;;  %v1284_v15 = vld [vmem:[%s1775_s4 + $0x20] sm:$0xff]   ;;  %v1285_v16 = vld [vmem:[%s1775_s4 + $0x28] sm:$0xff]  }
  0x1f   : > { %s426_s14 = scalar_lea.vmem %s1774_s0, %s1521_s30  ;;  %1178 = vmatprep.subr.bf16.mxu0 %v1396_v3  ;;  %v1286_v17 = vld [vmem:[%s1775_s4 + $0x30] sm:$0xff]   ;;  %v1287_v18 = vld [vmem:[%s1775_s4 + $0x38] sm:$0xff]   ;;  %v1128_v32 = vld [vmem:[%s1776_s2] ss:$0 sm:$0xff]  ;;  %s432_s29 = scalar_lea.vmem %s1777_s1, %s1521_s30 }
  0x20   : > { %v449_v0 = vld [vmem:[%s426_s14] sm:$0xff]  ;;  %v450_v1 = vld [vmem:[%s426_s14 + $0x8] sm:$0xff]  ;;  %1201 = vmatpush3.bf16.msra.mxu1 %v1290_v21  ;;  %s438_s16 = scalar_lea.vmem %s1763_s8, %s1521_s30  ;;  %s1399_s14 = smov 126  }
  0x21   : > { %451 = vadd.xlane.f32.xlu0 %v449_v0  ;;  %1202 = vmatprep.subr.bf16.mxu1 %v1396_v3  ;;  %v1129_v34 = vld [vmem:[%s1778_s3] ss:$0 sm:$0xff]  ;;  %v493_v42 = vld [vmem:[%s432_s29 + $0x8] sm:$0xff]  ;;  %s1408_s3 = smov [#allocation2]  }
  0x22   : > { %1179 = vmatpush3.bf16.msra.mxu0 %v1281_v12  ;;  %v492_v37 = vld [vmem:[%s432_s29] sm:$0xff]  ;;  %s1118_s29 = sshll.u32 %s1608_s13, 4  ;;  %s1304_s4 = sshll.u32 %s1408_s3, 4  ;;  %s1305_s4 = int_to_ptr.vmem [resolvable:$false] %s1304_s4 }
  0x23   : > { %1180 = vmatprep.subr.bf16.mxu0 %v1396_v3  ;;  %s1621_s25 = scalar_lea.vmem [#allocation4], %s1118_s29 }
  0x24   : > { %1203 = vmatpush3.bf16.msra.mxu1 %v1291_v22 }
  0x25   : > { %453 = vadd.xlane.f32.xlu0 %v450_v1  ;;  %1204 = vmatprep.subr.bf16.mxu1 %v1396_v3 }
  0x26   : > { %1181 = vmatpush3.bf16.msra.mxu0 %v1282_v13 }
  0x27   : > { %1182 = vmatprep.subr.bf16.mxu0 %v1396_v3 }
  0x28   : > { %1205 = vmatpush3.bf16.msra.mxu1 %v1292_v23 }
  0x29   : > { %1206 = vmatprep.subr.bf16.mxu1 %v1396_v3 }
  0x2a   : > { %1183 = vmatpush3.bf16.msra.mxu0 %v1283_v14 }
  0x2b   : > { %1184 = vmatprep.subr.bf16.mxu0 %v1396_v3 }
  0x2c   : > { %1207 = vmatpush3.bf16.msra.mxu1 %v1293_v24 }
  0x2d   : > { %1208 = vmatprep.subr.bf16.mxu1 %v1396_v3 }
  0x2e   : > { %1185 = vmatpush3.bf16.msra.mxu0 %v1284_v15 }
  0x2f   : > { %1186 = vmatprep.subr.bf16.mxu0 %v1396_v3 }
  0x30   : > { %1209 = vmatpush3.bf16.msra.mxu1 %v1294_v46 }
  0x31   : > { %1210 = vmatprep.subr.bf16.mxu1 %v1396_v3 }
  0x32   : > { %1187 = vmatpush3.bf16.msra.mxu0 %v1285_v16 }
  0x33   : > { %1188 = vmatprep.subr.bf16.mxu0 %v1396_v3 }
  0x34   : > { %1211 = vmatpush3.bf16.msra.mxu1 %v1295_v47 }
  0x36   : > { %1189 = vmatpush3.bf16.msra.mxu0 %v1286_v17 }
  0x37   : > { %1190 = vmatprep.subr.bf16.mxu0 %v1396_v3 }
  0x3a   : > { %1191 = vmatpush3.bf16.msra.mxu0 %v1287_v18 }
  0xae   : > { %v452_v4 = vpop.xlane.xlu0 %451 }
  0xaf   : > { %v456_v5 = vmul.f32 0.0078125, %v452_v4 }
  0xb1   : > { %v458_v6 = vsub.f32 %v449_v0, %v456_v5 }
  0xb2   : > { %v454_v7 = vpop.xlane.xlu0 %453 }
  0xb3   : > { %v457_v8 = vmul.f32 0.0078125, %v454_v7  ;;  %v460_v9 = vmul.f32 %v458_v6, %v458_v6  ;;  %v1404_v7 = vmov 4  }
  0xb4   : > { %1274 = vset.pattern.permute.xlu0 %v1404_v7 }
  0xb5   : > { %v459_v10 = vsub.f32 %v450_v1, %v457_v8  ;;  %462 = vadd.xlane.f32.xlu1 %v460_v9 }
  0xb7   : > { %v461_v11 = vmul.f32 %v459_v10, %v459_v10 }
  0xb9   : > { %464 = vadd.xlane.f32.xlu1 %v461_v11  ;;  %v1405_v11 = vmov 5  }
  0xba   : > { %1275 = vset.pattern.permute.xlu1 %v1405_v11 }
 0x142   : > { %v463_v25 = vpop.xlane.xlu1 %462 }
 0x143   : > { %v466_v26 = vmul.f32 0.0078125, %v463_v25 }
 0x145   : > { %v468_v27 = vadd.f32 1e-05, %v466_v26 }
 0x146   : > { %v465_v28 = vpop.xlane.xlu1 %464 }
 0x147   : > { %1296 = vrsqrt.f32 %v468_v27  ;;  %v467_v29 = vmul.f32 0.0078125, %v465_v28 }
 0x149   : > { %v469_v30 = vadd.f32 1e-05, %v467_v29 }
 0x14b   : > { %1298 = vrsqrt.f32 %v469_v30 }
 0x151   : > { %v1297_v31 = vpop.eup %1296 }
 0x152   : > { %v472_v33 = vmul.f32 %v1297_v31, %v458_v6 }
 0x154   : > { %v481_v35 = vmul.f32 %v1128_v32, %v472_v33 }
 0x155   : > { %v1299_v36 = vpop.eup %1298 }
 0x156   : > { %v473_v38 = vmul.f32 %v1299_v36, %v459_v10  ;;  %v490_v39 = vadd.f32 %v1129_v34, %v481_v35 }
 0x158   : > { %v482_v40 = vmul.f32 %v1128_v32, %v473_v38  ;;  %v494_v41 = vadd.f32 %v492_v37, %v490_v39 }
 0x15a   : > { %v491_v43 = vadd.f32 %v1129_v34, %v482_v40  ;;  %496 = vst [vmem:[%s438_s16] sm:$0xff] %v494_v41 }
 0x15c   : > { %v495_v44 = vadd.f32 %v493_v42, %v491_v43 }
 0x15e   : > { %497 = vst [vmem:[%s438_s16 + $0x8] sm:$0xff] %v495_v44  ;;  %v498_v45 = vpack.c.bf16 %v495_v44, %v494_v41  ;;  %s1614_s16 = scalar_lea.vmem [#allocation2], %s1118_s29  ;;  %s1400_s29 = smov 123  }
 0x160   : > { %1193 = vmatmul.mubr.bf16.vlgmr.msra.gmra.mrb[0].mxu0 %v498_v45 }
 0x233   : > { %v604_v49 = vpop.f32.mrb[0].mxu0 }
 0x234   : > { %v605_v50 = vadd.f32 %v1130_v48, %v604_v49  ;;  %v1194_v51 = vpop.f32.mrb[1].mxu0 }
 0x235   : > { %v607_v52 = vpop.f32.mrb[2].mxu0 }
 0x236   : > { %611 = vst [vmem:[%s1614_s16] sm:$0xff] %v605_v50  ;;  %v608_v53 = vadd.f32 %v1130_v48, %v607_v52  ;;  %v1195_v54 = vpop.f32.mrb[3].mxu0 }
 0x238   : > { %612 = vst [vmem:[%s1614_s16 + $0x8] sm:$0xff] %v608_v53  ;;  %v613_v55 = vpack.c.bf16 %v608_v53, %v605_v50 }
 0x23a   : > { %1213 = vmatmul.mubr.bf16.vlgmr.msra.gmra.mrb[0].mxu1 %v613_v55 }
 0x30d   : > { %v719_v57 = vpop.f32.mrb[0].mxu1 }
 0x30e   : > { %v720_v58 = vadd.f32 %v1139_v56, %v719_v57  ;;  %v1214_v59 = vpop.f32.mrb[1].mxu1 }
 0x30f   : > { %v722_v60 = vpop.f32.mrb[2].mxu1 }
 0x310   : > { %726 = vst [vmem:[%s1621_s25] sm:$0xff] %v720_v58  ;;  %v723_v61 = vadd.f32 %v1139_v56, %v722_v60  ;;  %730 = vrot.lane.b32.xlu0 %v720_v58, %s1398_s12  ;;  %v1215_v62 = vpop.f32.mrb[3].mxu1 }
 0x312   : > { %727 = vst [vmem:[%s1621_s25 + $0x8] sm:$0xff] %v723_v61  ;;  %732 = vrot.lane.b32.xlu1 %v723_v61, %s1398_s12  ;;  %s1406_s12 = smov 2  }
 0x382   : > { %v731_v63 = vpop.permute.xlu0 %730 }
 0x383   : > { %v1625_v0 = vsub.f32 %v720_v58, %v731_v63 }
 0x384   : > { %v733_v1 = vpop.permute.xlu1 %732 }
 0x385   : > { %v1627_v2 = vsub.f32 %v723_v61, %v733_v1  ;;  %748 = vrot.lane.b32.xlu1 %v1625_v0, %s1399_s14  ;;  %v794_v3 = vmul.f32 0.5680283, %v1625_v0  ;;  %v806_v4 = vmul.f32 0.5406747, %v1625_v0 }
 0x387   : > { %750 = vrot.lane.b32.xlu0 %v1627_v2, %s1399_s14  ;;  %v807_v5 = vmul.f32 0.5406747, %v1627_v2  ;;  %v795_v6 = vmul.f32 0.5680283, %v1627_v2 }
 0x389   : > { %774 = vrot.lane.b32.xlu1 %v1625_v0, %s1400_s29 }
 0x38b   : > { %740 = vrot.lane.b32.xlu0 %v1625_v0, %s1401_s15 }
 0x38d   : > { %776 = vrot.lane.b32.xlu1 %v1627_v2, %s1400_s29 }
 0x38f   : > { %742 = vrot.lane.b32.xlu0 %v1627_v2, %s1401_s15  ;;  %s1156_s15 = sshll.u32 %s1493_s21, 8  ;;  %s1306_s21 = scalar_lea.vmem %s1305_s4, 512 }
 0x391   : > { %766 = vrot.lane.b32.xlu1 %v1625_v0, %s1402_s22 }
 0x393   : > { %798 = vrot.lane.b32.xlu0 %v794_v3, %s1403_s24 }
 0x395   : > { %768 = vrot.lane.b32.xlu1 %v1627_v2, %s1402_s22 }
 0x397   : > { %810 = vrot.lane.b32.xlu0 %v806_v4, %s1399_s14 }
 0x399   : > { %834 = vrot.lane.b32.xlu1 %v794_v3, %s1399_s14 }
 0x39b   : > { %812 = vrot.lane.b32.xlu0 %v807_v5, %s1399_s14 }
 0x39d   : > { %800 = vrot.lane.b32.xlu1 %v795_v6, %s1403_s24 }
 0x3a1   : > { %836 = vrot.lane.b32.xlu1 %v795_v6, %s1399_s14 }
 0x3f7   : > { %v749_v8 = vpop.permute.xlu1 %748 }
 0x3f8   : > { %v754_v9 = vmul.f32 %v749_v8, %v1625_v0 }
 0x3f9   : > { %v751_v10 = vpop.permute.xlu0 %750 }
 0x3fa   : > { %758 = vrot.lane.b32.xlu0 %v754_v9, %s1402_s22  ;;  %v755_v13 = vmul.f32 %v751_v10, %v1627_v2 }
 0x3fb   : > { %v775_v12 = vpop.permute.xlu1 %774 }
 0x3fc   : > { %v780_v14 = vmul.f32 %v775_v12, %v1625_v0 }
 0x3fd   : > { %v741_v17 = vpop.permute.xlu0 %740 }
 0x3fe   : > { %760 = vrot.lane.b32.xlu0 %v755_v13, %s1402_s22  ;;  %784 = vrot.lane.b32.xlu1 %v780_v14, %s1406_s12  ;;  %v746_v26 = vmul.f32 %v741_v17, %v1625_v0 }
 0x3ff   : > { %v777_v15 = vpop.permute.xlu1 %776 }
 0x400   : > { %v781_v16 = vmul.f32 %v777_v15, %v1627_v2 }
 0x401   : > { %v743_v19 = vpop.permute.xlu0 %742 }
 0x402   : > { %818 = vrot.lane.b32.xlu0 %v720_v58, %s1403_s24  ;;  %786 = vrot.lane.b32.xlu1 %v781_v16, %s1406_s12  ;;  %v747_v30 = vmul.f32 %v743_v19, %v1627_v2  ;;  %s1673_s12 = scalar_lea.hbm %s1764_s9, %s1156_s15 }
 0x403   : > { %v767_v18 = vpop.permute.xlu1 %766 }
 0x404   : > { %v772_v31 = vmul.f32 %v767_v18, %v1625_v0  ;;  %v1407_v0 = vmov 3  }
 0x405   : > { %v799_v21 = vpop.permute.xlu0 %798 }
 0x406   : > { %820 = vrot.lane.b32.xlu0 %v723_v61, %s1403_s24  ;;  %842 = vrot.lane.b32.xlu1 %v806_v4, %s1400_s29 }
 0x407   : > { %v769_v20 = vpop.permute.xlu1 %768 }
 0x408   : > { %v773_v38 = vmul.f32 %v769_v20, %v1627_v2 }
 0x409   : > { %v811_v23 = vpop.permute.xlu0 %810 }
 0x40a   : > { %850 = vrot.lane.b32.xlu0 %v720_v58, %s1399_s14  ;;  %844 = vrot.lane.b32.xlu1 %v807_v5, %s1400_s29  ;;  %s954_s29 = sshll.u32 %s1621_s25, 4  ;;  %s911_s25 = scalar_lea.sflag [#allocation3], %s1608_s13  ;;  %s1667_s29 = int_to_ptr.vmem [resolvable:$true] %s954_s29 }
 0x40b   : > { %v835_v22 = vpop.permute.xlu1 %834 }
 0x40d   : > { %v813_v25 = vpop.permute.xlu0 %812 }
 0x40e   : > { %852 = vrot.lane.b32.xlu1 %v723_v61, %s1399_s14  ;;  %s938_s14 = sshll.u32 %s1614_s16, 4  ;;  %s1678_s16 = scalar_lea.hbm %s1765_s10, %s1156_s15  ;;  %s1665_s14 = int_to_ptr.vmem [resolvable:$true] %s938_s14 }
 0x40f   : > { %v801_v24 = vpop.permute.xlu1 %800  ;;  %s1300_s2 = scalar_lea.vmem %s1665_s14, 256  ;;  %p1307_p0 = scmp.lt.s32.totalorder %s1665_s14, %s1305_s4 }
 0x410   : > { %p1301_p11 = scmp.ne.s32.totalorder %s1665_s14, %s1300_s2  ;;  %p1308_p1 = scmp.lt.s32.totalorder %s1306_s21, %s1300_s2 }
 0x412   : > { %p1302_p12 = pnand %p1301_p11, %p1510_p5  ;;  %p1309_p2 = por %p1308_p1, %p1307_p0 }
 0x413   : > { %v837_v27 = vpop.permute.xlu1 %836 }
 0x414   : > { %p1303_p13 = pneg %p1302_p12 }
 0x416   : > { %p1310_p3 = pnand %p1309_p2, %p1303_p13 }
 0x46c   : > { %v759_v28 = vpop.permute.xlu0 %758 }
 0x46d   : > { %v764_v29 = vsub.f32 %v746_v26, %v759_v28 }
 0x46f   : > { %v792_v32 = vmul.f32 -0.5827343, %v764_v29 }
 0x470   : > { %v761_v33 = vpop.permute.xlu0 %760  ;;  %v785_v34 = vpop.permute.xlu1 %784 }
 0x471   : > { %v804_v35 = vadd.f32 %v799_v21, %v792_v32  ;;  %v765_v36 = vsub.f32 %v747_v30, %v761_v33  ;;  %v790_v37 = vsub.f32 %v772_v31, %v785_v34  ;;  %v840_v59 = vadd.f32 %v835_v22, %v792_v32 }
 0x473   : > { %v793_v39 = vmul.f32 -0.5827343, %v765_v36  ;;  %v826_v40 = vmul.f32 -0.5827343, %v790_v37  ;;  %v816_v41 = vsub.f32 %v804_v35, %v811_v23 }
 0x474   : > { %v819_v42 = vpop.permute.xlu0 %818  ;;  %v787_v43 = vpop.permute.xlu1 %786 }
 0x475   : > { %v828_v44 = vadd.f32 %v826_v40, %v799_v21  ;;  %v824_v45 = vadd.f32 %v819_v42, %v816_v41  ;;  %v791_v46 = vsub.f32 %v773_v38, %v787_v43  ;;  %v805_v47 = vadd.f32 %v801_v24, %v793_v39 }
 0x476   : > { %v841_v63 = vadd.f32 %v837_v27, %v793_v39 }
 0x477   : > { %v830_v48 = vsub.f32 %v828_v44, %v811_v23  ;;  %v827_v49 = vmul.f32 -0.5827343, %v791_v46  ;;  %863 = vperm.xlu0 %1274, %v824_v45   ;;  %v817_v54 = vsub.f32 %v805_v47, %v813_v25 }
 0x478   : > { %v843_v50 = vpop.permute.xlu1 %842  ;;  %v821_v53 = vpop.permute.xlu0 %820 }
 0x479   : > { %v832_v51 = vadd.f32 %v830_v48, %v819_v42  ;;  %v829_v52 = vadd.f32 %v827_v49, %v801_v24  ;;  %v825_v57 = vadd.f32 %v821_v53, %v817_v54  ;;  %v848_v61 = vsub.f32 %v840_v59, %v843_v50 }
 0x47b   : > { %v831_v55 = vsub.f32 %v829_v52, %v813_v25  ;;  %876 = vperm.xlu1 %1275, %v832_v51   ;;  %1277 = vset.pattern.permute.xlu0 %v1405_v11 }
 0x47c   : > { %v845_v58 = vpop.permute.xlu1 %844  ;;  %v851_v60 = vpop.permute.xlu0 %850 }
 0x47d   : > { %v833_v56 = vadd.f32 %v831_v55, %v821_v53  ;;  %v856_v62 = vadd.f32 %v851_v60, %v848_v61  ;;  %v849_v2 = vsub.f32 %v841_v63, %v845_v58 }
 0x47f   : > { %1276 = vset.pattern.permute.xlu1 %v1404_v7  ;;  %881 = vperm.xlu0 %1277, %v833_v56  }
 0x480   : > { %868 = vperm.xlu1 %1276, %v825_v57   ;;  %v853_v1 = vpop.permute.xlu1 %852 }
 0x481   : > { %v857_v3 = vadd.f32 %v853_v1, %v849_v2 }
 0x483   : > { %1279 = vset.pattern.permute.xlu0 %v1407_v0 }
 0x484   : > { %1278 = vset.pattern.permute.xlu1 %v1407_v0 }
 0x485   : > { %891 = vperm.xlu1 %1278, %v856_v62  }
 0x489   : > { %896 = vperm.xlu1 %1278, %v857_v3  }
 0x48a   : > { %1313 = shalt.err (!%p1310_p3)
}
 0x48b   : > { %s1314_s0 = scalar_lea.hbm %s1673_s12, 256  ;;  %s1318_s3 = scalar_lea.hbm %s1764_s9, 512 }
 0x48c   : > { %p1315_p4 = scmp.ne.s32.totalorder %s1673_s12, %s1314_s0  ;;  %p1319_p9 = scmp.lt.u32.totalorder %s1673_s12, %s1764_s9 }
 0x48d   : > { %p1320_p10 = scmp.lt.u32.totalorder %s1318_s3, %s1314_s0  ;;  %p1322_p12 = scmp.lt.u32.totalorder %s1314_s0, %s1673_s12 }
 0x48e   : > { %p1316_p7 = pnand %p1315_p4, %p1510_p5 }
 0x48f   : > { %p1321_p11 = por %p1320_p10, %p1319_p9 }
 0x490   : > { %p1317_p8 = pneg %p1316_p7 }
 0x491   : > { %p1323_p13 = por %p1322_p12, %p1321_p11 }
 0x493   : > { %p1324_p0 = pnand %p1323_p13, %p1317_p8 }
 0x495   : > { %1327 = shalt.err (!%p1324_p0)
}
 0x496   : > { %s1409_s2 = smov 128   ;;  %s1410_s24 = smov 8  }
 0x497   : > { %1216 = dma.vmem_to_hbm [thread:$0]  (%p1510_p5), %s1665_s14, 256, %s1673_s12, %s911_s25, %s1409_s2, %s1409_s2, %s1410_s24  }
 0x498   : > { %s916_s21 = scalar_lea.sflag [#allocation5], %s1608_s13  ;;  %s1328_s0 = scalar_lea.vmem %s1667_s29, 256 }
 0x499   : > { %p1329_p1 = scmp.ne.s32.totalorder %s1667_s29, %s1328_s0  ;;  %s1411_s1 = smov [#allocation4]  }
 0x49a   : > { %s1332_s15 = sshll.u32 %s1411_s1, 4  ;;  %s1333_s15 = int_to_ptr.vmem [resolvable:$false] %s1332_s15 }
 0x49b   : > { %p1330_p2 = pnand %p1329_p1, %p1510_p5  ;;  %s1334_s3 = scalar_lea.vmem %s1333_s15, 512 }
 0x49c   : > { %p1335_p4 = scmp.lt.s32.totalorder %s1667_s29, %s1333_s15  ;;  %p1336_p7 = scmp.lt.s32.totalorder %s1334_s3, %s1328_s0 }
 0x49d   : > { %p1331_p3 = pneg %p1330_p2 }
 0x49e   : > { %p1337_p8 = por %p1336_p7, %p1335_p4 }
 0x4a0   : > { %p1338_p9 = pnand %p1337_p8, %p1331_p3 }
 0x4a2   : > { %1341 = shalt.err (!%p1338_p9)
}
 0x4a3   : > { %s1342_s14 = scalar_lea.hbm %s1678_s16, 256  ;;  %s1346_s22 = scalar_lea.hbm %s1765_s10, 512 }
 0x4a4   : > { %p1343_p10 = scmp.ne.s32.totalorder %s1678_s16, %s1342_s14  ;;  %p1347_p13 = scmp.lt.u32.totalorder %s1678_s16, %s1765_s10 }
 0x4a5   : > { %p1348_p0 = scmp.lt.u32.totalorder %s1346_s22, %s1342_s14  ;;  %p1350_p2 = scmp.lt.u32.totalorder %s1342_s14, %s1678_s16 }
 0x4a6   : > { %p1344_p11 = pnand %p1343_p10, %p1510_p5 }
 0x4a7   : > { %p1349_p1 = por %p1348_p0, %p1347_p13 }
 0x4a8   : > { %p1345_p12 = pneg %p1344_p11 }
 0x4a9   : > { %p1351_p3 = por %p1350_p2, %p1349_p1 }
 0x4ab   : > { %p1352_p4 = pnand %p1351_p3, %p1345_p12 }
 0x4ad   : > { %1355 = shalt.err (!%p1352_p4)
}
 0x4ae   : > { %1217 = dma.vmem_to_hbm [thread:$0]  (%p1510_p5), %s1667_s29, 256, %s1678_s16, %s916_s21, %s1409_s2, %s1409_s2, %s1410_s24   ;;  %v858_v4 = vlaneseq }
 0x4af   : > { %s446_s29 = scalar_lea.vmem %s1766_s11, %s1521_s30 }
 0x4b0   : > { %v859_v6 = vand.u32 127, %v858_v4 }
 0x4b2   : > { %vm873_vm1 = vcmp.eq.s32.totalorder %v859_v6, 1  ;;  %vm860_vm2 = vcmp.eq.s32.totalorder %v859_v6, 0  ;;  %vm888_vm3 = vcmp.eq.s32.totalorder %v859_v6, 2 }
 0x4f6   : > { %v864_v7 = vpop.permute.xlu0 %863 }
 0x4f7   : > { %v871_v11 = vsel %vm860_vm2, %v864_v7, 0.0 }
 0x4fa   : > { %v877_v5 = vpop.permute.xlu1 %876 }
 0x4fb   : > { %v884_v9 = vsel %vm873_vm1, %v877_v5, 0.0 }
 0x4fc   : > { %v886_v12 = vadd.f32 %v884_v9, %v871_v11 }
 0x4fe   : > { %v882_v10 = vpop.permute.xlu0 %881 }
 0x4ff   : > { %v869_v8 = vpop.permute.xlu1 %868  ;;  %v885_v14 = vsel %vm873_vm1, %v882_v10, 0.0 }
 0x500   : > { %v872_v15 = vsel %vm860_vm2, %v869_v8, 0.0 }
 0x501   : > { %v887_v18 = vadd.f32 %v885_v14, %v872_v15 }
 0x504   : > { %v892_v13 = vpop.permute.xlu1 %891 }
 0x505   : > { %v899_v16 = vsel %vm888_vm3, %v892_v13, 0.0 }
 0x506   : > { %v901_v17 = vadd.f32 %v899_v16, %v886_v12 }
 0x508   : > { %903 = vst [vmem:[%s446_s29] sm:$0xff] %v901_v17  ;;  %v897_v19 = vpop.permute.xlu1 %896 }
 0x509   : > { %v900_v20 = vsel %vm888_vm3, %v897_v19, 0.0 }
 0x50a   : > { %v902_v21 = vadd.f32 %v900_v20, %v887_v18 }
 0x50c   : > { %904 = vst [vmem:[%s446_s29 + $0x8] sm:$0xff] %v902_v21 }
 0x50d PF: > { %p1227_p5 = scmp.ge.s32.totalorder %s1394_s20, 2  ;;  %s981_s16 = sand.u32 1, %s1382_s17  }
 0x50e   : > { %s982_s2 = scalar_lea.sflag [#allocation3], %s981_s16 }
 0x50f   : > { %p1221_p7 = pnand %p1227_p5, %p1514_p6 }
 0x511   : > { %1373 = dma.done.wait (!%p1221_p7), %s982_s2, 256  }
 0x512   : > { %1375 = vsyncadd (!%p1221_p7), %s982_s2, 4294967040  ;;  %s991_s30 = scalar_lea.sflag [#allocation5], %s981_s16 }
 0x513   : > { %1377 = dma.done.wait (!%p1221_p7), %s991_s30, 256  }
 0x514   : > { %1379 = vsyncadd (!%p1221_p7), %s991_s30, 4294967040  ;;  %p25_p8 = scmp.ge.s32.totalorder %s1497_s23, 4   ;;  %s1779_s17 = smov %s1386_s18 }
 0x515   : > { %s1780_s18 = smov %s1390_s19  ;;  %s1781_s19 = smov %s1508_s26 }
 0x516   : > { %s1782_s20 = smov %s1497_s23  ;;  %27 = sbr.rel (!%p25_p8) target bundleno = 11 (0xb), region = 131 }
 0x51d   :  { %1004 = vsyncpa [#allocation3], 1 }
 0x51e   :  { %1006 = vsyncpa [#allocation3 + $0x1], 1 }
 0x51f   :  { %1007 = vsyncpa [#allocation5], 1 }
 0x520   :  { %1009 = vsyncpa [#allocation5 + $0x1], 1 }

// kernel: folding_trunk_forward.10
= control target key start
LH: loop header
LB: loop body
LE: loop exit
PB: predicated region body
PF: predicated region fallthrough
CT: control target
= control target key end

     0   :  { %s1660_s0 = inlined_call_operand.vmem [shape: f32[32,128], index: 0, kind: input, shape index: {}, may-alias: {0,8}]   ;;  %s1661_s1 = inlined_call_operand.vmem [shape: f32[32,128], index: 1, kind: input, shape index: {}]   ;;  %s1662_s2 = inlined_call_operand.vmem [shape: f32[1,128], index: 2, kind: input, shape index: {}]   ;;  %s1663_s3 = inlined_call_operand.vmem [shape: f32[1,128], index: 3, kind: input, shape index: {}]   ;;  %s1664_s4 = inlined_call_operand.vmem [shape: bf16[128,128], index: 4, kind: input, shape index: {}]   ;;  %s1665_s5 = inlined_call_operand.vmem [shape: f32[1,128], index: 5, kind: input, shape index: {}]   ;;  %s1666_s6 = inlined_call_operand.vmem [shape: bf16[128,128], index: 6, kind: input, shape index: {}]   ;;  %s1667_s7 = inlined_call_operand.vmem [shape: f32[1,128], index: 7, kind: input, shape index: {}]   ;;  %s1668_s8 = inlined_call_operand.vmem [shape: f32[32,128], index: 8, kind: output, shape index: {0}, may-alias: {0,8}]   ;;  %s1669_s9 = inlined_call_operand.hbm [shape: f32[32,128], index: 9, kind: output, shape index: {1}]   ;;  %s1670_s10 = inlined_call_operand.vmem [shape: f32[32,128], index: 10, kind: output, shape index: {2}]   ;;  %s1671_s11 = inlined_call_operand.vmem [shape: f32[32,128], index: 11, kind: output, shape index: {3}]  }
   0x1   :  { %1672 = sst [smem:[#allocation5_spill]] %s1660_s0 }
   0x2   :  { %1673 = sst [smem:[#allocation6_spill]] %s1661_s1 }
   0x3   :  { %17 = vsyncpa [#allocation3], 0 }
   0x4   :  { %19 = vsyncpa [#allocation3 + $0x1], 0  ;;  %s1414_s17 = smov 0   ;;  %s1416_s18 = smov 0  }
   0x5   :  { %s1418_s19 = smov 0   ;;  %s1420_s20 = smov 0  }
   0x6 LB: > { %s1435_s21 = sadd.s32 4294967295, %s1337_s20   ;;  %s1097_s22 = sadd.s32 4294967294, %s1337_s20   ;;  %s1337_s20 = sphi %s1420_s20, %s1681_s20   ;;  %s1333_s19 = sphi %s1418_s19, %s1680_s19   ;;  %s1329_s18 = sphi %s1416_s18, %s1679_s18   ;;  %s1325_s17 = sphi %s1414_s17, %s1678_s17  }
   0x7   : > { %s1439_s23 = sadd.s32 1, %s1337_s20   ;;  %s236_s24 = sadd.s32 1, %s1333_s19 }
   0x8   : > { %s233_s25 = ssub.s32 %s1337_s20, %s1439_s23  ;;  %p246_p0 = scmp.ne.s32.totalorder %s1333_s19, %s1329_s18 }
   0x9   : > { %p234_p1 = scmp.eq.s32.totalorder %s233_s25, 0  ;;  %p247_p2 = scmp.eq.s32.totalorder %s1435_s21, 1 }
   0xa   : > { %p252_p3 = scmp.ne.s32.totalorder %s1329_s18, %s1325_s17  ;;  %p253_p4 = scmp.eq.s32.totalorder %s1097_s22, 1 }
   0xb   : > { %s1450_s26 = scalar_select %p234_p1, %s1333_s19, %s236_s24  }
   0xc   : > { %p1452_p5 = por %p247_p2, %p246_p0  ;;  %p1456_p6 = por %p253_p4, %p252_p3 }
   0xd   : > { %p1100_p7 = scmp.ge.s32.totalorder %s1337_s20, 1  ;;  %p359_p8 = scmp.lt.s32.totalorder %s1337_s20, 3 }
   0xf   : > { %p360_p9 = pnand %p1100_p7, %p359_p8 }
  0x10   : > { %s1102_s29 = sshll.u32 (!%p360_p9), %s1435_s21, 1  ;;  %s1676_s0 = sld [smem:[#allocation5_spill]] (!%p360_p9)  ;;  %v1255_v2 = vld [vmem:[%s1664_s4] sm:$0xff] (!%p360_p9)   ;;  %v1339_v3 = vmov (!%p360_p9), 0.0   ;;  %v1256_v12 = vld [vmem:[%s1664_s4 + $0x8] sm:$0xff] (!%p360_p9)   ;;  %v1257_v13 = vld [vmem:[%s1664_s4 + $0x10] sm:$0xff] (!%p360_p9)  }
  0x11   : > { %363 = sbr.rel (%p360_p9) target bundleno = 1288 (0x508), region = 52  ;;  %p420_p10 = scmp.lt.s32.totalorder (!%p360_p9), %s1102_s29, 3  ;;  %1156 = vmatprep.subr.bf16.mxu0 (!%p360_p9), %v1339_v3  ;;  %1176 = vmatprep.subr.bf16.mxu1 (!%p360_p9), %v1339_v3  ;;  %v1258_v14 = vld [vmem:[%s1664_s4 + $0x18] sm:$0xff] (!%p360_p9)   ;;  %vm1340_vm0 = vmmov (!%p360_p9), 0   ;;  %v1259_v15 = vld [vmem:[%s1664_s4 + $0x20] sm:$0xff] (!%p360_p9)   ;;  %v1260_v16 = vld [vmem:[%s1664_s4 + $0x28] sm:$0xff] (!%p360_p9)  }
  0x12   : > { %1157 = vmatpush3.bf16.msra.mxu0 (!%p360_p9), %v1255_v2  ;;  %1172 = vmatprep.mubr.msk.bf16.mxu0 (!%p360_p9), %vm1340_vm0, %v1339_v3  ;;  %v1261_v17 = vld [vmem:[%s1664_s4 + $0x30] sm:$0xff] (!%p360_p9)   ;;  %v1262_v18 = vld [vmem:[%s1664_s4 + $0x38] sm:$0xff] (!%p360_p9)   ;;  %v1263_v19 = vld [vmem:[%s1666_s6] sm:$0xff] (!%p360_p9)   ;;  %s1677_s1 = sld [smem:[#allocation6_spill]] (!%p360_p9)  ;;  %s1342_s15 = smov (!%p360_p9), 126  }
  0x13   : > { %1158 = vmatprep.subr.bf16.mxu0 (!%p360_p9), %v1339_v3  ;;  %1192 = vmatprep.mubr.msk.bf16.mxu1 (!%p360_p9), %vm1340_vm0, %v1339_v3  ;;  %v1264_v20 = vld [vmem:[%s1666_s6 + $0x8] sm:$0xff] (!%p360_p9)   ;;  %v1265_v21 = vld [vmem:[%s1666_s6 + $0x10] sm:$0xff] (!%p360_p9)   ;;  %v1266_v22 = vld [vmem:[%s1666_s6 + $0x18] sm:$0xff] (!%p360_p9)   ;;  %s1343_s22 = smov (!%p360_p9), 123   ;;  %s1344_s24 = smov (!%p360_p9), 124  }
  0x14   : > { %1177 = vmatpush3.bf16.msra.mxu1 (!%p360_p9), %v1263_v19  ;;  %v1267_v23 = vld [vmem:[%s1666_s6 + $0x20] sm:$0xff] (!%p360_p9)   ;;  %v1268_v24 = vld [vmem:[%s1666_s6 + $0x28] sm:$0xff] (!%p360_p9)   ;;  %v1269_v46 = vld [vmem:[%s1666_s6 + $0x30] sm:$0xff] (!%p360_p9)   ;;  %s1345_s25 = smov (!%p360_p9), 127   ;;  %s1346_s12 = smov (!%p360_p9), 1  }
  0x15   : > { %1178 = vmatprep.subr.bf16.mxu1 (!%p360_p9), %v1339_v3  ;;  %v1112_v32 = vld [vmem:[%s1662_s2] ss:$0 sm:$0xff] (!%p360_p9)  ;;  %v1270_v47 = vld [vmem:[%s1666_s6 + $0x38] sm:$0xff] (!%p360_p9)  }
  0x16   : > { %1159 = vmatpush3.bf16.msra.mxu0 (!%p360_p9), %v1256_v12  ;;  %v1113_v34 = vld [vmem:[%s1663_s3] ss:$0 sm:$0xff] (!%p360_p9) }
  0x17   : > { %1160 = vmatprep.subr.bf16.mxu0 (!%p360_p9), %v1339_v3  ;;  %v1114_v48 = vld [vmem:[%s1665_s5] ss:$0 sm:$0xff] (!%p360_p9) }
  0x18   : > { %s1683_s29 = smov (!%p420_p10, %s1102_s29), 3  ;;  %1179 = vmatpush3.bf16.msra.mxu1 %v1264_v20  ;;  %v1123_v56 = vld [vmem:[%s1667_s7] ss:$0 sm:$0xff] }
  0x19   : > { %s1463_s30 = sshll.u32 %s1683_s29, 3  ;;  %1180 = vmatprep.subr.bf16.mxu1 %v1339_v3 }
  0x1a   : > { %s423_s14 = scalar_lea.vmem %s1676_s0, %s1463_s30  ;;  %1161 = vmatpush3.bf16.msra.mxu0 %v1257_v13  ;;  %s429_s29 = scalar_lea.vmem %s1677_s1, %s1463_s30 }
  0x1b   : > { %v451_v0 = vld [vmem:[%s423_s14] sm:$0xff]  ;;  %v452_v1 = vld [vmem:[%s423_s14 + $0x8] sm:$0xff]  ;;  %1162 = vmatprep.subr.bf16.mxu0 %v1339_v3  ;;  %s435_s16 = scalar_lea.vmem %s1668_s8, %s1463_s30  ;;  %s442_s14 = scalar_lea.vmem %s1670_s10, %s1463_s30 }
  0x1c   : > { %453 = vadd.xlane.f32.xlu0 %v451_v0  ;;  %1181 = vmatpush3.bf16.msra.mxu1 %v1265_v21  ;;  %v494_v37 = vld [vmem:[%s429_s29] sm:$0xff]  ;;  %v495_v42 = vld [vmem:[%s429_s29 + $0x8] sm:$0xff]  ;;  %s402_s29 = sand.u32 1, %s1329_s18  }
  0x1d   : > { %1182 = vmatprep.subr.bf16.mxu1 %v1339_v3  ;;  %s1101_s13 = sshll.u32 %s402_s29, 4 }
  0x1e   : > { %1163 = vmatpush3.bf16.msra.mxu0 %v1258_v14 }
  0x1f   : > { %1164 = vmatprep.subr.bf16.mxu0 %v1339_v3 }
  0x20   : > { %455 = vadd.xlane.f32.xlu0 %v452_v1  ;;  %1183 = vmatpush3.bf16.msra.mxu1 %v1266_v22 }
  0x21   : > { %1184 = vmatprep.subr.bf16.mxu1 %v1339_v3 }
  0x22   : > { %1165 = vmatpush3.bf16.msra.mxu0 %v1259_v15 }
  0x23   : > { %1166 = vmatprep.subr.bf16.mxu0 %v1339_v3 }
  0x24   : > { %1185 = vmatpush3.bf16.msra.mxu1 %v1267_v23 }
  0x25   : > { %1186 = vmatprep.subr.bf16.mxu1 %v1339_v3 }
  0x26   : > { %1167 = vmatpush3.bf16.msra.mxu0 %v1260_v16 }
  0x27   : > { %1168 = vmatprep.subr.bf16.mxu0 %v1339_v3 }
  0x28   : > { %1187 = vmatpush3.bf16.msra.mxu1 %v1268_v24 }
  0x29   : > { %1188 = vmatprep.subr.bf16.mxu1 %v1339_v3 }
  0x2a   : > { %1169 = vmatpush3.bf16.msra.mxu0 %v1261_v17 }
  0x2b   : > { %1170 = vmatprep.subr.bf16.mxu0 %v1339_v3 }
  0x2c   : > { %1189 = vmatpush3.bf16.msra.mxu1 %v1269_v46 }
  0x2d   : > { %1190 = vmatprep.subr.bf16.mxu1 %v1339_v3 }
  0x2e   : > { %1171 = vmatpush3.bf16.msra.mxu0 %v1262_v18 }
  0x30   : > { %1191 = vmatpush3.bf16.msra.mxu1 %v1270_v47 }
  0xa9   : > { %v454_v4 = vpop.xlane.xlu0 %453 }
  0xaa   : > { %v458_v5 = vmul.f32 0.0078125, %v454_v4 }
  0xac   : > { %v460_v6 = vsub.f32 %v451_v0, %v458_v5 }
  0xad   : > { %v456_v7 = vpop.xlane.xlu0 %455 }
  0xae   : > { %v459_v8 = vmul.f32 0.0078125, %v456_v7  ;;  %v462_v9 = vmul.f32 %v460_v6, %v460_v6  ;;  %v1347_v7 = vmov 4  }
  0xaf   : > { %1249 = vset.pattern.permute.xlu0 %v1347_v7 }
  0xb0   : > { %v461_v10 = vsub.f32 %v452_v1, %v459_v8  ;;  %464 = vadd.xlane.f32.xlu1 %v462_v9 }
  0xb2   : > { %v463_v11 = vmul.f32 %v461_v10, %v461_v10 }
  0xb4   : > { %466 = vadd.xlane.f32.xlu1 %v463_v11  ;;  %v1348_v11 = vmov 5  }
  0xb5   : > { %1250 = vset.pattern.permute.xlu1 %v1348_v11 }
 0x13d   : > { %v465_v25 = vpop.xlane.xlu1 %464 }
 0x13e   : > { %v468_v26 = vmul.f32 0.0078125, %v465_v25 }
 0x140   : > { %v470_v27 = vadd.f32 1e-05, %v468_v26 }
 0x141   : > { %v467_v28 = vpop.xlane.xlu1 %466 }
 0x142   : > { %1271 = vrsqrt.f32 %v470_v27  ;;  %v469_v29 = vmul.f32 0.0078125, %v467_v28 }
 0x144   : > { %v471_v30 = vadd.f32 1e-05, %v469_v29 }
 0x146   : > { %1273 = vrsqrt.f32 %v471_v30 }
 0x14c   : > { %v1272_v31 = vpop.eup %1271 }
 0x14d   : > { %v474_v33 = vmul.f32 %v1272_v31, %v460_v6 }
 0x14f   : > { %v483_v35 = vmul.f32 %v1112_v32, %v474_v33 }
 0x150   : > { %v1274_v36 = vpop.eup %1273 }
 0x151   : > { %v475_v38 = vmul.f32 %v1274_v36, %v461_v10  ;;  %v492_v39 = vadd.f32 %v1113_v34, %v483_v35 }
 0x153   : > { %v484_v40 = vmul.f32 %v1112_v32, %v475_v38  ;;  %v496_v41 = vadd.f32 %v494_v37, %v492_v39 }
 0x155   : > { %v493_v43 = vadd.f32 %v1113_v34, %v484_v40  ;;  %498 = vst [vmem:[%s435_s16] sm:$0xff] %v496_v41 }
 0x157   : > { %v497_v44 = vadd.f32 %v495_v42, %v493_v43 }
 0x159   : > { %499 = vst [vmem:[%s435_s16 + $0x8] sm:$0xff] %v497_v44  ;;  %v500_v45 = vpack.c.bf16 %v497_v44, %v496_v41  ;;  %s1555_s16 = scalar_lea.vmem [#allocation2], %s1101_s13  ;;  %s1341_s13 = smov 3  }
 0x15b   : > { %1173 = vmatmul.mubr.bf16.vlgmr.msra.gmra.mrb[0].mxu0 %v500_v45 }
 0x22e   : > { %v606_v49 = vpop.f32.mrb[0].mxu0 }
 0x22f   : > { %v607_v50 = vadd.f32 %v1114_v48, %v606_v49  ;;  %v1174_v51 = vpop.f32.mrb[1].mxu0 }
 0x230   : > { %v609_v52 = vpop.f32.mrb[2].mxu0 }
 0x231   : > { %613 = vst [vmem:[%s1555_s16] sm:$0xff] %v607_v50  ;;  %v610_v53 = vadd.f32 %v1114_v48, %v609_v52  ;;  %v1175_v54 = vpop.f32.mrb[3].mxu0 }
 0x233   : > { %614 = vst [vmem:[%s1555_s16 + $0x8] sm:$0xff] %v610_v53  ;;  %v615_v55 = vpack.c.bf16 %v610_v53, %v607_v50 }
 0x235   : > { %1193 = vmatmul.mubr.bf16.vlgmr.msra.gmra.mrb[0].mxu1 %v615_v55 }
 0x308   : > { %v721_v57 = vpop.f32.mrb[0].mxu1 }
 0x309   : > { %v722_v58 = vadd.f32 %v1123_v56, %v721_v57  ;;  %v1194_v59 = vpop.f32.mrb[1].mxu1 }
 0x30a   : > { %v724_v60 = vpop.f32.mrb[2].mxu1 }
 0x30b   : > { %728 = vst [vmem:[%s442_s14] sm:$0xff] %v722_v58  ;;  %v725_v61 = vadd.f32 %v1123_v56, %v724_v60  ;;  %732 = vrot.lane.b32.xlu0 %v722_v58, %s1341_s13  ;;  %v1195_v62 = vpop.f32.mrb[3].mxu1 }
 0x30d   : > { %729 = vst [vmem:[%s442_s14 + $0x8] sm:$0xff] %v725_v61  ;;  %734 = vrot.lane.b32.xlu1 %v725_v61, %s1341_s13  ;;  %s1349_s14 = smov 2   ;;  %s940_s13 = sshll.u32 %s1555_s16, 4  ;;  %s1605_s13 = int_to_ptr.vmem [resolvable:$true] %s940_s13 }
 0x30e   : > { %s1351_s16 = smov [#allocation2]  }
 0x30f   : > { %s1279_s0 = sshll.u32 %s1351_s16, 4  ;;  %s1280_s0 = int_to_ptr.vmem [resolvable:$false] %s1279_s0 }
 0x310   : > { %s1281_s1 = scalar_lea.vmem %s1280_s0, 512  ;;  %p1282_p0 = scmp.lt.s32.totalorder %s1605_s13, %s1280_s0 }
 0x37d   : > { %v733_v63 = vpop.permute.xlu0 %732 }
 0x37e   : > { %v1566_v0 = vsub.f32 %v722_v58, %v733_v63 }
 0x37f   : > { %v735_v1 = vpop.permute.xlu1 %734 }
 0x380   : > { %v1568_v2 = vsub.f32 %v725_v61, %v735_v1  ;;  %750 = vrot.lane.b32.xlu1 %v1566_v0, %s1342_s15  ;;  %v796_v3 = vmul.f32 0.5680283, %v1566_v0  ;;  %v808_v4 = vmul.f32 0.5406747, %v1566_v0 }
 0x382   : > { %752 = vrot.lane.b32.xlu0 %v1568_v2, %s1342_s15  ;;  %v809_v5 = vmul.f32 0.5406747, %v1568_v2  ;;  %v797_v6 = vmul.f32 0.5680283, %v1568_v2 }
 0x384   : > { %776 = vrot.lane.b32.xlu1 %v1566_v0, %s1343_s22 }
 0x386   : > { %742 = vrot.lane.b32.xlu0 %v1566_v0, %s1344_s24 }
 0x388   : > { %778 = vrot.lane.b32.xlu1 %v1568_v2, %s1343_s22 }
 0x38a   : > { %744 = vrot.lane.b32.xlu0 %v1568_v2, %s1344_s24 }
 0x38c   : > { %768 = vrot.lane.b32.xlu1 %v1566_v0, %s1345_s25 }
 0x38e   : > { %800 = vrot.lane.b32.xlu0 %v796_v3, %s1346_s12 }
 0x390   : > { %770 = vrot.lane.b32.xlu1 %v1568_v2, %s1345_s25 }
 0x392   : > { %812 = vrot.lane.b32.xlu0 %v808_v4, %s1342_s15 }
 0x394   : > { %836 = vrot.lane.b32.xlu1 %v796_v3, %s1342_s15 }
 0x396   : > { %814 = vrot.lane.b32.xlu0 %v809_v5, %s1342_s15 }
 0x398   : > { %802 = vrot.lane.b32.xlu1 %v797_v6, %s1346_s12 }
 0x39c   : > { %838 = vrot.lane.b32.xlu1 %v797_v6, %s1342_s15 }
 0x3f2   : > { %v751_v8 = vpop.permute.xlu1 %750 }
 0x3f3   : > { %v756_v9 = vmul.f32 %v751_v8, %v1566_v0 }
 0x3f4   : > { %v753_v10 = vpop.permute.xlu0 %752 }
 0x3f5   : > { %760 = vrot.lane.b32.xlu0 %v756_v9, %s1345_s25  ;;  %v757_v13 = vmul.f32 %v753_v10, %v1568_v2 }
 0x3f6   : > { %v777_v12 = vpop.permute.xlu1 %776 }
 0x3f7   : > { %v782_v14 = vmul.f32 %v777_v12, %v1566_v0 }
 0x3f8   : > { %v743_v17 = vpop.permute.xlu0 %742 }
 0x3f9   : > { %762 = vrot.lane.b32.xlu0 %v757_v13, %s1345_s25  ;;  %786 = vrot.lane.b32.xlu1 %v782_v14, %s1349_s14  ;;  %v748_v26 = vmul.f32 %v743_v17, %v1566_v0 }
 0x3fa   : > { %v779_v15 = vpop.permute.xlu1 %778 }
 0x3fb   : > { %v783_v16 = vmul.f32 %v779_v15, %v1568_v2 }
 0x3fc   : > { %v745_v19 = vpop.permute.xlu0 %744 }
 0x3fd   : > { %820 = vrot.lane.b32.xlu0 %v722_v58, %s1346_s12  ;;  %788 = vrot.lane.b32.xlu1 %v783_v16, %s1349_s14  ;;  %v749_v30 = vmul.f32 %v745_v19, %v1568_v2  ;;  %s1275_s14 = scalar_lea.vmem %s1605_s13, 256 }
 0x3fe   : > { %v769_v18 = vpop.permute.xlu1 %768  ;;  %p1276_p11 = scmp.ne.s32.totalorder %s1605_s13, %s1275_s14  ;;  %p1283_p1 = scmp.lt.s32.totalorder %s1281_s1, %s1275_s14 }
 0x3ff   : > { %v774_v31 = vmul.f32 %v769_v18, %v1566_v0  ;;  %v1350_v0 = vmov 3  }
 0x400   : > { %v801_v21 = vpop.permute.xlu0 %800  ;;  %p1277_p12 = pnand %p1276_p11, %p1452_p5  ;;  %p1284_p2 = por %p1283_p1, %p1282_p0 }
 0x401   : > { %822 = vrot.lane.b32.xlu0 %v725_v61, %s1346_s12  ;;  %844 = vrot.lane.b32.xlu1 %v808_v4, %s1343_s22  ;;  %s1615_s12 = scalar_lea.sflag [#allocation3], %s402_s29 }
 0x402   : > { %v771_v20 = vpop.permute.xlu1 %770  ;;  %p1278_p13 = pneg %p1277_p12 }
 0x403   : > { %v775_v38 = vmul.f32 %v771_v20, %v1568_v2 }
 0x404   : > { %v813_v23 = vpop.permute.xlu0 %812  ;;  %p1285_p3 = pnand %p1284_p2, %p1278_p13 }
 0x405   : > { %852 = vrot.lane.b32.xlu0 %v722_v58, %s1342_s15  ;;  %846 = vrot.lane.b32.xlu1 %v809_v5, %s1343_s22 }
 0x406   : > { %v837_v22 = vpop.permute.xlu1 %836 }
 0x408   : > { %v815_v25 = vpop.permute.xlu0 %814 }
 0x409   : > { %854 = vrot.lane.b32.xlu1 %v725_v61, %s1342_s15  ;;  %s1137_s15 = sshll.u32 %s1435_s21, 8 }
 0x40a   : > { %v803_v24 = vpop.permute.xlu1 %802  ;;  %s1611_s25 = scalar_lea.hbm %s1669_s9, %s1137_s15 }
 0x40e   : > { %v839_v27 = vpop.permute.xlu1 %838 }
 0x467   : > { %v761_v28 = vpop.permute.xlu0 %760 }
 0x468   : > { %v766_v29 = vsub.f32 %v748_v26, %v761_v28 }
 0x46a   : > { %v794_v32 = vmul.f32 -0.5827343, %v766_v29 }
 0x46b   : > { %v763_v33 = vpop.permute.xlu0 %762  ;;  %v787_v34 = vpop.permute.xlu1 %786 }
 0x46c   : > { %v806_v35 = vadd.f32 %v801_v21, %v794_v32  ;;  %v767_v36 = vsub.f32 %v749_v30, %v763_v33  ;;  %v792_v37 = vsub.f32 %v774_v31, %v787_v34  ;;  %v842_v59 = vadd.f32 %v837_v22, %v794_v32 }
 0x46e   : > { %v795_v39 = vmul.f32 -0.5827343, %v767_v36  ;;  %v828_v40 = vmul.f32 -0.5827343, %v792_v37  ;;  %v818_v41 = vsub.f32 %v806_v35, %v813_v23 }
 0x46f   : > { %v821_v42 = vpop.permute.xlu0 %820  ;;  %v789_v43 = vpop.permute.xlu1 %788 }
 0x470   : > { %v830_v44 = vadd.f32 %v828_v40, %v801_v21  ;;  %v826_v45 = vadd.f32 %v821_v42, %v818_v41  ;;  %v793_v46 = vsub.f32 %v775_v38, %v789_v43  ;;  %v807_v47 = vadd.f32 %v803_v24, %v795_v39 }
 0x471   : > { %v843_v63 = vadd.f32 %v839_v27, %v795_v39 }
 0x472   : > { %v832_v48 = vsub.f32 %v830_v44, %v813_v23  ;;  %v829_v49 = vmul.f32 -0.5827343, %v793_v46  ;;  %865 = vperm.xlu0 %1249, %v826_v45   ;;  %v819_v54 = vsub.f32 %v807_v47, %v815_v25 }
 0x473   : > { %v845_v50 = vpop.permute.xlu1 %844  ;;  %v823_v53 = vpop.permute.xlu0 %822 }
 0x474   : > { %v834_v51 = vadd.f32 %v832_v48, %v821_v42  ;;  %v831_v52 = vadd.f32 %v829_v49, %v803_v24  ;;  %v827_v57 = vadd.f32 %v823_v53, %v819_v54  ;;  %v850_v61 = vsub.f32 %v842_v59, %v845_v50 }
 0x476   : > { %v833_v55 = vsub.f32 %v831_v52, %v815_v25  ;;  %878 = vperm.xlu1 %1250, %v834_v51   ;;  %1252 = vset.pattern.permute.xlu0 %v1348_v11 }
 0x477   : > { %v847_v58 = vpop.permute.xlu1 %846  ;;  %v853_v60 = vpop.permute.xlu0 %852 }
 0x478   : > { %v835_v56 = vadd.f32 %v833_v55, %v823_v53  ;;  %v858_v62 = vadd.f32 %v853_v60, %v850_v61  ;;  %v851_v2 = vsub.f32 %v843_v63, %v847_v58 }
 0x47a   : > { %1251 = vset.pattern.permute.xlu1 %v1347_v7  ;;  %883 = vperm.xlu0 %1252, %v835_v56  }
 0x47b   : > { %870 = vperm.xlu1 %1251, %v827_v57   ;;  %v855_v1 = vpop.permute.xlu1 %854 }
 0x47c   : > { %v859_v3 = vadd.f32 %v855_v1, %v851_v2 }
 0x47e   : > { %1254 = vset.pattern.permute.xlu0 %v1350_v0 }
 0x47f   : > { %1253 = vset.pattern.permute.xlu1 %v1350_v0 }
 0x480   : > { %893 = vperm.xlu1 %1253, %v858_v62  }
 0x484   : > { %898 = vperm.xlu1 %1253, %v859_v3  }
 0x485   : > { %1288 = shalt.err (!%p1285_p3)
}
 0x486   : > { %s1289_s21 = scalar_lea.hbm %s1611_s25, 256  ;;  %s1293_s22 = scalar_lea.hbm %s1669_s9, 512 }
 0x487   : > { %p1290_p4 = scmp.ne.s32.totalorder %s1611_s25, %s1289_s21  ;;  %p1294_p9 = scmp.lt.u32.totalorder %s1611_s25, %s1669_s9 }
 0x488   : > { %p1295_p10 = scmp.lt.u32.totalorder %s1293_s22, %s1289_s21  ;;  %p1297_p12 = scmp.lt.u32.totalorder %s1289_s21, %s1611_s25 }
 0x489   : > { %p1291_p7 = pnand %p1290_p4, %p1452_p5 }
 0x48a   : > { %p1296_p11 = por %p1295_p10, %p1294_p9 }
 0x48b   : > { %p1292_p8 = pneg %p1291_p7 }
 0x48c   : > { %p1298_p13 = por %p1297_p12, %p1296_p11 }
 0x48e   : > { %p1299_p0 = pnand %p1298_p13, %p1292_p8 }
 0x490   : > { %1302 = shalt.err (!%p1299_p0)
}
 0x491   : > { %s1352_s1 = smov 128   ;;  %s1353_s14 = smov 8   ;;  %v860_v4 = vlaneseq }
 0x492   : > { %1196 = dma.vmem_to_hbm [thread:$0]  (%p1452_p5), %s1605_s13, 256, %s1611_s25, %s1615_s12, %s1352_s1, %s1352_s1, %s1353_s14  }
 0x493   : > { %v861_v6 = vand.u32 127, %v860_v4  ;;  %s448_s27 = scalar_lea.vmem %s1671_s11, %s1463_s30 }
 0x495   : > { %vm875_vm1 = vcmp.eq.s32.totalorder %v861_v6, 1  ;;  %vm862_vm2 = vcmp.eq.s32.totalorder %v861_v6, 0  ;;  %vm890_vm3 = vcmp.eq.s32.totalorder %v861_v6, 2 }
 0x4f1   : > { %v866_v7 = vpop.permute.xlu0 %865 }
 0x4f2   : > { %v873_v11 = vsel %vm862_vm2, %v866_v7, 0.0 }
 0x4f5   : > { %v879_v5 = vpop.permute.xlu1 %878 }
 0x4f6   : > { %v886_v9 = vsel %vm875_vm1, %v879_v5, 0.0 }
 0x4f7   : > { %v888_v12 = vadd.f32 %v886_v9, %v873_v11 }
 0x4f9   : > { %v884_v10 = vpop.permute.xlu0 %883 }
 0x4fa   : > { %v871_v8 = vpop.permute.xlu1 %870  ;;  %v887_v14 = vsel %vm875_vm1, %v884_v10, 0.0 }
 0x4fb   : > { %v874_v15 = vsel %vm862_vm2, %v871_v8, 0.0 }
 0x4fc   : > { %v889_v18 = vadd.f32 %v887_v14, %v874_v15 }
 0x4ff   : > { %v894_v13 = vpop.permute.xlu1 %893 }
 0x500   : > { %v901_v16 = vsel %vm890_vm3, %v894_v13, 0.0 }
 0x501   : > { %v903_v17 = vadd.f32 %v901_v16, %v888_v12 }
 0x503   : > { %905 = vst [vmem:[%s448_s27] sm:$0xff] %v903_v17  ;;  %v899_v19 = vpop.permute.xlu1 %898 }
 0x504   : > { %v902_v20 = vsel %vm890_vm3, %v899_v19, 0.0 }
 0x505   : > { %v904_v21 = vadd.f32 %v902_v20, %v889_v18 }
 0x507   : > { %906 = vst [vmem:[%s448_s27 + $0x8] sm:$0xff] %v904_v21 }
 0x508 PF: > { %p1202_p5 = scmp.ge.s32.totalorder %s1337_s20, 2  ;;  %s971_s13 = sand.u32 1, %s1325_s17  }
 0x509   : > { %s972_s25 = scalar_lea.sflag [#allocation3], %s971_s13 }
 0x50a   : > { %p1199_p1 = pnand %p1202_p5, %p1456_p6 }
 0x50c   : > { %1320 = dma.done.wait (!%p1199_p1), %s972_s25, 256  }
 0x50d   : > { %1322 = vsyncadd (!%p1199_p1), %s972_s25, 4294967040  ;;  %p22_p2 = scmp.ge.s32.totalorder %s1439_s23, 4   ;;  %s1678_s17 = smov %s1329_s18 }
 0x50e   : > { %s1679_s18 = smov %s1333_s19  ;;  %s1680_s19 = smov %s1450_s26 }
 0x50f   : > { %s1681_s20 = smov %s1439_s23  ;;  %24 = sbr.rel (!%p22_p2) target bundleno = 6 (0x6), region = 126 }
 0x516   :  { %993 = vsyncpa [#allocation3], 1 }
 0x517   :  { %995 = vsyncpa [#allocation3 + $0x1], 1 }

// kernel: folding_trunk_forward.7
= control target key start
LH: loop header
LB: loop body
LE: loop exit
PB: predicated region body
PF: predicated region fallthrough
CT: control target
= control target key end

     0   :  { %16 = vsyncpa [#allocation3], 0  ;;  %s2676_s0 = inlined_call_operand.vmem [shape: f32[2,16,16,128], index: 0, kind: input, shape index: {}, may-alias: {0,9}]   ;;  %s2677_s1 = inlined_call_operand.vmem [shape: f32[2,16,16,128], index: 1, kind: input, shape index: {}]   ;;  %s2678_s2 = inlined_call_operand.vmem [shape: f32[2,16,128], index: 2, kind: input, shape index: {}]   ;;  %s2679_s3 = inlined_call_operand.vmem [shape: f32[2,8,16], index: 3, kind: input, shape index: {}]   ;;  %s2680_s4 = inlined_call_operand.vmem [shape: f32[1,1,128], index: 4, kind: input, shape index: {}]   ;;  %s2681_s5 = inlined_call_operand.vmem [shape: f32[1,1,128], index: 5, kind: input, shape index: {}]   ;;  %s2682_s6 = inlined_call_operand.vmem [shape: f32[15,128], index: 6, kind: input, shape index: {}]   ;;  %s2683_s7 = inlined_call_operand.vmem [shape: bf16[128,128], index: 7, kind: input, shape index: {}]   ;;  %s2684_s8 = inlined_call_operand.vmem [shape: f32[1,1,128], index: 8, kind: input, shape index: {}]   ;;  %s2685_s9 = inlined_call_operand.vmem [shape: f32[2,16,16,128], index: 9, kind: output, shape index: {0}, may-alias: {0,9}]   ;;  %s2686_s10 = inlined_call_operand.hbm [shape: f32[2,16,16,128], index: 10, kind: output, shape index: {1}]  }
   0x1   :  { %18 = vsyncpa [#allocation3 + $0x1], 0  ;;  %s2094_s13 = smov 0   ;;  %s2096_s14 = smov 0  }
   0x2   :  { %s2098_s15 = smov 0   ;;  %s2100_s16 = smov 0  }
   0x3   :  { %s2102_s17 = smov 0   ;;  %s2104_s18 = smov 0  }
   0x4   :  { %s2106_s19 = smov 0   ;;  %s2108_s20 = smov 0  }
   0x5 LB: > { %2691 = sst [smem:[#allocation5_spill]] %s2021_s18  ;;  %s1624_s21 = sadd.s32 4294967295, %s2029_s20   ;;  %s2029_s20 = sphi %s2108_s20, %s24_s20   ;;  %s2025_s19 = sphi %s2106_s19, %s2700_s19   ;;  %s2021_s18 = sphi %s2104_s18, %s2699_s18   ;;  %s2017_s17 = sphi %s2102_s17, %s2698_s17   ;;  %s2013_s16 = sphi %s2100_s16, %s2697_s16   ;;  %s2009_s15 = sphi %s2098_s15, %s2703_s15   ;;  %s2005_s14 = sphi %s2096_s14, %s2702_s14   ;;  %s2001_s13 = sphi %s2094_s13, %s2701_s13  }
   0x6   : > { %2692 = sst [smem:[#allocation6_spill]] %s2025_s19  ;;  %s1625_s22 = sadd.s32 4294967294, %s2029_s20  }
   0x7   : > { %s33_s23 = sadd.s32 1, %s2021_s18  ;;  %s36_s24 = sadd.s32 1, %s2025_s19 }
   0x8   : > { %p34_p0 = scmp.ge.s32.totalorder %s33_s23, 2  ;;  %p298_p1 = scmp.ne.s32.totalorder %s2009_s15, %s2005_s14 }
   0x9   : > { %p299_p2 = scmp.eq.s32.totalorder %s1624_s21, 3  ;;  %p304_p5 = scmp.ne.s32.totalorder %s2005_s14, %s2001_s13 }
   0xa   : > { %s2705_s23 = smov (%p34_p0, %s33_s23), 0  ;;  %s2707_s24 = smov (!%p34_p0, %s36_s24), %s2025_s19 }
   0xb   : > { %2693 = sst [smem:[#allocation7_spill]] %s2705_s23  ;;  %s284_s25 = ssub.s32 %s2021_s18, %s2705_s23 }
   0xc   : > { %p2145_p3 = por %p299_p2, %p298_p1  ;;  %p38_p4 = scmp.ge.s32.totalorder %s2707_s24, 2 }
   0xd   : > { %p305_p6 = scmp.eq.s32.totalorder %s1625_s22, 3  ;;  %p1628_p7 = scmp.ge.s32.totalorder %s2029_s20, 1 }
   0xe   : > { %s2709_s24 = smov (%p38_p4, %s2707_s24), 0  ;;  %p384_p9 = scmp.lt.s32.totalorder %s2029_s20, 5 }
   0xf   : > { %2695 = sst [smem:[#allocation8_spill]] %s2709_s24  ;;  %p2154_p8 = por %p305_p6, %p304_p5 }
  0x10   : > { %s283_s28 = ssub.s32 %s2025_s19, %s2709_s24  ;;  %s288_s29 = sadd.s32 1, %s2009_s15 }
  0x11   : > { %s285_s30 = sor.u32 %s284_s25, %s283_s28  ;;  %p385_p10 = pnand %p1628_p7, %p384_p9 }
  0x12   : > { %p286_p11 = scmp.eq.s32.totalorder %s285_s30, 0  ;;  %p460_p12 = scmp.lt.s32.totalorder (!%p385_p10), %s2017_s17, 1  ;;  %v2031_v0 = vmov (!%p385_p10), 0   ;;  %v2032_v1 = vmov (!%p385_p10), 2   ;;  %v2033_v3 = vmov (!%p385_p10), 1   ;;  %v752_v4 = vlaneseq (!%p385_p10)  ;;  %v959_v43 = vld [vmem:[%s2682_s6] sm:$0xff] (!%p385_p10) }
  0x13   : > { %388 = sbr.rel (%p385_p10) target bundleno = 849 (0x351), region = 56  ;;  %p483_p13 = scmp.lt.s32.totalorder (!%p385_p10), %s2013_s16, 1  ;;  %1891 = vset.pattern.permute.xlu0 (!%p385_p10), %v2031_v0  ;;  %1893 = vset.pattern.permute.xlu1 (!%p385_p10), %v2032_v1  ;;  %v960_v44 = vld [vmem:[%s2682_s6 + $0x8] sm:$0x7f] (!%p385_p10)  ;;  %vm1010_vm12 = vcmask (!%p385_p10), 1046528   ;;  %vm2034_vm13 = vmmov (!%p385_p10), 1  }
  0x14   : > { %s2163_s11 = scalar_select %p286_p11, %s2009_s15, %s288_s29  }
  0x15   : > { %v2178_v5 = vshrl.u32 (!%p385_p10), %v752_v4, 7  ;;  %v1791_v46 = vpack.c.bf16 (!%p385_p10), %v960_v44, %v959_v43  ;;  %vm1792_vm14 = vmpackc.low (!%p385_p10), %vm1010_vm12, %vm2034_vm13  ;;  %s2036_s18 = smov (!%p385_p10), [#allocation2]  }
  0x17   : > { %v754_v6 = vsub.s32 (!%p385_p10), 0, %v2178_v5  ;;  %v772_v7 = vsub.s32 (!%p385_p10), 2, %v2178_v5  ;;  %v763_v9 = vsub.s32 (!%p385_p10), 1, %v2178_v5  ;;  %1793 = vmatprep.subr.msk.bf16.mxu0 (!%p385_p10), %vm1792_vm14, %v1791_v46  ;;  %v858_v57 = vsub.s32 (!%p385_p10), 3, %v2178_v5 }
  0x18   : > { %1796 = vmatpush3.bf16.msk.msra.mxu0 (!%p385_p10), %vm1792_vm14, %v1791_v46  ;;  %v869_v59 = vsub.s32 (!%p385_p10), 4, %v2178_v5  ;;  %v880_v61 = vsub.s32 (!%p385_p10), 5, %v2178_v5  ;;  %v891_v63 = vsub.s32 (!%p385_p10), 6, %v2178_v5 }
  0x1a   : > { %s2169_s12 = scalar_select %p460_p12, %s2017_s17, 1 }
  0x1b   : > { %s484_s21 = scalar_select %p483_p13, %s2013_s16, 1 }
  0x1c   : > { %s1638_s22 = sshll.u32 %s2169_s12, 1  ;;  %s1640_s23 = sshll.u32 %s2169_s12, 3 }
  0x1d   : > { %s486_s25 = sadd.s32 %s1638_s22, %s484_s21  ;;  %s492_s21 = scalar_lea.vmem %s2679_s3, %s1640_s23 }
  0x1e   : > { %s1639_s28 = sshll.u32 %s486_s25, 3  ;;  %v746_v8 = vld [vmem:[%s492_s21] sm:$0xff]  ;;  %s1630_s22 = sshll.u32 %s2013_s16, 3 }
  0x1f   : > { %s488_s24 = scalar_lea.vmem %s2678_s2, %s1639_s28  ;;  %v755_v10 = vrot.slane %v746_v8, %v754_v6  ;;  %v773_v12 = vrot.slane %v746_v8, %v772_v7  ;;  %v764_v14 = vrot.slane %v746_v8, %v763_v9  ;;  %p462_p0 = scmp.lt.s32.totalorder %s1630_s22, 15 }
  0x20   : > { %v745_v2 = vld [vmem:[%s488_s24] sm:$0xff]  ;;  %s1632_s28 = sshll.u32 %s2169_s12, 5  ;;  %s1692_s23 = sshll.u32 %s2017_s17, 5 }
  0x21   : > { %749 = vperm.xlu0 %1891, %v745_v2   ;;  %767 = vperm.xlu1 %1893, %v745_v2   ;;  %s2711_s22 = smov (!%p462_p0, %s1630_s22), 15 }
  0x22   : > { %s1631_s25 = sshll.u32 %s2711_s22, 1 }
  0x23   : > { %s466_s29 = sadd.s32 %s1632_s28, %s1631_s25 }
  0x24   : > { %s2225_s30 = sshll.u32 %s466_s29, 3 }
  0x25   : > { %1892 = vset.pattern.permute.xlu0 %v2033_v3  ;;  %s2231_s19 = scalar_lea.vmem %s2676_s0, %s2225_s30  ;;  %s2469_s12 = scalar_lea.vmem %s2677_s1, %s2225_s30 }
  0x26   : > { %758 = vperm.xlu0 %1892, %v745_v2   ;;  %v2234_v3 = vld [vmem:[%s2231_s19 + $0x20] sm:$0xff]  ;;  %v2249_v8 = vld [vmem:[%s2231_s19 + $0x28] sm:$0xff]  ;;  %s2490_s28 = scalar_lea.vmem %s2685_s9, %s2225_s30  ;;  %s456_s30 = sand.u32 1, %s2005_s14  }
  0x27   : > { %s1629_s29 = sshll.u32 %s456_s30, 7 }
  0x2a   : > { %1894 = vset.pattern.permute.xlu0 %v2032_v1  ;;  %v902_v1 = vsub.s32 7, %v2178_v5  ;;  %v2238_v5 = vld [vmem:[%s2231_s19 + $0x30] sm:$0xff] }
  0xa0   : > { %v750_v11 = vpop.permute.xlu0 %749  ;;  %v768_v13 = vpop.permute.xlu1 %767 }
  0xa1   : > { %v756_v15 = vsub.f32 %v750_v11, %v755_v10  ;;  %v774_v16 = vsub.f32 %v768_v13, %v773_v12  ;;  %v2257_v10 = vld [vmem:[%s2231_s19 + $0x40] sm:$0xff]  ;;  %v2261_v11 = vld [vmem:[%s2231_s19 + $0x8] sm:$0xff]  ;;  %v2265_v12 = vld [vmem:[%s2231_s19 + $0x50] sm:$0xff] }
  0xa2   : > { %v2269_v13 = vld [vmem:[%s2231_s19 + $0x68] sm:$0xff] }
  0xa3   : > { %v775_v19 = vmul.f32 %v756_v15, %v756_v15  ;;  %v778_v21 = vmul.f32 %v774_v16, %v774_v16  ;;  %v2277_v15 = vld [vmem:[%s2231_s19 + $0x18] sm:$0xff]  ;;  %v2281_v16 = vld [vmem:[%s2231_s19 + $0x60] sm:$0xff] }
  0xa5   : > { %v759_v17 = vpop.permute.xlu0 %758 }
  0xa6   : > { %v765_v18 = vsub.f32 %v759_v17, %v764_v14  ;;  %v2273_v14 = vld [vmem:[%s2231_s19] sm:$0xff]  ;;  %v2285_v17 = vld [vmem:[%s2231_s19 + $0x78] sm:$0xff] }
  0xa8   : > { %v776_v20 = vmul.f32 %v765_v18, %v765_v18  ;;  %v2289_v18 = vld [vmem:[%s2231_s19 + $0x10] sm:$0xff] }
  0xaa   : > { %v777_v22 = vadd.f32 %v776_v20, %v775_v19  ;;  %v2294_v19 = vld [vmem:[%s2231_s19 + $0x70] sm:$0xff]  ;;  %v2298_v20 = vand.u32 127, %v752_v4 }
  0xac   : > { %v779_v23 = vadd.f32 %v778_v21, %v777_v22 }
  0xae   : > { %vm780_vm0 = vcmp.gt.f32.partialorder %v779_v23, 11.390625  ;;  %vm782_vm1 = vcmp.gt.f32.partialorder %v779_v23, 22.653938  ;;  %vm785_vm2 = vcmp.gt.f32.partialorder %v779_v23, 37.75157 }
  0xaf   : > { %v781_v24 = vsel %vm780_vm0, 1, %v2031_v0  ;;  %v783_v25 = vsel %vm782_vm1, 1, %v2031_v0  ;;  %vm788_vm3 = vcmp.gt.f32.partialorder %v779_v23, 56.683525  ;;  %v786_v27 = vsel %vm785_vm2, 1, %v2031_v0 }
  0xb0   : > { %v784_v26 = vadd.s32 %v783_v25, %v781_v24  ;;  %vm791_vm4 = vcmp.gt.f32.partialorder %v779_v23, 79.4498  ;;  %v789_v29 = vsel %vm788_vm3, 1, %v2031_v0  ;;  %vm794_vm5 = vcmp.gt.f32.partialorder %v779_v23, 106.050385 }
  0xb1   : > { %v792_v31 = vsel %vm791_vm4, 1, %v2031_v0  ;;  %vm797_vm6 = vcmp.gt.f32.partialorder %v779_v23, 136.4853  ;;  %v795_v33 = vsel %vm794_vm5, 1, %v2031_v0  ;;  %vm800_vm7 = vcmp.gt.f32.partialorder %v779_v23, 170.75453 }
  0xb2   : > { %v787_v28 = vadd.s32 %v786_v27, %v784_v26  ;;  %v798_v35 = vsel %vm797_vm6, 1, %v2031_v0  ;;  %vm803_vm8 = vcmp.gt.f32.partialorder %v779_v23, 208.85808  ;;  %v801_v37 = vsel %vm800_vm7, 1, %v2031_v0 }
  0xb3   : > { %vm806_vm9 = vcmp.gt.f32.partialorder %v779_v23, 250.79594  ;;  %v804_v39 = vsel %vm803_vm8, 1, %v2031_v0  ;;  %vm809_vm10 = vcmp.gt.f32.partialorder %v779_v23, 296.56815  ;;  %vm961_vm1 = vcmask 121856  }
  0xb4   : > { %v790_v30 = vadd.s32 %v789_v29, %v787_v28  ;;  %v807_v41 = vsel %vm806_vm9, 1, %v2031_v0  ;;  %vm812_vm11 = vcmp.gt.f32.partialorder %v779_v23, 346.17465  ;;  %v810_v45 = vsel %vm809_vm10, 1, %v2031_v0 }
  0xb5   : > { %vm815_vm15 = vcmp.gt.f32.partialorder %v779_v23, 399.61548  ;;  %v813_v48 = vsel %vm812_vm11, 1, %v2031_v0  ;;  %vm818_vm0 = vcmp.gt.f32.partialorder %v779_v23, 456.89063  ;;  %v2035_v23 = vmov 0.0  }
  0xb6   : > { %v793_v32 = vadd.s32 %v792_v31, %v790_v30  ;;  %v816_v50 = vsel %vm815_vm15, 1, %v2031_v0  ;;  %v819_v52 = vsel %vm818_vm0, 1, %v2031_v0 }
  0xb8   : > { %v796_v34 = vadd.s32 %v795_v33, %v793_v32 }
  0xba   : > { %v799_v36 = vadd.s32 %v798_v35, %v796_v34 }
  0xbc   : > { %v802_v38 = vadd.s32 %v801_v37, %v799_v36 }
  0xbe   : > { %v805_v40 = vadd.s32 %v804_v39, %v802_v38 }
  0xc0   : > { %v808_v42 = vadd.s32 %v807_v41, %v805_v40 }
  0xc2   : > { %v811_v47 = vadd.s32 %v810_v45, %v808_v42 }
  0xc4   : > { %v814_v49 = vadd.s32 %v813_v48, %v811_v47 }
  0xc6   : > { %v817_v51 = vadd.s32 %v816_v50, %v814_v49 }
  0xc8   : > { %v820_v53 = vadd.s32 %v819_v52, %v817_v51 }
  0xca   : > { %v837_v54 = vrot.slane %v820_v53, %v763_v9  ;;  %v826_v55 = vrot.slane %v820_v53, %v754_v6  ;;  %v848_v56 = vrot.slane %v820_v53, %v772_v7  ;;  %v859_v58 = vrot.slane %v820_v53, %v858_v57  ;;  %v2242_v6 = vld [vmem:[%s2231_s19 + $0x38] sm:$0xff]  ;;  %v2246_v7 = vld [vmem:[%s2231_s19 + $0x48] sm:$0xff] }
  0xcb   : > { %v870_v60 = vrot.slane %v820_v53, %v869_v59  ;;  %v881_v62 = vrot.slane %v820_v53, %v880_v61  ;;  %v892_v0 = vrot.slane %v820_v53, %v891_v63  ;;  %v903_v2 = vrot.slane %v820_v53, %v902_v1  ;;  %v2253_v9 = vld [vmem:[%s2231_s19 + $0x58] sm:$0xff]  ;;  %s2594_s19 = scalar_lea.vmem [#allocation2], %s1629_s29  ;;  %s2624_s29 = scalar_lea.sflag [#allocation3], %s456_s30 }
  0xcc   : > { %839 = vbcast.lane.b32.xlu0 %v837_v54, 256  ;;  %828 = vbcast.lane.b32.xlu1 %v826_v55, 256 }
  0xd0   : > { %850 = vbcast.lane.b32.xlu0 %v848_v56, 256  ;;  %832 = vbcast.lane.b32.xlu1 %v826_v55, 264 }
  0xd4   : > { %861 = vbcast.lane.b32.xlu0 %v859_v58, 256  ;;  %843 = vbcast.lane.b32.xlu1 %v837_v54, 264 }
  0xd8   : > { %872 = vbcast.lane.b32.xlu0 %v870_v60, 256  ;;  %854 = vbcast.lane.b32.xlu1 %v848_v56, 264 }
  0xdc   : > { %883 = vbcast.lane.b32.xlu0 %v881_v62, 256  ;;  %865 = vbcast.lane.b32.xlu1 %v859_v58, 264 }
  0xe0   : > { %894 = vbcast.lane.b32.xlu0 %v892_v0, 256  ;;  %876 = vbcast.lane.b32.xlu1 %v870_v60, 264 }
  0xe4   : > { %905 = vbcast.lane.b32.xlu0 %v903_v2, 256  ;;  %887 = vbcast.lane.b32.xlu1 %v881_v62, 264 }
  0xe8   : > { %898 = vbcast.lane.b32.xlu1 %v892_v0, 264 }
  0xec   : > { %909 = vbcast.lane.b32.xlu1 %v903_v2, 264 }
 0x103   : > { %530 = vadd.xlane.f32.xlu0 %v2234_v3 }
 0x107   : > { %534 = vadd.xlane.f32.xlu0 %v2238_v5 }
 0x10b   : > { %536 = vadd.xlane.f32.xlu0 %v2242_v6 }
 0x10f   : > { %540 = vadd.xlane.f32.xlu0 %v2246_v7 }
 0x110   : > { %532 = vadd.xlane.f32.xlu1 %v2249_v8 }
 0x113   : > { %544 = vadd.xlane.f32.xlu0 %v2253_v9 }
 0x114   : > { %538 = vadd.xlane.f32.xlu1 %v2257_v10 }
 0x117   : > { %524 = vadd.xlane.f32.xlu0 %v2261_v11 }
 0x118   : > { %542 = vadd.xlane.f32.xlu1 %v2265_v12 }
 0x11b   : > { %548 = vadd.xlane.f32.xlu0 %v2269_v13 }
 0x11c   : > { %522 = vadd.xlane.f32.xlu1 %v2273_v14 }
 0x11f   : > { %528 = vadd.xlane.f32.xlu0 %v2277_v15 }
 0x120   : > { %546 = vadd.xlane.f32.xlu1 %v2281_v16 }
 0x123   : > { %552 = vadd.xlane.f32.xlu0 %v2285_v17 }
 0x124   : > { %526 = vadd.xlane.f32.xlu1 %v2289_v18 }
 0x128   : > { %550 = vadd.xlane.f32.xlu1 %v2294_v19 }
 0x13e   : > { %v840_v21 = vpop.permute.xlu0 %839  ;;  %v829_v22 = vpop.permute.xlu1 %828 }
 0x13f   : > { %vm911_vm2 = vcmp.eq.s32.totalorder %v829_v22, %v2298_v20  ;;  %vm913_vm3 = vcmp.eq.s32.totalorder %v840_v21, %v2298_v20 }
 0x140   : > { %v1647_v24 = vsel %vm911_vm2, 1.0, %v2035_v23  ;;  %v1649_v28 = vsel %vm913_vm3, 1.0, %v2035_v23 }
 0x141   : > { %1735 = vmatprep.mubr.msk.f32.mxu0 %vm961_vm1, %v1647_v24 }
 0x142   : > { %v851_v25 = vpop.permute.xlu0 %850  ;;  %v833_v26 = vpop.permute.xlu1 %832 }
 0x143   : > { %vm912_vm4 = vcmp.eq.s32.totalorder %v833_v26, %v2298_v20  ;;  %vm915_vm5 = vcmp.eq.s32.totalorder %v851_v25, %v2298_v20 }
 0x144   : > { %v1648_v27 = vsel %vm912_vm4, 1.0, %v2035_v23  ;;  %v1651_v31 = vsel %vm915_vm5, 1.0, %v2035_v23 }
 0x145   : > { %1736 = vmatmul.mubr.msk.f32.vlgmr.msra.gmra.mrb[0].mxu0 %vm961_vm1, %v1648_v27 }
 0x146   : > { %v862_v4 = vpop.permute.xlu0 %861  ;;  %1738 = vmatprep.mubr.msk.f32.mxu0 %vm961_vm1, %v1649_v28  ;;  %v844_v29 = vpop.permute.xlu1 %843 }
 0x147   : > { %vm914_vm6 = vcmp.eq.s32.totalorder %v844_v29, %v2298_v20  ;;  %vm917_vm7 = vcmp.eq.s32.totalorder %v862_v4, %v2298_v20 }
 0x148   : > { %v1650_v30 = vsel %vm914_vm6, 1.0, %v2035_v23  ;;  %v1653_v35 = vsel %vm917_vm7, 1.0, %v2035_v23 }
 0x149   : > { %1739 = vmatmul.mubr.msk.f32.gmra.mrb[2].mxu0 %vm961_vm1, %v1650_v30 }
 0x14a   : > { %v873_v32 = vpop.permute.xlu0 %872  ;;  %1741 = vmatprep.mubr.msk.f32.mxu0 %vm961_vm1, %v1651_v31  ;;  %v855_v33 = vpop.permute.xlu1 %854 }
 0x14b   : > { %vm916_vm8 = vcmp.eq.s32.totalorder %v855_v33, %v2298_v20  ;;  %vm919_vm9 = vcmp.eq.s32.totalorder %v873_v32, %v2298_v20 }
 0x14c   : > { %v1652_v34 = vsel %vm916_vm8, 1.0, %v2035_v23  ;;  %v1655_v39 = vsel %vm919_vm9, 1.0, %v2035_v23 }
 0x14d   : > { %1742 = vmatmul.mubr.msk.f32.gmra.mrb[4].mxu0 %vm961_vm1, %v1652_v34 }
 0x14e   : > { %v884_v36 = vpop.permute.xlu0 %883  ;;  %1744 = vmatprep.mubr.msk.f32.mxu0 %vm961_vm1, %v1653_v35  ;;  %v866_v37 = vpop.permute.xlu1 %865 }
 0x14f   : > { %vm918_vm10 = vcmp.eq.s32.totalorder %v866_v37, %v2298_v20  ;;  %vm921_vm11 = vcmp.eq.s32.totalorder %v884_v36, %v2298_v20 }
 0x150   : > { %v1654_v38 = vsel %vm918_vm10, 1.0, %v2035_v23  ;;  %v1657_v43 = vsel %vm921_vm11, 1.0, %v2035_v23 }
 0x151   : > { %1745 = vmatmul.mubr.msk.f32.gmra.mrb[6].mxu0 %vm961_vm1, %v1654_v38 }
 0x152   : > { %v895_v40 = vpop.permute.xlu0 %894  ;;  %1747 = vmatprep.mubr.msk.f32.mxu0 %vm961_vm1, %v1655_v39  ;;  %v877_v41 = vpop.permute.xlu1 %876 }
 0x153   : > { %vm920_vm12 = vcmp.eq.s32.totalorder %v877_v41, %v2298_v20  ;;  %vm923_vm13 = vcmp.eq.s32.totalorder %v895_v40, %v2298_v20 }
 0x154   : > { %v1656_v42 = vsel %vm920_vm12, 1.0, %v2035_v23  ;;  %v1659_v47 = vsel %vm923_vm13, 1.0, %v2035_v23 }
 0x155   : > { %1748 = vmatmul.mubr.msk.f32.gmra.mrb[8].mxu0 %vm961_vm1, %v1656_v42 }
 0x156   : > { %1750 = vmatprep.mubr.msk.f32.mxu0 %vm961_vm1, %v1657_v43  ;;  %v888_v44 = vpop.permute.xlu1 %887  ;;  %v906_v45 = vpop.permute.xlu0 %905 }
 0x157   : > { %vm922_vm14 = vcmp.eq.s32.totalorder %v888_v44, %v2298_v20  ;;  %vm925_vm15 = vcmp.eq.s32.totalorder %v906_v45, %v2298_v20 }
 0x158   : > { %v1658_v46 = vsel %vm922_vm14, 1.0, %v2035_v23  ;;  %v1661_v50 = vsel %vm925_vm15, 1.0, %v2035_v23 }
 0x159   : > { %1751 = vmatmul.mubr.msk.f32.gmra.mrb[10].mxu0 %vm961_vm1, %v1658_v46 }
 0x15a   : > { %1753 = vmatprep.mubr.msk.f32.mxu0 %vm961_vm1, %v1659_v47  ;;  %v899_v48 = vpop.permute.xlu1 %898 }
 0x15b   : > { %vm924_vm0 = vcmp.eq.s32.totalorder %v899_v48, %v2298_v20 }
 0x15c   : > { %v1660_v49 = vsel %vm924_vm0, 1.0, %v2035_v23 }
 0x15d   : > { %1754 = vmatmul.mubr.msk.f32.gmra.mrb[12].mxu0 %vm961_vm1, %v1660_v49 }
 0x15e   : > { %1756 = vmatprep.mubr.msk.f32.mxu0 %vm961_vm1, %v1661_v50  ;;  %v910_v51 = vpop.permute.xlu1 %909 }
 0x15f   : > { %vm926_vm2 = vcmp.eq.s32.totalorder %v910_v51, %v2298_v20 }
 0x160   : > { %v1662_v52 = vsel %vm926_vm2, 1.0, %v2035_v23 }
 0x161   : > { %1757 = vmatmul.mubr.msk.f32.gmra.mrb[14].mxu0 %vm961_vm1, %v1662_v52  ;;  %v1895_v52 = vld [vmem:[%s2683_s7] sm:$0xff]  }
 0x162   : > { %1797 = vmatprep.subr.bf16.mxu1 %v1895_v52  ;;  %1759 = vmatprep.subr.bf16.mxu0 %v1895_v52 }
 0x163   : > { %1805 = vmatpush3.bf16.msra.mxu1 %v1895_v52  ;;  %1760 = vmatpush3.bf16.msra.mxu0 %v1895_v52 }
 0x190   : > { %v531_v53 = vpop.xlane.xlu0 %530 }
 0x191   : > { %v559_v54 = vmul.f32 0.0078125, %v531_v53 }
 0x193   : > { %v2333_v55 = vsub.f32 %v2234_v3, %v559_v54  ;;  %v1896_v54 = vld [vmem:[%s2683_s7 + $0x8] sm:$0xff]  }
 0x194   : > { %v535_v56 = vpop.xlane.xlu0 %534  ;;  %1798 = vmatprep.subr.bf16.mxu1 %v1896_v54  ;;  %1761 = vmatprep.subr.bf16.mxu0 %v1896_v54 }
 0x195   : > { %v561_v57 = vmul.f32 0.0078125, %v535_v56  ;;  %v591_v58 = vmul.f32 %v2333_v55, %v2333_v55  ;;  %1806 = vmatpush3.bf16.msra.mxu1 %v1896_v54  ;;  %1762 = vmatpush3.bf16.msra.mxu0 %v1896_v54 }
 0x197   : > { %v2338_v59 = vsub.f32 %v2238_v5, %v561_v57  ;;  %611 = vadd.xlane.f32.xlu1 %v591_v58  ;;  %v1898_v57 = vld [vmem:[%s2683_s7 + $0x18] sm:$0xff]   ;;  %v1899_v58 = vld [vmem:[%s2683_s7 + $0x20] sm:$0xff]  }
 0x198   : > { %v537_v60 = vpop.xlane.xlu0 %536 }
 0x199   : > { %v593_v61 = vmul.f32 %v2338_v59, %v2338_v59  ;;  %v562_v62 = vmul.f32 0.0078125, %v537_v60  ;;  %v1900_v60 = vld [vmem:[%s2683_s7 + $0x28] sm:$0xff]  }
 0x19b   : > { %615 = vadd.xlane.f32.xlu1 %v593_v61  ;;  %v2346_v3 = vsub.f32 %v2242_v6, %v562_v62  ;;  %v1901_v61 = vld [vmem:[%s2683_s7 + $0x30] sm:$0xff]   ;;  %v1902_v62 = vld [vmem:[%s2683_s7 + $0x38] sm:$0xff]  }
 0x19c   : > { %v541_v63 = vpop.xlane.xlu0 %540 }
 0x19d   : > { %v533_v0 = vpop.xlane.xlu1 %532  ;;  %v564_v20 = vmul.f32 0.0078125, %v541_v63 }
 0x19e   : > { %v560_v1 = vmul.f32 0.0078125, %v533_v0 }
 0x19f   : > { %v2354_v25 = vsub.f32 %v2246_v7, %v564_v20 }
 0x1a0   : > { %v2343_v2 = vsub.f32 %v2249_v8, %v560_v1  ;;  %v545_v21 = vpop.xlane.xlu0 %544  ;;  %v594_v8 = vmul.f32 %v2346_v3, %v2346_v3 }
 0x1a1   : > { %v539_v5 = vpop.xlane.xlu1 %538  ;;  %v566_v26 = vmul.f32 0.0078125, %v545_v21  ;;  %v596_v7 = vmul.f32 %v2354_v25, %v2354_v25 }
 0x1a2   : > { %v563_v22 = vmul.f32 0.0078125, %v539_v5  ;;  %v592_v23 = vmul.f32 %v2343_v2, %v2343_v2 }
 0x1a4   : > { %v2351_v24 = vsub.f32 %v2257_v10, %v563_v22  ;;  %613 = vadd.xlane.f32.xlu0 %v592_v23  ;;  %v525_v6 = vpop.xlane.xlu0 %524  ;;  %v2364_v10 = vsub.f32 %v2253_v9, %v566_v26 }
 0x1a5   : > { %v543_v27 = vpop.xlane.xlu1 %542  ;;  %v556_v30 = vmul.f32 0.0078125, %v525_v6 }
 0x1a6   : > { %v565_v28 = vmul.f32 0.0078125, %v543_v27  ;;  %v595_v4 = vmul.f32 %v2351_v24, %v2351_v24  ;;  %v598_v9 = vmul.f32 %v2364_v10, %v2364_v10 }
 0x1a8   : > { %v2361_v29 = vsub.f32 %v2265_v12, %v565_v28  ;;  %617 = vadd.xlane.f32.xlu0 %v594_v8  ;;  %619 = vadd.xlane.f32.xlu1 %v595_v4  ;;  %v549_v31 = vpop.xlane.xlu0 %548  ;;  %v2374_v12 = vsub.f32 %v2261_v11, %v556_v30 }
 0x1a9   : > { %v523_v32 = vpop.xlane.xlu1 %522  ;;  %v568_v36 = vmul.f32 0.0078125, %v549_v31 }
 0x1aa   : > { %v555_v33 = vmul.f32 0.0078125, %v523_v32  ;;  %v597_v34 = vmul.f32 %v2361_v29, %v2361_v29  ;;  %v588_v11 = vmul.f32 %v2374_v12, %v2374_v12 }
 0x1ac   : > { %v2371_v35 = vsub.f32 %v2273_v14, %v555_v33  ;;  %621 = vadd.xlane.f32.xlu0 %v596_v7  ;;  %623 = vadd.xlane.f32.xlu1 %v597_v34  ;;  %v529_v37 = vpop.xlane.xlu0 %528  ;;  %v2384_v14 = vsub.f32 %v2269_v13, %v568_v36 }
 0x1ad   : > { %v547_v38 = vpop.xlane.xlu1 %546  ;;  %v558_v42 = vmul.f32 0.0078125, %v529_v37 }
 0x1ae   : > { %v567_v39 = vmul.f32 0.0078125, %v547_v38  ;;  %v587_v40 = vmul.f32 %v2371_v35, %v2371_v35  ;;  %v600_v13 = vmul.f32 %v2384_v14, %v2384_v14  ;;  %v2463_v38 = vld [vmem:[%s2680_s4] ss:$0 sm:$0xff] }
 0x1b0   : > { %v2381_v41 = vsub.f32 %v2281_v16, %v567_v39  ;;  %625 = vadd.xlane.f32.xlu0 %v598_v9  ;;  %603 = vadd.xlane.f32.xlu1 %v587_v40  ;;  %v553_v44 = vpop.xlane.xlu0 %552  ;;  %v2394_v16 = vsub.f32 %v2277_v15, %v558_v42 }
 0x1b1   : > { %v527_v43 = vpop.xlane.xlu1 %526  ;;  %v570_v48 = vmul.f32 0.0078125, %v553_v44  ;;  %v2479_v44 = vld [vmem:[%s2681_s5] ss:$0 sm:$0xff] }
 0x1b2   : > { %v557_v45 = vmul.f32 0.0078125, %v527_v43  ;;  %v599_v46 = vmul.f32 %v2381_v41, %v2381_v41  ;;  %v590_v53 = vmul.f32 %v2394_v16, %v2394_v16 }
 0x1b3   : > { %v2407_v15 = vsub.f32 %v2285_v17, %v570_v48 }
 0x1b4   : > { %v2391_v47 = vsub.f32 %v2289_v18, %v557_v45  ;;  %605 = vadd.xlane.f32.xlu0 %v588_v11  ;;  %627 = vadd.xlane.f32.xlu1 %v599_v46 }
 0x1b5   : > { %v551_v49 = vpop.xlane.xlu1 %550  ;;  %v602_v17 = vmul.f32 %v2407_v15, %v2407_v15 }
 0x1b6   : > { %v569_v50 = vmul.f32 0.0078125, %v551_v49  ;;  %v589_v51 = vmul.f32 %v2391_v47, %v2391_v47 }
 0x1b8   : > { %v2404_v18 = vsub.f32 %v2294_v19, %v569_v50  ;;  %629 = vadd.xlane.f32.xlu0 %v600_v13  ;;  %607 = vadd.xlane.f32.xlu1 %v589_v51  ;;  %v1897_v19 = vld [vmem:[%s2683_s7 + $0x10] sm:$0xff]   ;;  %v1163_v50 = vld [vmem:[%s2469_s12 + $0x20] sm:$0xff] }
 0x1b9   : > { %1799 = vmatprep.subr.bf16.mxu1 %v1897_v19  ;;  %1763 = vmatprep.subr.bf16.mxu0 %v1897_v19 }
 0x1ba   : > { %v601_v56 = vmul.f32 %v2404_v18, %v2404_v18  ;;  %1807 = vmatpush3.bf16.msra.mxu1 %v1897_v19  ;;  %1764 = vmatpush3.bf16.msra.mxu0 %v1897_v19 }
 0x1bb   : > { %1800 = vmatprep.subr.bf16.mxu1 %v1898_v57  ;;  %1765 = vmatprep.subr.bf16.mxu0 %v1898_v57 }
 0x1bc   : > { %609 = vadd.xlane.f32.xlu0 %v590_v53  ;;  %631 = vadd.xlane.f32.xlu1 %v601_v56 }
 0x1be   : > { %1808 = vmatpush3.bf16.msra.mxu1 %v1898_v57  ;;  %1766 = vmatpush3.bf16.msra.mxu0 %v1898_v57 }
 0x1bf   : > { %1801 = vmatprep.subr.bf16.mxu1 %v1899_v58  ;;  %1767 = vmatprep.subr.bf16.mxu0 %v1899_v58 }
 0x1c0   : > { %633 = vadd.xlane.f32.xlu0 %v602_v17 }
 0x1c2   : > { %1809 = vmatpush3.bf16.msra.mxu1 %v1899_v58  ;;  %1768 = vmatpush3.bf16.msra.mxu0 %v1899_v58 }
 0x1c3   : > { %1802 = vmatprep.subr.bf16.mxu1 %v1900_v60  ;;  %1769 = vmatprep.subr.bf16.mxu0 %v1900_v60 }
 0x1c6   : > { %1810 = vmatpush3.bf16.msra.mxu1 %v1900_v60  ;;  %1770 = vmatpush3.bf16.msra.mxu0 %v1900_v60 }
 0x1c7   : > { %1803 = vmatprep.subr.bf16.mxu1 %v1901_v61  ;;  %1771 = vmatprep.subr.bf16.mxu0 %v1901_v61 }
 0x1ca   : > { %1811 = vmatpush3.bf16.msra.mxu1 %v1901_v61  ;;  %1772 = vmatpush3.bf16.msra.mxu0 %v1901_v61 }
 0x1cb   : > { %1804 = vmatprep.subr.bf16.mxu1 %v1902_v62  ;;  %1773 = vmatprep.subr.bf16.mxu0 %v1902_v62 }
 0x1ce   : > { %1812 = vmatpush3.bf16.msra.mxu1 %v1902_v62  ;;  %1774 = vmatpush3.bf16.msra.mxu0 %v1902_v62 }
 0x218   : > { %v2436_v63 = vpop.f32.mrb[0].mxu0 }
 0x219   : > { %v2438_v0 = vpop.f32.mrb[1].mxu0 }
 0x21c   : > { %v2440_v1 = vpop.f32.mrb[2].mxu0 }
 0x21d   : > { %v2442_v20 = vpop.f32.mrb[3].mxu0 }
 0x220   : > { %v2444_v21 = vpop.f32.mrb[4].mxu0 }
 0x221   : > { %v1100_v5 = vpop.f32.mrb[5].mxu0 }
 0x224   : > { %v2446_v22 = vpop.f32.mrb[6].mxu0  ;;  %v612_v23 = vpop.xlane.xlu1 %611 }
 0x225   : > { %v639_v8 = vmul.f32 0.0078125, %v612_v23  ;;  %v1110_v26 = vpop.f32.mrb[7].mxu0 }
 0x227   : > { %v655_v6 = vadd.f32 1e-05, %v639_v8 }
 0x228   : > { %v2448_v27 = vpop.f32.mrb[8].mxu0  ;;  %v616_v28 = vpop.xlane.xlu1 %615 }
 0x229   : > { %1903 = vrsqrt.f32 %v655_v6  ;;  %v641_v4 = vmul.f32 0.0078125, %v616_v28  ;;  %v2450_v7 = vpop.f32.mrb[9].mxu0 }
 0x22b   : > { %v657_v30 = vadd.f32 1e-05, %v641_v4 }
 0x22c   : > { %v2452_v31 = vpop.f32.mrb[10].mxu0 }
 0x22d   : > { %1905 = vrsqrt.f32 %v657_v30  ;;  %v2454_v32 = vpop.f32.mrb[11].mxu0 }
 0x230   : > { %v2456_v33 = vpop.f32.mrb[12].mxu0 }
 0x231   : > { %v2458_v34 = vpop.f32.mrb[13].mxu0  ;;  %v614_v9 = vpop.xlane.xlu0 %613 }
 0x232   : > { %v640_v36 = vmul.f32 0.0078125, %v614_v9 }
 0x233   : > { %v1904_v37 = vpop.eup %1903 }
 0x234   : > { %v656_v39 = vadd.f32 1e-05, %v640_v36  ;;  %v2471_v40 = vpop.f32.mrb[14].mxu0  ;;  %v687_v11 = vmul.f32 %v1904_v37, %v2333_v55 }
 0x235   : > { %v2474_v42 = vpop.f32.mrb[15].mxu0  ;;  %v618_v43 = vpop.xlane.xlu0 %617 }
 0x236   : > { %1907 = vrsqrt.f32 %v656_v39  ;;  %v642_v45 = vmul.f32 0.0078125, %v618_v43  ;;  %v620_v46 = vpop.xlane.xlu1 %619  ;;  %v710_v13 = vmul.f32 %v2463_v38, %v687_v11 }
 0x237   : > { %v1906_v48 = vpop.eup %1905  ;;  %v643_v49 = vmul.f32 0.0078125, %v620_v46 }
 0x238   : > { %v689_v55 = vmul.f32 %v1906_v48, %v2338_v59  ;;  %v658_v51 = vadd.f32 1e-05, %v642_v45  ;;  %v733_v52 = vadd.f32 %v2479_v44, %v710_v13  ;;  %v1165_v59 = vld [vmem:[%s2469_s12 + $0x30] sm:$0xff] }
 0x239   : > { %v659_v53 = vadd.f32 1e-05, %v643_v49  ;;  %v622_v54 = vpop.xlane.xlu0 %621 }
 0x23a   : > { %1909 = vrsqrt.f32 %v658_v51  ;;  %v644_v56 = vmul.f32 0.0078125, %v622_v54  ;;  %v624_v17 = vpop.xlane.xlu1 %623  ;;  %v1179_v19 = vadd.f32 %v1163_v50, %v733_v52  ;;  %v712_v57 = vmul.f32 %v2463_v38, %v689_v55  ;;  %v1164_v50 = vld [vmem:[%s2469_s12 + $0x28] sm:$0xff] }
 0x23b   : > { %1911 = vrsqrt.f32 %v659_v53  ;;  %v645_v58 = vmul.f32 0.0078125, %v624_v17 }
 0x23c   : > { %v660_v60 = vadd.f32 1e-05, %v644_v56  ;;  %v2493_v61 = vadd.f32 %v1179_v19, %v1100_v5  ;;  %v735_v62 = vadd.f32 %v2479_v44, %v712_v57 }
 0x23d   : > { %v661_v23 = vadd.f32 1e-05, %v645_v58  ;;  %v626_v8 = vpop.xlane.xlu0 %625 }
 0x23e   : > { %1913 = vrsqrt.f32 %v660_v60  ;;  %v646_v6 = vmul.f32 0.0078125, %v626_v8  ;;  %v604_v28 = vpop.xlane.xlu1 %603  ;;  %1211 = vst [vmem:[%s2490_s28 + $0x20] sm:$0xff] %v2493_v61  ;;  %v1181_v4 = vadd.f32 %v1165_v59, %v735_v62  ;;  %v1166_v60 = vld [vmem:[%s2469_s12 + $0x38] sm:$0xff] }
 0x23f   : > { %1915 = vrsqrt.f32 %v661_v23  ;;  %v635_v30 = vmul.f32 0.0078125, %v604_v28 }
 0x240   : > { %v1908_v9 = vpop.eup %1907  ;;  %v662_v36 = vadd.f32 1e-05, %v646_v6  ;;  %v2498_v37 = vadd.f32 %v1181_v4, %v1110_v26  ;;  %v1167_v4 = vld [vmem:[%s2469_s12 + $0x40] sm:$0xff] }
 0x241   : > { %v651_v5 = vadd.f32 1e-05, %v635_v30  ;;  %v606_v39 = vpop.xlane.xlu0 %605  ;;  %v688_v11 = vmul.f32 %v1908_v9, %v2343_v2 }
 0x242   : > { %1917 = vrsqrt.f32 %v662_v36  ;;  %v636_v43 = vmul.f32 0.0078125, %v606_v39  ;;  %v628_v45 = vpop.xlane.xlu1 %627  ;;  %1213 = vst [vmem:[%s2490_s28 + $0x30] sm:$0xff] %v2498_v37 }
 0x243   : > { %1919 = vrsqrt.f32 %v651_v5  ;;  %v647_v46 = vmul.f32 0.0078125, %v628_v45  ;;  %v711_v13 = vmul.f32 %v2463_v38, %v688_v11 }
 0x244   : > { %v1910_v48 = vpop.eup %1909  ;;  %v652_v49 = vadd.f32 1e-05, %v636_v43 }
 0x245   : > { %v1912_v55 = vpop.eup %1911  ;;  %v690_v26 = vmul.f32 %v1910_v48, %v2346_v3  ;;  %v663_v51 = vadd.f32 1e-05, %v647_v46  ;;  %v630_v52 = vpop.xlane.xlu0 %629  ;;  %v734_v2 = vadd.f32 %v2479_v44, %v711_v13 }
 0x246   : > { %v691_v53 = vmul.f32 %v1912_v55, %v2351_v24  ;;  %1921 = vrsqrt.f32 %v652_v49  ;;  %v648_v54 = vmul.f32 0.0078125, %v630_v52  ;;  %v608_v56 = vpop.xlane.xlu1 %607 }
 0x247   : > { %1923 = vrsqrt.f32 %v663_v51  ;;  %v637_v17 = vmul.f32 0.0078125, %v608_v56  ;;  %v1180_v19 = vadd.f32 %v1164_v50, %v734_v2  ;;  %v713_v57 = vmul.f32 %v2463_v38, %v690_v26 }
 0x248   : > { %v1914_v58 = vpop.eup %1913  ;;  %v664_v59 = vadd.f32 1e-05, %v648_v54  ;;  %v714_v3 = vmul.f32 %v2463_v38, %v691_v53  ;;  %v1169_v54 = vld [vmem:[%s2469_s12 + $0x50] sm:$0xff] }
 0x249   : > { %v1916_v62 = vpop.eup %1915  ;;  %v692_v23 = vmul.f32 %v1914_v58, %v2354_v25  ;;  %v653_v8 = vadd.f32 1e-05, %v637_v17  ;;  %v610_v24 = vpop.xlane.xlu0 %609  ;;  %v1196_v6 = vadd.f32 %v2444_v21, %v1180_v19  ;;  %v736_v28 = vadd.f32 %v2479_v44, %v713_v57  ;;  %v1170_v19 = vld [vmem:[%s2469_s12 + $0x58] sm:$0xff] }
 0x24a   : > { %v693_v30 = vmul.f32 %v1916_v62, %v2361_v29  ;;  %1925 = vrsqrt.f32 %v664_v59  ;;  %v638_v9 = vmul.f32 0.0078125, %v610_v24  ;;  %v632_v36 = vpop.xlane.xlu1 %631  ;;  %v737_v5 = vadd.f32 %v2479_v44, %v714_v3  ;;  %v1159_v62 = vld [vmem:[%s2469_s12] sm:$0xff] }
 0x24b   : > { %1927 = vrsqrt.f32 %v653_v8  ;;  %v649_v39 = vmul.f32 0.0078125, %v632_v36  ;;  %1212 = vst [vmem:[%s2490_s28 + $0x28] sm:$0xff] %v1196_v6  ;;  %v1225_v25 = vpack.c.bf16 %v1196_v6, %v2493_v61  ;;  %v1182_v11 = vadd.f32 %v1166_v60, %v736_v28  ;;  %v1168_v61 = vld [vmem:[%s2469_s12 + $0x48] sm:$0xff] }
 0x24c   : > { %v1918_v43 = vpop.eup %1917  ;;  %v654_v45 = vadd.f32 1e-05, %v638_v9  ;;  %v715_v21 = vmul.f32 %v2463_v38, %v692_v23  ;;  %v1183_v46 = vadd.f32 %v1167_v4, %v737_v5  ;;  %v716_v29 = vmul.f32 %v2463_v38, %v693_v30  ;;  %v1160_v4 = vld [vmem:[%s2469_s12 + $0x8] sm:$0xff] }
 0x24d   : > { %v1920_v13 = vpop.eup %1919  ;;  %v694_v48 = vmul.f32 %v1918_v43, %v2364_v10  ;;  %v665_v49 = vadd.f32 1e-05, %v649_v39  ;;  %v634_v50 = vpop.xlane.xlu0 %633  ;;  %1779 = vmatprep.mubr.bf16.mxu1 %v1225_v25  ;;  %v1198_v55 = vadd.f32 %v2446_v22, %v1182_v11  ;;  %v1171_v39 = vld [vmem:[%s2469_s12 + $0x60] sm:$0xff] }
 0x24e   : > { %v683_v26 = vmul.f32 %v1920_v13, %v2371_v35  ;;  %1929 = vrsqrt.f32 %v654_v45  ;;  %v650_v51 = vmul.f32 0.0078125, %v634_v50  ;;  %v738_v52 = vadd.f32 %v2479_v44, %v715_v21 }
 0x24f   : > { %1931 = vrsqrt.f32 %v665_v49  ;;  %1214 = vst [vmem:[%s2490_s28 + $0x38] sm:$0xff] %v1198_v55  ;;  %v1226_v2 = vpack.c.bf16 %v1198_v55, %v2498_v37  ;;  %v1199_v10 = vadd.f32 %v1183_v46, %v2450_v7  ;;  %v717_v53 = vmul.f32 %v2463_v38, %v694_v48  ;;  %v1172_v46 = vld [vmem:[%s2469_s12 + $0x68] sm:$0xff] }
 0x250   : > { %v1922_v22 = vpop.eup %1921  ;;  %v666_v56 = vadd.f32 1e-05, %v650_v51  ;;  %v1184_v17 = vadd.f32 %v1168_v61, %v738_v52  ;;  %v739_v35 = vadd.f32 %v2479_v44, %v716_v29  ;;  %v706_v57 = vmul.f32 %v2463_v38, %v683_v26 }
 0x251   : > { %v1924_v58 = vpop.eup %1923  ;;  %v684_v59 = vmul.f32 %v1922_v22, %v2374_v12  ;;  %1780 = vmatmul.mubr.bf16.vlgmr.msra.gmra.mrb[0].mxu1 %v1226_v2  ;;  %1215 = vst [vmem:[%s2490_s28 + $0x40] sm:$0xff] %v1199_v10  ;;  %v740_v7 = vadd.f32 %v2479_v44, %v717_v53 }
 0x252   : > { %v695_v37 = vmul.f32 %v1924_v58, %v2381_v41  ;;  %1933 = vrsqrt.f32 %v666_v56  ;;  %v1200_v60 = vadd.f32 %v2448_v27, %v1184_v17  ;;  %v1185_v3 = vadd.f32 %v1169_v54, %v739_v35  ;;  %v1173_v54 = vld [vmem:[%s2469_s12 + $0x70] sm:$0xff] }
 0x253   : > { %v1186_v23 = vadd.f32 %v1170_v19, %v740_v7  ;;  %v707_v8 = vmul.f32 %v2463_v38, %v684_v59  ;;  %v729_v24 = vadd.f32 %v2479_v44, %v706_v57  ;;  %v1174_v57 = vld [vmem:[%s2469_s12 + $0x78] sm:$0xff] }
 0x254   : > { %v1926_v12 = vpop.eup %1925  ;;  %1216 = vst [vmem:[%s2490_s28 + $0x48] sm:$0xff] %v1200_v60  ;;  %v1227_v6 = vpack.c.bf16 %v1200_v60, %v1199_v10  ;;  %v1201_v28 = vadd.f32 %v1185_v3, %v2454_v32  ;;  %v718_v41 = vmul.f32 %v2463_v38, %v695_v37 }
 0x255   : > { %v1928_v30 = vpop.eup %1927  ;;  %v696_v27 = vmul.f32 %v1926_v12, %v2384_v14  ;;  %v1202_v9 = vadd.f32 %v2452_v31, %v1186_v23  ;;  %v730_v36 = vadd.f32 %v2479_v44, %v707_v8  ;;  %v1175_v5 = vadd.f32 %v1159_v62, %v729_v24 }
 0x256   : > { %v685_v25 = vmul.f32 %v1928_v30, %v2391_v47  ;;  %1783 = vmatprep.mubr.bf16.mxu1 %v1227_v6  ;;  %1217 = vst [vmem:[%s2490_s28 + $0x50] sm:$0xff] %v1201_v28  ;;  %v741_v32 = vadd.f32 %v2479_v44, %v718_v41 }
 0x257   : > { %1218 = vst [vmem:[%s2490_s28 + $0x58] sm:$0xff] %v1202_v9  ;;  %v1228_v11 = vpack.c.bf16 %v1202_v9, %v1201_v28  ;;  %v1176_v43 = vadd.f32 %v1160_v4, %v730_v36  ;;  %v1191_v14 = vadd.f32 %v1175_v5, %v2438_v0  ;;  %v719_v45 = vmul.f32 %v2463_v38, %v696_v27  ;;  %v1161_v0 = vld [vmem:[%s2469_s12 + $0x10] sm:$0xff] }
 0x258   : > { %v1930_v31 = vpop.eup %1929  ;;  %v708_v21 = vmul.f32 %v2463_v38, %v685_v25  ;;  %v1187_v29 = vadd.f32 %v1171_v39, %v741_v32 }
 0x259   : > { %v1932_v47 = vpop.eup %1931  ;;  %v686_v13 = vmul.f32 %v1930_v31, %v2394_v16  ;;  %1784 = vmatmul.mubr.bf16.gmra.mrb[4].mxu1 %v1228_v11  ;;  %v1192_v48 = vadd.f32 %v2436_v63, %v1176_v43  ;;  %1207 = vst [vmem:[%s2490_s28] sm:$0xff] %v1191_v14  ;;  %v742_v49 = vadd.f32 %v2479_v44, %v719_v45  ;;  %v1162_v63 = vld [vmem:[%s2469_s12 + $0x18] sm:$0xff]  ;;  %s1696_s12 = sshll.u32 %s2013_s16, 4  ;;  %s1446_s16 = sshll.u32 %s2594_s19, 4  ;;  %s2617_s16 = int_to_ptr.vmem [resolvable:$true] %s1446_s16 }
 0x25a   : > { %v731_v50 = vadd.f32 %v2479_v44, %v708_v21  ;;  %v697_v55 = vmul.f32 %v1932_v47, %v2404_v18  ;;  %v1203_v61 = vadd.f32 %v1187_v29, %v2458_v34  ;;  %s1443_s24 = sadd.s32 %s1696_s12, %s1692_s23  ;;  %s1935_s21 = scalar_lea.vmem %s2617_s16, 2048 }
 0x25b   : > { %v709_v26 = vmul.f32 %v2463_v38, %v686_v13  ;;  %1208 = vst [vmem:[%s2490_s28 + $0x8] sm:$0xff] %v1192_v48  ;;  %v1223_v51 = vpack.c.bf16 %v1192_v48, %v1191_v14  ;;  %v1188_v16 = vadd.f32 %v1172_v46, %v742_v49  ;;  %s1693_s22 = sshll.u32 %s1443_s24, 7  ;;  %p1936_p1 = scmp.ne.s32.totalorder %s2617_s16, %s1935_s21 }
 0x25c   : > { %v1934_v52 = vpop.eup %1933  ;;  %1219 = vst [vmem:[%s2490_s28 + $0x60] sm:$0xff] %v1203_v61  ;;  %v1177_v2 = vadd.f32 %v1161_v0, %v731_v50  ;;  %v720_v10 = vmul.f32 %v2463_v38, %v697_v55  ;;  %s1939_s12 = sshll.u32 %s2036_s18, 4  ;;  %s1940_s12 = int_to_ptr.vmem [resolvable:$false] %s1939_s12 }
 0x25d   : > { %v732_v53 = vadd.f32 %v2479_v44, %v709_v26  ;;  %v698_v18 = vmul.f32 %v1934_v52, %v2407_v15  ;;  %1775 = vmatprep.mubr.bf16.mxu0 %v1223_v51  ;;  %v1204_v34 = vadd.f32 %v2456_v33, %v1188_v16  ;;  %p1937_p2 = pnand %p1936_p1, %p2145_p3  ;;  %s1941_s23 = scalar_lea.vmem %s1940_s12, 4096 }
 0x25e   : > { %v1193_v22 = vadd.f32 %v1177_v2, %v2442_v20  ;;  %v743_v56 = vadd.f32 %v2479_v44, %v720_v10  ;;  %p1942_p5 = scmp.lt.s32.totalorder %s2617_s16, %s1940_s12  ;;  %p1943_p6 = scmp.lt.s32.totalorder %s1941_s23, %s1935_s21 }
 0x25f   : > { %1220 = vst [vmem:[%s2490_s28 + $0x68] sm:$0xff] %v1204_v34  ;;  %v1229_v17 = vpack.c.bf16 %v1204_v34, %v1203_v61  ;;  %v1178_v35 = vadd.f32 %v1162_v63, %v732_v53  ;;  %v721_v19 = vmul.f32 %v2463_v38, %v698_v18  ;;  %p1938_p4 = pneg %p1937_p2 }
 0x260   : > { %1209 = vst [vmem:[%s2490_s28 + $0x10] sm:$0xff] %v1193_v22  ;;  %v1189_v15 = vadd.f32 %v1173_v54, %v743_v56  ;;  %p1944_p7 = por %p1943_p6, %p1942_p5 }
 0x261   : > { %1787 = vmatprep.mubr.bf16.mxu1 %v1229_v17  ;;  %v1194_v33 = vadd.f32 %v2440_v1, %v1178_v35  ;;  %v744_v58 = vadd.f32 %v2479_v44, %v721_v19  ;;  %v1680_v1 = vld [vmem:[%s2684_s8] ss:$0 sm:$0xff] }
 0x262   : > { %v1205_v20 = vadd.f32 %v1189_v15, %v2474_v42  ;;  %p1945_p9 = pnand %p1944_p7, %p1938_p4 }
 0x263   : > { %1210 = vst [vmem:[%s2490_s28 + $0x18] sm:$0xff] %v1194_v33  ;;  %v1224_v59 = vpack.c.bf16 %v1194_v33, %v1193_v22  ;;  %v1190_v7 = vadd.f32 %v1174_v57, %v744_v58 }
 0x264   : > { %1221 = vst [vmem:[%s2490_s28 + $0x70] sm:$0xff] %v1205_v20 }
 0x265   : > { %1776 = vmatmul.mubr.bf16.vlgmr.msra.gmra.mrb[16].mxu0 %v1224_v59  ;;  %v1206_v37 = vadd.f32 %v2471_v40, %v1190_v7 }
 0x267   : > { %1222 = vst [vmem:[%s2490_s28 + $0x78] sm:$0xff] %v1206_v37  ;;  %v1230_v38 = vpack.c.bf16 %v1206_v37, %v1205_v20  ;;  %s2615_s28 = scalar_lea.hbm %s2686_s10, %s1693_s22 }
 0x269   : > { %1788 = vmatmul.mubr.bf16.gmra.mrb[8].mxu1 %v1230_v38 }
 0x324   : > { %v1781_v44 = vpop.f32.mrb[0].mxu1 }
 0x325   : > { %v1361_v60 = vadd.f32 %v1781_v44, %v1680_v1  ;;  %v1352_v42 = vpop.f32.mrb[1].mxu1 }
 0x326   : > { %v1353_v3 = vadd.f32 %v1680_v1, %v1352_v42  ;;  %v1782_v62 = vpop.f32.mrb[2].mxu1 }
 0x327   : > { %1405 = vst [vmem:[%s2594_s19 + $0x30] sm:$0xff] %v1361_v60  ;;  %v1364_v40 = vadd.f32 %v1782_v62, %v1680_v1  ;;  %v1355_v23 = vpop.f32.mrb[3].mxu1 }
 0x328   : > { %1403 = vst [vmem:[%s2594_s19 + $0x20] sm:$0xff] %v1353_v3  ;;  %v1356_v8 = vadd.f32 %v1680_v1, %v1355_v23 }
 0x329   : > { %1406 = vst [vmem:[%s2594_s19 + $0x38] sm:$0xff] %v1364_v40 }
 0x32a   : > { %1404 = vst [vmem:[%s2594_s19 + $0x28] sm:$0xff] %v1356_v8 }
 0x32c   : > { %v1785_v24 = vpop.f32.mrb[4].mxu1 }
 0x32d   : > { %v1377_v12 = vadd.f32 %v1785_v24, %v1680_v1  ;;  %v1368_v6 = vpop.f32.mrb[5].mxu1 }
 0x32e   : > { %v1369_v28 = vadd.f32 %v1680_v1, %v1368_v6  ;;  %v1786_v4 = vpop.f32.mrb[6].mxu1 }
 0x32f   : > { %1409 = vst [vmem:[%s2594_s19 + $0x50] sm:$0xff] %v1377_v12  ;;  %v1380_v41 = vadd.f32 %v1786_v4, %v1680_v1  ;;  %v1371_v30 = vpop.f32.mrb[7].mxu1 }
 0x330   : > { %1407 = vst [vmem:[%s2594_s19 + $0x40] sm:$0xff] %v1369_v28  ;;  %v1372_v27 = vadd.f32 %v1680_v1, %v1371_v30 }
 0x331   : > { %1410 = vst [vmem:[%s2594_s19 + $0x58] sm:$0xff] %v1380_v41 }
 0x332   : > { %1408 = vst [vmem:[%s2594_s19 + $0x48] sm:$0xff] %v1372_v27 }
 0x338   : > { %v1777_v9 = vpop.f32.mrb[16].mxu0 }
 0x339   : > { %v1345_v36 = vadd.f32 %v1777_v9, %v1680_v1  ;;  %v1336_v5 = vpop.f32.mrb[17].mxu0 }
 0x33a   : > { %v1337_v39 = vadd.f32 %v1680_v1, %v1336_v5  ;;  %v1778_v25 = vpop.f32.mrb[18].mxu0 }
 0x33b   : > { %1401 = vst [vmem:[%s2594_s19 + $0x10] sm:$0xff] %v1345_v36  ;;  %v1348_v32 = vadd.f32 %v1778_v25, %v1680_v1  ;;  %v1339_v11 = vpop.f32.mrb[19].mxu0 }
 0x33c   : > { %1399 = vst [vmem:[%s2594_s19] sm:$0xff] %v1337_v39  ;;  %v1340_v43 = vadd.f32 %v1680_v1, %v1339_v11  ;;  %v1789_v14 = vpop.f32.mrb[8].mxu1 }
 0x33d   : > { %1402 = vst [vmem:[%s2594_s19 + $0x18] sm:$0xff] %v1348_v32  ;;  %v1393_v45 = vadd.f32 %v1789_v14, %v1680_v1  ;;  %v1384_v31 = vpop.f32.mrb[9].mxu1 }
 0x33e   : > { %1400 = vst [vmem:[%s2594_s19 + $0x8] sm:$0xff] %v1340_v43  ;;  %v1385_v21 = vadd.f32 %v1680_v1, %v1384_v31  ;;  %v1790_v46 = vpop.f32.mrb[10].mxu1 }
 0x33f   : > { %1413 = vst [vmem:[%s2594_s19 + $0x70] sm:$0xff] %v1393_v45  ;;  %v1396_v29 = vadd.f32 %v1790_v46, %v1680_v1  ;;  %v1387_v47 = vpop.f32.mrb[11].mxu1 }
 0x340   : > { %1411 = vst [vmem:[%s2594_s19 + $0x60] sm:$0xff] %v1385_v21  ;;  %v1388_v13 = vadd.f32 %v1680_v1, %v1387_v47 }
 0x341   : > { %1414 = vst [vmem:[%s2594_s19 + $0x78] sm:$0xff] %v1396_v29 }
 0x342   : > { %1412 = vst [vmem:[%s2594_s19 + $0x68] sm:$0xff] %v1388_v13 }
 0x343   : > { %1948 = shalt.err (!%p1945_p9)
}
 0x344   : > { %s1949_s30 = scalar_lea.hbm %s2615_s28, 2048  ;;  %s1953_s22 = scalar_lea.hbm %s2686_s10, 8192 }
 0x345   : > { %p1950_p10 = scmp.ne.s32.totalorder %s2615_s28, %s1949_s30  ;;  %p1954_p13 = scmp.lt.u32.totalorder %s2615_s28, %s2686_s10 }
 0x346   : > { %p1955_p0 = scmp.lt.u32.totalorder %s1953_s22, %s1949_s30  ;;  %p1957_p2 = scmp.lt.u32.totalorder %s1949_s30, %s2615_s28 }
 0x347   : > { %p1951_p11 = pnand %p1950_p10, %p2145_p3 }
 0x348   : > { %p1956_p1 = por %p1955_p0, %p1954_p13 }
 0x349   : > { %p1952_p12 = pneg %p1951_p11 }
 0x34a   : > { %p1958_p4 = por %p1957_p2, %p1956_p1 }
 0x34c   : > { %p1959_p5 = pnand %p1958_p4, %p1952_p12 }
 0x34e   : > { %1962 = shalt.err (!%p1959_p5)
}
 0x34f   : > { %s2037_s21 = smov 128   ;;  %s2038_s18 = smov 8  }
 0x350   : > { %1813 = dma.vmem_to_hbm [thread:$0]  (%p2145_p3), %s2617_s16, 2048, %s2615_s28, %s2624_s29, %s2037_s21, %s2037_s21, %s2038_s18  }
 0x351 PF: > { %p1819_p6 = scmp.ge.s32.totalorder %s2029_s20, 2  ;;  %s1474_s12 = sand.u32 1, %s2001_s13  }
 0x352   : > { %s1475_s23 = scalar_lea.sflag [#allocation3], %s1474_s12 }
 0x353   : > { %p1816_p7 = pnand %p1819_p6, %p2154_p8 }
 0x355   : > { %1996 = dma.done.wait (!%p1816_p7), %s1475_s23, 2048  }
 0x356   : > { %1998 = vsyncadd (!%p1816_p7), %s1475_s23, 4294965248  ;;  %s24_s20 = sadd.s32 1, %s2029_s20   ;;  %s2697_s16 = sld [smem:[#allocation5_spill]] }
 0x357   : > { %p21_p9 = scmp.ge.s32.totalorder %s24_s20, 6   ;;  %s2698_s17 = sld [smem:[#allocation6_spill]] }
 0x358   : > { %s2699_s18 = sld [smem:[#allocation7_spill]]  ;;  %s2700_s19 = sld [smem:[#allocation8_spill]] }
 0x359   : > { %s2701_s13 = smov %s2005_s14  ;;  %s2702_s14 = smov %s2009_s15 }
 0x35a   : > { %s2703_s15 = smov %s2163_s11  ;;  %23 = sbr.rel (!%p21_p9) target bundleno = 5 (0x5), region = 112 }
 0x361   :  { %1480 = vsyncpa [#allocation3], 1 }
 0x362   :  { %1482 = vsyncpa [#allocation3 + $0x1], 1 }

// kernel: folding_trunk_forward.11
= control target key start
LH: loop header
LB: loop body
LE: loop exit
PB: predicated region body
PF: predicated region fallthrough
CT: control target
= control target key end

     0   :  { %7 = vsyncpa [#allocation3], 0  ;;  %s730_s0 = inlined_call_operand.vmem [shape: f32[2,16,128], index: 0, kind: input, shape index: {}]   ;;  %s731_s1 = inlined_call_operand.vmem [shape: f32[2,8,16], index: 1, kind: input, shape index: {}]   ;;  %s732_s2 = inlined_call_operand.hbm [shape: s32[2,16,16], index: 2, kind: output, shape index: {}]  }
   0x1   :  { %9 = vsyncpa [#allocation3 + $0x1], 0  ;;  %s575_s9 = smov 0   ;;  %s577_s10 = smov 0  }
   0x2   :  { %s579_s11 = smov 0   ;;  %s581_s12 = smov 0  }
   0x3   :  { %s583_s13 = smov 0   ;;  %s585_s14 = smov 0  }
   0x4   :  { %s587_s15 = smov 0   ;;  %s589_s16 = smov 0  }
   0x5 LB: > { %s368_s17 = sadd.s32 4294967295, %s554_s16   ;;  %s369_s18 = sadd.s32 4294967294, %s554_s16   ;;  %s554_s16 = sphi %s589_s16, %s15_s16   ;;  %s550_s15 = sphi %s587_s15, %s741_s15   ;;  %s546_s14 = sphi %s585_s14, %s740_s14   ;;  %s542_s13 = sphi %s583_s13, %s739_s13   ;;  %s538_s12 = sphi %s581_s12, %s738_s12   ;;  %s534_s11 = sphi %s579_s11, %s737_s11   ;;  %s530_s10 = sphi %s577_s10, %s736_s10   ;;  %s526_s9 = sphi %s575_s9, %s735_s9  }
   0x6   : > { %s24_s19 = sadd.s32 1, %s546_s14  ;;  %s27_s20 = sadd.s32 1, %s550_s15 }
   0x7   : > { %p25_p0 = scmp.ge.s32.totalorder %s24_s19, 2  ;;  %p100_p1 = scmp.ne.s32.totalorder %s534_s11, %s530_s10 }
   0x8   : > { %p101_p2 = scmp.eq.s32.totalorder %s368_s17, 3  ;;  %p106_p5 = scmp.ne.s32.totalorder %s530_s10, %s526_s9 }
   0x9   : > { %s743_s19 = smov (%p25_p0, %s24_s19), 0  ;;  %s745_s20 = smov (!%p25_p0, %s27_s20), %s550_s15 }
   0xa   : > { %s86_s21 = ssub.s32 %s546_s14, %s743_s19  ;;  %p626_p3 = por %p101_p2, %p100_p1 }
   0xb   : > { %p29_p4 = scmp.ge.s32.totalorder %s745_s20, 2  ;;  %p107_p6 = scmp.eq.s32.totalorder %s369_s18, 3 }
   0xc   : > { %p372_p7 = scmp.ge.s32.totalorder %s554_s16, 1  ;;  %p143_p9 = scmp.lt.s32.totalorder %s554_s16, 5 }
   0xd   : > { %s747_s20 = smov (%p29_p4, %s745_s20), 0  ;;  %p635_p8 = por %p107_p6, %p106_p5 }
   0xe   : > { %s85_s24 = ssub.s32 %s550_s15, %s747_s20  ;;  %s90_s25 = sadd.s32 1, %s534_s11 }
   0xf   : > { %s87_s26 = sor.u32 %s86_s21, %s85_s24  ;;  %p144_p10 = pnand %p372_p7, %p143_p9 }
  0x10   : > { %p88_p11 = scmp.eq.s32.totalorder %s87_s26, 0  ;;  %p172_p12 = scmp.lt.s32.totalorder (!%p144_p10), %s542_s13, 1  ;;  %v556_v0 = vmov (!%p144_p10), 0   ;;  %v557_v1 = vmov (!%p144_p10), 2   ;;  %v558_v3 = vmov (!%p144_p10), 1   ;;  %v191_v4 = vlaneseq (!%p144_p10) }
  0x11   : > { %147 = sbr.rel (%p144_p10) target bundleno = 214 (0xd6), region = 28  ;;  %p174_p13 = scmp.lt.s32.totalorder (!%p144_p10), %s538_s12, 1  ;;  %456 = vset.pattern.permute.xlu0 (!%p144_p10), %v556_v0  ;;  %458 = vset.pattern.permute.xlu1 (!%p144_p10), %v557_v1  ;;  %vm260_vm14 = vcmask (!%p144_p10), 130048  }
  0x12   : > { %s644_s27 = scalar_select %p88_p11, %s534_s11, %s90_s25  }
  0x13   : > { %v192_v5 = vshrl.u32 (!%p144_p10), %v191_v4, 7  ;;  %s169_s24 = sand.u32 (!%p144_p10), 1, %s530_s10   ;;  %s378_s26 = sshll.u32 (!%p144_p10), %s542_s13, 1 }
  0x14   : > { %s373_s25 = sshll.u32 (!%p144_p10), %s169_s24, 3 }
  0x15   : > { %v193_v6 = vsub.s32 (!%p144_p10), 0, %v192_v5  ;;  %v211_v7 = vsub.s32 (!%p144_p10), 2, %v192_v5  ;;  %v202_v9 = vsub.s32 (!%p144_p10), 1, %v192_v5 }
  0x18   : > { %s173_s28 = scalar_select %p172_p12, %s542_s13, 1 }
  0x19   : > { %s175_s29 = scalar_select %p174_p13, %s538_s12, 1 }
  0x1a   : > { %s374_s30 = sshll.u32 %s173_s28, 1  ;;  %s376_s8 = sshll.u32 %s173_s28, 3 }
  0x1b   : > { %s177_s3 = sadd.s32 %s374_s30, %s175_s29  ;;  %s183_s21 = scalar_lea.vmem %s731_s1, %s376_s8 }
  0x1c   : > { %s375_s4 = sshll.u32 %s177_s3, 3  ;;  %v185_v8 = vld [vmem:[%s183_s21] sm:$0xff]  ;;  %s274_s28 = sadd.s32 %s538_s12, %s378_s26 }
  0x1d   : > { %s179_s7 = scalar_lea.vmem %s730_s0, %s375_s4  ;;  %v194_v10 = vrot.slane %v185_v8, %v193_v6  ;;  %v212_v12 = vrot.slane %v185_v8, %v211_v7  ;;  %v203_v14 = vrot.slane %v185_v8, %v202_v9  ;;  %s379_s29 = sshll.u32 %s274_s28, 7 }
  0x1e   : > { %v184_v2 = vld [vmem:[%s179_s7] sm:$0xff]  ;;  %s171_s30 = scalar_lea.vmem [#allocation2], %s373_s25  ;;  %s677_s5 = scalar_lea.hbm %s732_s2, %s379_s29 }
  0x1f   : > { %188 = vperm.xlu0 %456, %v184_v2   ;;  %206 = vperm.xlu1 %458, %v184_v2   ;;  %s278_s3 = sshll.u32 %s171_s30, 4  ;;  %s263_s12 = scalar_lea.sflag [#allocation3], %s169_s24  ;;  %s679_s3 = int_to_ptr.vmem [resolvable:$true] %s278_s3 }
  0x20   : > { %s460_s6 = scalar_lea.vmem %s679_s3, 128  ;;  %s559_s7 = smov [#allocation2]  }
  0x21   : > { %p461_p0 = scmp.ne.s32.totalorder %s679_s3, %s460_s6  ;;  %s464_s8 = sshll.u32 %s559_s7, 4  ;;  %s465_s8 = int_to_ptr.vmem [resolvable:$false] %s464_s8 }
  0x22   : > { %s466_s17 = scalar_lea.vmem %s465_s8, 256  ;;  %p467_p4 = scmp.lt.s32.totalorder %s679_s3, %s465_s8 }
  0x23   : > { %457 = vset.pattern.permute.xlu0 %v558_v3  ;;  %p462_p1 = pnand %p461_p0, %p626_p3  ;;  %p468_p5 = scmp.lt.s32.totalorder %s466_s17, %s460_s6 }
  0x24   : > { %197 = vperm.xlu0 %457, %v184_v2  }
  0x25   : > { %p463_p2 = pneg %p462_p1  ;;  %p469_p6 = por %p468_p5, %p467_p4 }
  0x27   : > { %p470_p7 = pnand %p469_p6, %p463_p2 }
  0x28   : > { %459 = vset.pattern.permute.xlu0 %v557_v1 }
  0x9e   : > { %v189_v11 = vpop.permute.xlu0 %188  ;;  %v207_v13 = vpop.permute.xlu1 %206 }
  0x9f   : > { %v195_v15 = vsub.f32 %v189_v11, %v194_v10  ;;  %v213_v16 = vsub.f32 %v207_v13, %v212_v12 }
  0xa1   : > { %v214_v19 = vmul.f32 %v195_v15, %v195_v15  ;;  %v217_v21 = vmul.f32 %v213_v16, %v213_v16 }
  0xa3   : > { %v198_v17 = vpop.permute.xlu0 %197 }
  0xa4   : > { %v204_v18 = vsub.f32 %v198_v17, %v203_v14 }
  0xa6   : > { %v215_v20 = vmul.f32 %v204_v18, %v204_v18 }
  0xa8   : > { %v216_v22 = vadd.f32 %v215_v20, %v214_v19 }
  0xaa   : > { %v218_v23 = vadd.f32 %v217_v21, %v216_v22 }
  0xac   : > { %vm219_vm0 = vcmp.gt.f32.partialorder %v218_v23, 11.390625  ;;  %vm221_vm1 = vcmp.gt.f32.partialorder %v218_v23, 22.653938  ;;  %vm224_vm2 = vcmp.gt.f32.partialorder %v218_v23, 37.75157 }
  0xad   : > { %v220_v24 = vsel %vm219_vm0, 1, %v556_v0  ;;  %v222_v25 = vsel %vm221_vm1, 1, %v556_v0  ;;  %vm227_vm3 = vcmp.gt.f32.partialorder %v218_v23, 56.683525  ;;  %v225_v27 = vsel %vm224_vm2, 1, %v556_v0 }
  0xae   : > { %v223_v26 = vadd.s32 %v222_v25, %v220_v24  ;;  %vm230_vm4 = vcmp.gt.f32.partialorder %v218_v23, 79.4498  ;;  %v228_v29 = vsel %vm227_vm3, 1, %v556_v0  ;;  %vm233_vm5 = vcmp.gt.f32.partialorder %v218_v23, 106.050385 }
  0xaf   : > { %v231_v31 = vsel %vm230_vm4, 1, %v556_v0  ;;  %vm236_vm6 = vcmp.gt.f32.partialorder %v218_v23, 136.4853  ;;  %v234_v33 = vsel %vm233_vm5, 1, %v556_v0  ;;  %vm239_vm7 = vcmp.gt.f32.partialorder %v218_v23, 170.75453 }
  0xb0   : > { %v226_v28 = vadd.s32 %v225_v27, %v223_v26  ;;  %v237_v35 = vsel %vm236_vm6, 1, %v556_v0  ;;  %vm242_vm8 = vcmp.gt.f32.partialorder %v218_v23, 208.85808  ;;  %v240_v37 = vsel %vm239_vm7, 1, %v556_v0 }
  0xb1   : > { %vm245_vm9 = vcmp.gt.f32.partialorder %v218_v23, 250.79594  ;;  %v243_v39 = vsel %vm242_vm8, 1, %v556_v0  ;;  %vm248_vm10 = vcmp.gt.f32.partialorder %v218_v23, 296.56815 }
  0xb2   : > { %v229_v30 = vadd.s32 %v228_v29, %v226_v28  ;;  %v246_v41 = vsel %vm245_vm9, 1, %v556_v0  ;;  %vm251_vm11 = vcmp.gt.f32.partialorder %v218_v23, 346.17465  ;;  %v249_v43 = vsel %vm248_vm10, 1, %v556_v0 }
  0xb3   : > { %vm254_vm12 = vcmp.gt.f32.partialorder %v218_v23, 399.61548  ;;  %v252_v45 = vsel %vm251_vm11, 1, %v556_v0  ;;  %vm257_vm13 = vcmp.gt.f32.partialorder %v218_v23, 456.89063 }
  0xb4   : > { %v232_v32 = vadd.s32 %v231_v31, %v229_v30  ;;  %v255_v47 = vsel %vm254_vm12, 1, %v556_v0  ;;  %v258_v49 = vsel %vm257_vm13, 1, %v556_v0 }
  0xb6   : > { %v235_v34 = vadd.s32 %v234_v33, %v232_v32 }
  0xb8   : > { %v238_v36 = vadd.s32 %v237_v35, %v235_v34 }
  0xba   : > { %v241_v38 = vadd.s32 %v240_v37, %v238_v36 }
  0xbc   : > { %v244_v40 = vadd.s32 %v243_v39, %v241_v38 }
  0xbe   : > { %v247_v42 = vadd.s32 %v246_v41, %v244_v40 }
  0xc0   : > { %v250_v44 = vadd.s32 %v249_v43, %v247_v42 }
  0xc2   : > { %v253_v46 = vadd.s32 %v252_v45, %v250_v44 }
  0xc4   : > { %v256_v48 = vadd.s32 %v255_v47, %v253_v46 }
  0xc6   : > { %v259_v50 = vadd.s32 %v258_v49, %v256_v48 }
  0xc8   : > { %261 = vst.msk [vmem:[%s171_s30] sm:$0xff] %vm260_vm14, %v259_v50 }
  0xc9   : > { %473 = shalt.err (!%p470_p7)
}
  0xca   : > { %s474_s18 = scalar_lea.hbm %s677_s5, 128  ;;  %s478_s25 = scalar_lea.hbm %s732_s2, 512 }
  0xcb   : > { %p475_p9 = scmp.ne.s32.totalorder %s677_s5, %s474_s18  ;;  %p479_p12 = scmp.lt.u32.totalorder %s677_s5, %s732_s2 }
  0xcc   : > { %p480_p13 = scmp.lt.u32.totalorder %s478_s25, %s474_s18  ;;  %p482_p1 = scmp.lt.u32.totalorder %s474_s18, %s677_s5 }
  0xcd   : > { %p476_p10 = pnand %p475_p9, %p626_p3 }
  0xce   : > { %p481_p0 = por %p480_p13, %p479_p12 }
  0xcf   : > { %p477_p11 = pneg %p476_p10 }
  0xd0   : > { %p483_p2 = por %p482_p1, %p481_p0 }
  0xd2   : > { %p484_p4 = pnand %p483_p2, %p477_p11 }
  0xd4   : > { %487 = shalt.err (!%p484_p4)
}
  0xd5   : > { %382 = dma.vmem_to_hbm [thread:$0]  (%p626_p3), %s679_s3, 128, %s677_s5, %s263_s12  }
  0xd6 PF: > { %p388_p5 = scmp.ge.s32.totalorder %s554_s16, 2  ;;  %s290_s29 = sand.u32 1, %s526_s9  }
  0xd7   : > { %s291_s30 = scalar_lea.sflag [#allocation3], %s290_s29 }
  0xd8   : > { %p385_p6 = pnand %p388_p5, %p635_p8 }
  0xda   : > { %521 = dma.done.wait (!%p385_p6), %s291_s30, 128  }
  0xdb   : > { %523 = vsyncadd (!%p385_p6), %s291_s30, 4294967168  ;;  %s15_s16 = sadd.s32 1, %s554_s16   ;;  %s735_s9 = smov %s530_s10 }
  0xdc   : > { %p12_p7 = scmp.ge.s32.totalorder %s15_s16, 6   ;;  %s736_s10 = smov %s534_s11 }
  0xdd   : > { %s737_s11 = smov %s644_s27  ;;  %s738_s12 = smov %s546_s14 }
  0xde   : > { %s739_s13 = smov %s550_s15  ;;  %s740_s14 = smov %s743_s19 }
  0xdf   : > { %s741_s15 = smov %s747_s20  ;;  %14 = sbr.rel (!%p12_p7) target bundleno = 5 (0x5), region = 66 }
  0xe6   :  { %296 = vsyncpa [#allocation3], 1 }
  0xe7   :  { %298 = vsyncpa [#allocation3 + $0x1], 1 }

</bundles_post_ra>
